<compile_context>
chip_gen: v7x
topology: tpu7x:2x2x1
jax: 0.10.0
libtpu: 0.0.40
codegen_flags: <defaults>
</compile_context>

<pallas_src>
import functools

import jax
import jax.numpy as jnp
from jax.experimental import pallas as pl
from jax.experimental.pallas import tpu as pltpu


# ----------------------------------------------------------------------------
# Helpers
# ----------------------------------------------------------------------------

def _pick_tile(dim, pref, align):
    """Largest legal tile <= pref: full dim if small, else an aligned divisor."""
    if dim <= pref:
        return dim
    t = (pref // align) * align
    while t >= align:
        if dim % t == 0:
            return t
        t -= align
    return dim  # fallback: single full block


def _pick_divisor(n, pref):
    """Largest divisor of n that is <= pref (used for LSTM time-tile)."""
    t = min(n, pref)
    while n % t:
        t -= 1
    return t


# ----------------------------------------------------------------------------
# Pallas kernels
# ----------------------------------------------------------------------------

def _linear_kernel(x_ref, w_ref, b_ref, o_ref, acc_ref, *, act):
    k = pl.program_id(2)

    @pl.when(k == 0)
    def _():
        acc_ref[...] = jnp.zeros_like(acc_ref)

    acc_ref[...] += jnp.dot(x_ref[...], w_ref[...],
                            preferred_element_type=jnp.float32)

    @pl.when(k == pl.num_programs(2) - 1)
    def _():
        y = acc_ref[...] + b_ref[...]
        if act == "gelu":
            # TODO(synk): HF BERT default is exact (erf) GELU; tanh approximation
            # is used here for robust Mosaic lowering.
            y = jax.nn.gelu(y, approximate=True)
        o_ref[...] = y.astype(o_ref.dtype)


def linear(x, w, b, act=None, out_dtype=jnp.float32,
           tm_pref=512, tn_pref=512, tk_pref=512):
    """Tiled y = act(x @ w + b). x:(M,K), w:(K,N), b:(N,). bf16 MXU, f32 acc."""
    M, K = x.shape
    N = w.shape[1]
    x = x.astype(jnp.bfloat16)                 # once, in the wrapper
    w = w.astype(jnp.bfloat16)                 # no-op (weights pre-cast at prep)
    b = b.reshape(1, N).astype(jnp.float32)
    tm = _pick_tile(M, tm_pref, 16)
    tn = _pick_tile(N, tn_pref, 128)
    tk = _pick_tile(K, tk_pref, 128)
    grid = (M // tm, N // tn, K // tk)
    if K // tk >= 4:        # long-K GEMMs: deeper weight buffering hides DMA
        w_spec = pl.BlockSpec((tk, tn), lambda i, j, k: (k, j),
                              pipeline_mode=pl.Buffered(3))
    else:
        w_spec = pl.BlockSpec((tk, tn), lambda i, j, k: (k, j))
    return pl.pallas_call(
        functools.partial(_linear_kernel, act=act),
        out_shape=jax.ShapeDtypeStruct((M, N), out_dtype),
        grid=grid,
        in_specs=[pl.BlockSpec((tm, tk), lambda i, j, k: (i, k)),
                  w_spec,
                  pl.BlockSpec((1, tn), lambda i, j, k: (0, j))],
        out_specs=pl.BlockSpec((tm, tn), lambda i, j, k: (i, j)),
        scratch_shapes=[pltpu.VMEM((tm, tn), jnp.float32)],
        compiler_params=pltpu.CompilerParams(
            dimension_semantics=("parallel", "parallel", "arbitrary")),
    )(x, w, b)


def _linear_res_ln_kernel(x_ref, w_ref, b_ref, r_ref, g_ref, be_ref,
                          o_ref, acc_ref):
    k = pl.program_id(1)

    @pl.when(k == 0)
    def _():
        acc_ref[...] = jnp.zeros_like(acc_ref)

    acc_ref[...] += jnp.dot(x_ref[...], w_ref[...],
                            preferred_element_type=jnp.float32)

    @pl.when(k == pl.num_programs(1) - 1)
    def _():
        y = acc_ref[...] + b_ref[...] + r_ref[...]
        mu = jnp.mean(y, axis=-1, keepdims=True)
        var = jnp.mean((y - mu) ** 2, axis=-1, keepdims=True)
        yn = (y - mu) * jax.lax.rsqrt(var + 1e-12)
        o_ref[...] = (yn * g_ref[...] + be_ref[...]).astype(o_ref.dtype)


def linear_res_ln(x, w, b, residual, gamma, beta, tm_pref=256, tk_pref=512):
    """LayerNorm(x @ w + b + residual). Full N per block so LN fuses in-epilogue.
    tm_pref=256 keeps the full-N row block inside v5e's default scoped VMEM."""
    M, K = x.shape
    N = w.shape[1]
    x = x.astype(jnp.bfloat16)
    w = w.astype(jnp.bfloat16)
    b = b.reshape(1, N).astype(jnp.float32)
    gamma = gamma.reshape(1, N).astype(jnp.float32)
    beta = beta.reshape(1, N).astype(jnp.float32)
    residual = residual.astype(jnp.float32)
    tm = _pick_tile(M, tm_pref, 16)
    tk = _pick_tile(K, tk_pref, 128)
    grid = (M // tm, K // tk)
    return pl.pallas_call(
        _linear_res_ln_kernel,
        out_shape=jax.ShapeDtypeStruct((M, N), jnp.float32),
        grid=grid,
        in_specs=[pl.BlockSpec((tm, tk), lambda i, k: (i, k)),
                  pl.BlockSpec((tk, N), lambda i, k: (k, 0)),
                  pl.BlockSpec((1, N), lambda i, k: (0, 0)),
                  pl.BlockSpec((tm, N), lambda i, k: (i, 0)),
                  pl.BlockSpec((1, N), lambda i, k: (0, 0)),
                  pl.BlockSpec((1, N), lambda i, k: (0, 0))],
        out_specs=pl.BlockSpec((tm, N), lambda i, k: (i, 0)),
        scratch_shapes=[pltpu.VMEM((tm, N), jnp.float32)],
        compiler_params=pltpu.CompilerParams(
            dimension_semantics=("parallel", "arbitrary")),
    )(x, w, b, residual, gamma, beta)


def _layernorm_kernel(x_ref, g_ref, b_ref, o_ref):
    x = x_ref[...].astype(jnp.float32)
    mu = jnp.mean(x, axis=-1, keepdims=True)
    var = jnp.mean((x - mu) ** 2, axis=-1, keepdims=True)
    y = (x - mu) * jax.lax.rsqrt(var + 1e-12)
    o_ref[...] = (y * g_ref[...] + b_ref[...]).astype(o_ref.dtype)


def layernorm(x2d, gamma, beta, tm_pref=1024):
    """Standalone row LayerNorm (used only once for the embedding output)."""
    M, H = x2d.shape
    tm = _pick_tile(M, tm_pref, 8)
    return pl.pallas_call(
        _layernorm_kernel,
        out_shape=jax.ShapeDtypeStruct((M, H), jnp.float32),
        grid=(M // tm,),
        in_specs=[pl.BlockSpec((tm, H), lambda i: (i, 0)),
                  pl.BlockSpec((1, H), lambda i: (0, 0)),
                  pl.BlockSpec((1, H), lambda i: (0, 0))],
        out_specs=pl.BlockSpec((tm, H), lambda i: (i, 0)),
        compiler_params=pltpu.CompilerParams(dimension_semantics=("parallel",)),
    )(x2d.astype(jnp.float32), gamma.reshape(1, H), beta.reshape(1, H))


def _attn_kernel(q_ref, k_ref, v_ref, m_ref, o_ref, *, nH, Dh, scale):
    q = q_ref[0]                          # (tq, H) bf16
    k = k_ref[0]                          # (S,  H) bf16
    v = v_ref[0]                          # (S,  H) bf16
    mask = m_ref[0]                       # (1,  S) f32 additive bias
    for h in range(nH):                   # static unroll over heads
        sl = slice(h * Dh, (h + 1) * Dh)
        s = jax.lax.dot_general(q[:, sl], k[:, sl], (((1,), (1,)), ((), ())),
                                preferred_element_type=jnp.float32)
        s = s * scale + mask
        m = jnp.max(s, axis=-1, keepdims=True)
        # NOTE: on v6e/v7x `jnp.exp((s - m).astype(jnp.bfloat16))` ~doubles EUP
        # throughput; kept f32 here to stay correct/fast on v5e as well.
        p = jnp.exp(s - m)
        p = p * pl.reciprocal(jnp.sum(p, axis=-1, keepdims=True), approx=True)
        o_ref[0, :, sl] = jnp.dot(p.astype(jnp.bfloat16), v[:, sl],
                                  preferred_element_type=jnp.float32
                                  ).astype(o_ref.dtype)


def attention(qkv, mask_bias, nH, Dh, scale, tq_pref=256):
    """qkv: (B, S, 3H) fused Q|K|V (bf16), mask_bias: (B, 1, S).
    Grid is (B, S//tq): Q is a (tq, H) tile, K/V are full-S column views of the
    same qkv slab (zero-copy when H is a multiple of 128). Returns (B,S,H) bf16."""
    B, S, H3 = qkv.shape
    H = H3 // 3
    tq = _pick_tile(S, tq_pref, 16)
    grid = (B, S // tq)
    if H % 128 == 0:
        # Column-sliced views of the single fused slab (no q/k/v split in HBM).
        operands = (qkv, qkv, qkv, mask_bias)
        q_spec = pl.BlockSpec((1, tq, H), lambda b, qi: (b, qi, 0))
        k_spec = pl.BlockSpec((1, S, H), lambda b, qi: (b, 0, 1))
        v_spec = pl.BlockSpec((1, S, H), lambda b, qi: (b, 0, 2))
    else:
        # Lane-alignment fallback (non-128-multiple H): split once in the wrapper.
        operands = (qkv[:, :, :H], qkv[:, :, H:2 * H], qkv[:, :, 2 * H:], mask_bias)
        q_spec = pl.BlockSpec((1, tq, H), lambda b, qi: (b, qi, 0))
        k_spec = pl.BlockSpec((1, S, H), lambda b, qi: (b, 0, 0))
        v_spec = pl.BlockSpec((1, S, H), lambda b, qi: (b, 0, 0))
    return pl.pallas_call(
        functools.partial(_attn_kernel, nH=nH, Dh=Dh, scale=scale),
        out_shape=jax.ShapeDtypeStruct((B, S, H), jnp.bfloat16),
        grid=grid,
        in_specs=[q_spec, k_spec, v_spec,
                  pl.BlockSpec((1, 1, S), lambda b, qi: (b, 0, 0))],
        out_specs=pl.BlockSpec((1, tq, H), lambda b, qi: (b, qi, 0)),
        compiler_params=pltpu.CompilerParams(
            dimension_semantics=("parallel", "parallel")),
    )(*operands)


def _lstm_kernel(gx_ref, whh_ref, o_ref, h_scr, c_scr, *, Tt):
    d = pl.program_id(0)
    t = pl.program_id(1)

    @pl.when(t == 0)
    def _():
        h_scr[...] = jnp.zeros_like(h_scr)
        c_scr[...] = jnp.zeros_like(c_scr)

    Hd = h_scr.shape[1]
    whh = whh_ref[0]                                   # (Hd, 4*Hd) bf16
    gx_is_4d = len(gx_ref.shape) == 4
    for tt in range(Tt):                               # static unroll over time tile
        idx = d * (Tt - 1) + (1 - 2 * d) * tt          # fwd: tt ; bwd: Tt-1-tt
        gx_t = gx_ref[0, idx] if gx_is_4d else gx_ref[idx]   # (B, 4*Hd) f32
        gates = gx_t + jnp.dot(h_scr[...].astype(jnp.bfloat16), whh,
                               preferred_element_type=jnp.float32)
        # PyTorch LSTM gate order: input, forget, cell(g), output
        i = jax.nn.sigmoid(gates[:, 0 * Hd:1 * Hd])
        f = jax.nn.sigmoid(gates[:, 1 * Hd:2 * Hd])
        g = jnp.tanh(gates[:, 2 * Hd:3 * Hd])
        o = jax.nn.sigmoid(gates[:, 3 * Hd:4 * Hd])
        c = f * c_scr[...] + i * g
        h = o * jnp.tanh(c)
        c_scr[...] = c
        h_scr[...] = h
        o_ref[0, idx] = h


def lstm_bidir_scan(gx, whh, tt_pref=16):
    """Bidirectional LSTM recurrence over time-major input gates.
    gx: (S, B, 2*G) fused [fwd|bwd] gates (column-sliced per direction), or
        (2, S, B, G) fallback layout when G is not a 128 multiple.
    whh: (2, Hd, G) bf16.  Returns (2, S, B, Hd) f32 in forward time order.
    Each grid step processes Tt timesteps; backward direction is handled with
    reversed block index maps + reversed in-block order (no data flips)."""
    if gx.ndim == 3:
        S, B, G2 = gx.shape
        G = G2 // 2
    else:
        _, S, B, G = gx.shape
    Hd = G // 4
    Tt = _pick_divisor(S, tt_pref)
    nT = S // Tt

    def tb(d, t):                          # d==0 -> t ; d==1 -> nT-1-t
        return d * (nT - 1) + (1 - 2 * d) * t

    if gx.ndim == 3:
        gx_spec = pl.BlockSpec((Tt, B, G), lambda d, t: (tb(d, t), 0, d))
    else:
        gx_spec = pl.BlockSpec((1, Tt, B, G), lambda d, t: (d, tb(d, t), 0, 0))

    return pl.pallas_call(
        functools.partial(_lstm_kernel, Tt=Tt),
        out_shape=jax.ShapeDtypeStruct((2, S, B, Hd), jnp.float32),
        grid=(2, nT),
        in_specs=[gx_spec,
                  pl.BlockSpec((1, Hd, G), lambda d, t: (d, 0, 0))],
        out_specs=pl.BlockSpec((1, Tt, B, Hd), lambda d, t: (d, tb(d, t), 0, 0)),
        scratch_shapes=[pltpu.VMEM((B, Hd), jnp.float32),
                        pltpu.VMEM((B, Hd), jnp.float32)],
        compiler_params=pltpu.CompilerParams(
            dimension_semantics=("parallel", "arbitrary")),
    )(gx, whh)


# ----------------------------------------------------------------------------
# Model glue (plain JAX orchestrating the Pallas kernels)
# ----------------------------------------------------------------------------

def bert_layer(x2, lp, mask_bias, B, S, nH, Dh, scale):
    H = nH * Dh

    # Fused QKV projection (one GEMM, x read once) emitted in bf16.
    qkv = linear(x2, lp["qkv_w"], lp["qkv_b"],
                 out_dtype=jnp.bfloat16).reshape(B, S, 3 * H)
    ctx = attention(qkv, mask_bias, nH, Dh, scale)                  # (B, S, H) bf16
    ctx2 = ctx.reshape(B * S, H)

    # attn-out projection fused with residual add + LayerNorm.
    x2 = linear_res_ln(ctx2, lp["ao_w"], lp["ao_b"], x2, lp["ln1_g"], lp["ln1_b"])

    # FFN: bias+GELU fused; output projection fused with residual + LayerNorm.
    inter = linear(x2, lp["i_w"], lp["i_b"], act="gelu", out_dtype=jnp.bfloat16)
    x2 = linear_res_ln(inter, lp["o_w"], lp["o_b"], x2, lp["ln2_g"], lp["ln2_b"])
    return x2


def bert_encoder(params, cfg, ids, attention_mask):
    B, S = ids.shape
    H = cfg["hidden_size"]
    nH = cfg["num_attention_heads"]
    Dh = H // nH
    emb = params["embeddings"]

    x = (emb["word"][ids]
         + emb["pos"][jnp.arange(S)][None, :, :]
         + emb["type"][0][None, None, :])
    x2 = layernorm(x.reshape(B * S, H), emb["ln_g"], emb["ln_b"])

    # Additive mask bias kept at (B, 1, S) -- shared across heads via BlockSpec.
    mask_bias = (1.0 - attention_mask.astype(jnp.float32))[:, None, :] * -10000.0

    scale = 1.0 / (Dh ** 0.5)
    for lp in params["layers"]:
        x2 = bert_layer(x2, lp, mask_bias, B, S, nH, Dh, scale)
    return x2.reshape(B, S, H)  # sequence_output


def bilstm(x, lstm_p):
    B, S, H = x.shape
    Hd = H // 2
    G = 4 * Hd

    # One time-major relayout; single fused (H, 8*Hd) input-gate GEMM for both
    # directions (x read from HBM once).
    x_tm = x.transpose(1, 0, 2).reshape(S * B, H)                   # (S*B, H)
    gx = linear(x_tm, lstm_p["w_ih_cat"], lstm_p["b_cat"])          # (S*B, 2G) f32
    if G % 128 == 0:
        gx = gx.reshape(S, B, 2 * G)          # free reshape; column-sliced specs
    else:
        gx = gx.reshape(S, B, 2, G).transpose(2, 0, 1, 3)   # small-H fallback copy

    out = lstm_bidir_scan(gx, lstm_p["whh"])                         # (2, S, B, Hd)
    h = jnp.concatenate([out[0], out[1]], axis=-1)                   # (S, B, H)
    return h.transpose(1, 0, 2)                                      # (B, S, H)


def classifier_logits(x2d, cls_p, num_labels):
    """Lane-dense classifier: weight/bias pre-padded to 128 lanes at prep time."""
    y = linear(x2d, cls_p["w_pad"], cls_p["b_pad"])
    return y[:, :num_labels]


def crf_log_likelihood(emissions, tags, mask, crf_p):
    """torchcrf-style forward (reduction='sum'). Runs in plain JAX."""
    # TODO(synk): CRF forward recurrence kept in plain JAX (tiny tag-space scan).
    B, S, L = emissions.shape
    start_t, end_t, trans = crf_p["start"], crf_p["end"], crf_p["trans"]
    maskf = mask.astype(jnp.float32)
    batch_idx = jnp.arange(B)

    first_tags = tags[:, 0]
    score0 = start_t[first_tags] + emissions[batch_idx, 0, first_tags]

    def num_step(carry, t):
        score, prev = carry
        cur = tags[:, t]
        sc = trans[prev, cur] + emissions[batch_idx, t, cur]
        score = score + sc * maskf[:, t]
        prev = jnp.where(maskf[:, t] > 0, cur, prev)
        return (score, prev), None

    (score, last_tags), _ = jax.lax.scan(num_step, (score0, first_tags),
                                         jnp.arange(1, S))
    numerator = score + end_t[last_tags]

    alpha0 = start_t[None, :] + emissions[:, 0]

    def den_step(alpha, t):
        nxt = jax.scipy.special.logsumexp(
            alpha[:, :, None] + trans[None] + emissions[:, t][:, None, :], axis=1)
        alpha = jnp.where(maskf[:, t][:, None] > 0, nxt, alpha)
        return alpha, None

    alpha, _ = jax.lax.scan(den_step, alpha0, jnp.arange(1, S))
    denominator = jax.scipy.special.logsumexp(alpha + end_t[None, :], axis=1)
    return jnp.sum(numerator - denominator)


def forward(params, cfg, ids, attention_mask, labels=None):
    B, S = ids.shape
    H = cfg["hidden_size"]
    L = cfg["num_labels"]

    sequence_output = bert_encoder(params, cfg, ids, attention_mask)     # (B, S, H)
    lstm_output = bilstm(sequence_output, params["lstm"])                # (B, S, H)
    # dropout -> identity (inference)
    logits = classifier_logits(lstm_output.reshape(B * S, H),
                               params["cls"], L).reshape(B, S, L)
    if labels is not None:
        # TODO(synk): backward LSTM direction reverses the full padded sequence
        # (matches an unpacked nn.LSTM, not pack_padded_sequence semantics).
        loss = crf_log_likelihood(logits, labels, attention_mask, params["crf"])
        return (-1.0 * loss, logits)
    return logits


# ----------------------------------------------------------------------------
# Parameter initialization and one-time device-format preparation
# ----------------------------------------------------------------------------

def init_params(key, cfg):
    H = cfg["hidden_size"]
    I = cfg["intermediate_size"]
    L = cfg["num_labels"]
    Hd = H // 2
    keys = iter(jax.random.split(key, 256))

    def w(shape, scale=0.02):
        return jax.random.normal(next(keys), shape, jnp.float32) * scale

    def zeros(shape):
        return jnp.zeros(shape, jnp.float32)

    params = {
        "embeddings": {
            "word": w((cfg["vocab_size"], H)),
            "pos": w((cfg["max_position_embeddings"], H)),
            "type": w((2, H)),
            "ln_g": jnp.ones((H,), jnp.float32),
            "ln_b": zeros((H,)),
        },
        "layers": [],
        "lstm": {
            "fwd": {"w_ih": w((H, 4 * Hd)), "w_hh": w((Hd, 4 * Hd)),
                    "b_ih": zeros((4 * Hd,)), "b_hh": zeros((4 * Hd,))},
            "bwd": {"w_ih": w((H, 4 * Hd)), "w_hh": w((Hd, 4 * Hd)),
                    "b_ih": zeros((4 * Hd,)), "b_hh": zeros((4 * Hd,))},
        },
        "cls": {"w": w((H, L)), "b": zeros((L,))},
        "crf": {"start": w((L,), 0.1), "end": w((L,), 0.1), "trans": w((L, L), 0.1)},
    }
    for _ in range(cfg["num_hidden_layers"]):
        # Q/K/V weights pre-packed into one (H, 3H) matrix for the fused GEMM.
        params["layers"].append({
            "qkv_w": w((H, 3 * H)), "qkv_b": zeros((3 * H,)),
            "ao_w": w((H, H)), "ao_b": zeros((H,)),
            "ln1_g": jnp.ones((H,), jnp.float32), "ln1_b": zeros((H,)),
            "i_w": w((H, I)), "i_b": zeros((I,)),
            "o_w": w((I, H)), "o_b": zeros((H,)),
            "ln2_g": jnp.ones((H,), jnp.float32), "ln2_b": zeros((H,)),
        })
    return params


def prepare_params(params, cfg):
    """One-time device-format prep: bf16 weight casts, fused/stacked LSTM
    weights, lane-padded classifier. Run OUTSIDE jit so it happens once."""
    H = cfg["hidden_size"]
    L = cfg["num_labels"]
    Np = ((L + 127) // 128) * 128

    prepared = {"embeddings": params["embeddings"], "crf": params["crf"],
                "layers": []}
    for lp in params["layers"]:
        prepared["layers"].append({
            "qkv_w": lp["qkv_w"].astype(jnp.bfloat16), "qkv_b": lp["qkv_b"],
            "ao_w": lp["ao_w"].astype(jnp.bfloat16), "ao_b": lp["ao_b"],
            "ln1_g": lp["ln1_g"], "ln1_b": lp["ln1_b"],
            "i_w": lp["i_w"].astype(jnp.bfloat16), "i_b": lp["i_b"],
            "o_w": lp["o_w"].astype(jnp.bfloat16), "o_b": lp["o_b"],
            "ln2_g": lp["ln2_g"], "ln2_b": lp["ln2_b"],
        })

    lf, lb = params["lstm"]["fwd"], params["lstm"]["bwd"]
    prepared["lstm"] = {
        # Fused [fwd | bwd] input-gate projection: (H, 8*Hd) bf16.
        "w_ih_cat": jnp.concatenate([lf["w_ih"], lb["w_ih"]],
                                    axis=1).astype(jnp.bfloat16),
        "b_cat": jnp.concatenate([lf["b_ih"] + lf["b_hh"],
                                  lb["b_ih"] + lb["b_hh"]]),
        "whh": jnp.stack([lf["w_hh"], lb["w_hh"]]).astype(jnp.bfloat16),
    }
    prepared["cls"] = {
        "w_pad": jnp.zeros((H, Np), jnp.bfloat16).at[:, :L].set(
            params["cls"]["w"].astype(jnp.bfloat16)),
        "b_pad": jnp.zeros((Np,), jnp.float32).at[:L].set(params["cls"]["b"]),
    }
    return prepared


# ----------------------------------------------------------------------------
# Main
# ----------------------------------------------------------------------------

if __name__ == "__main__":
    # H=128 keeps all kernel blocks lane-aligned (H, 3H, 4*Hd multiples of 128)
    # while remaining a tiny smoke-test configuration.
    cfg = dict(vocab_size=50, hidden_size=128, num_hidden_layers=2,
               num_attention_heads=2, intermediate_size=256,
               max_position_embeddings=32, num_labels=5)

    params = prepare_params(init_params(jax.random.PRNGKey(0), cfg), cfg)

    B, S = 2, 8
    kid, klab = jax.random.split(jax.random.PRNGKey(0))
    ids = jax.random.randint(kid, (B, S), 0, cfg["vocab_size"], dtype=jnp.int32)
    attention_mask = jnp.array([[1, 1, 1, 1, 1, 1, 1, 1],
                                [1, 1, 1, 1, 1, 1, 0, 0]], dtype=jnp.int32)
    labels = jax.random.randint(klab, (B, S), 0, cfg["num_labels"], dtype=jnp.int32)

    fwd_with_labels = jax.jit(lambda p, i, m, l: forward(p, cfg, i, m, l))
    fwd_logits_only = jax.jit(lambda p, i, m: forward(p, cfg, i, m))

    # Path with labels: returns (-loss, logits)
    neg_loss, logits = fwd_with_labels(params, ids, attention_mask, labels)
    jax.block_until_ready((neg_loss, logits))
    assert logits.shape == (B, S, cfg["num_labels"])

    # Path without labels: returns logits only
    logits_only = fwd_logits_only(params, ids, attention_mask)
    jax.block_until_ready(logits_only)
    assert logits_only.shape == (B, S, cfg["num_labels"])

    print("KERNEL_OK")
</pallas_src>

<mosaic_0001>
module attributes {stable_mosaic.version = 11 : i64} {
  func.func @_layernorm_kernel(%arg0: i32, %arg1: memref<16x128xf32, #tpu.memory_space<vmem>>, %arg2: memref<1x128xf32, #tpu.memory_space<vmem>>, %arg3: memref<1x128xf32, #tpu.memory_space<vmem>>, %arg4: memref<16x128xf32, #tpu.memory_space<vmem>>) attributes {dimension_semantics = [#tpu.dimension_semantics<parallel>], iteration_bounds = array<i64: 1>, scalar_prefetch = 0 : i64, scratch_operands = 0 : i64, tpu.core_type = #tpu.core_type<tc>, window_params = [{transform_indices = @transform_0, window_bounds = array<i64: 16, 128>}, {pipeline_mode = #tpu.pipeline_mode<synchronous>, transform_indices = @transform_1, window_bounds = array<i64: 1, 128>}, {pipeline_mode = #tpu.pipeline_mode<synchronous>, transform_indices = @transform_2, window_bounds = array<i64: 1, 128>}, {transform_indices = @transform_3, window_bounds = array<i64: 16, 128>}]} {
    %c0 = arith.constant 0 : index
    %c0_0 = arith.constant 0 : index
    %0 = vector.load %arg1[%c0, %c0_0] : memref<16x128xf32, #tpu.memory_space<vmem>>, vector<16x128xf32>
    %cst = arith.constant dense<0.000000e+00> : vector<16xf32>
    %1 = vector.multi_reduction <add>, %0, %cst [1] : vector<16x128xf32> to vector<16xf32>
    %2 = vector.shape_cast %1 : vector<16xf32> to vector<16x1xf32>
    %cst_1 = arith.constant 1.280000e+02 : f32
    %3 = vector.broadcast %cst_1 : f32 to vector<16x1xf32>
    %4 = arith.divf %2, %3 : vector<16x1xf32>
    %5 = vector.broadcast %4 : vector<16x1xf32> to vector<16x128xf32>
    %6 = arith.subf %0, %5 : vector<16x128xf32>
    %7 = arith.mulf %6, %6 : vector<16x128xf32>
    %cst_2 = arith.constant dense<0.000000e+00> : vector<16xf32>
    %8 = vector.multi_reduction <add>, %7, %cst_2 [1] : vector<16x128xf32> to vector<16xf32>
    %9 = vector.shape_cast %8 : vector<16xf32> to vector<16x1xf32>
    %cst_3 = arith.constant 1.280000e+02 : f32
    %10 = vector.broadcast %cst_3 : f32 to vector<16x1xf32>
    %11 = arith.divf %9, %10 : vector<16x1xf32>
    %12 = vector.broadcast %4 : vector<16x1xf32> to vector<16x128xf32>
    %13 = arith.subf %0, %12 : vector<16x128xf32>
    %cst_4 = arith.constant 9.99999996E-13 : f32
    %14 = vector.broadcast %cst_4 : f32 to vector<16x1xf32>
    %15 = arith.addf %11, %14 : vector<16x1xf32>
    %16 = math.rsqrt %15 : vector<16x1xf32>
    %17 = vector.broadcast %16 : vector<16x1xf32> to vector<16x128xf32>
    %18 = arith.mulf %13, %17 : vector<16x128xf32>
    %c0_5 = arith.constant 0 : index
    %c0_6 = arith.constant 0 : index
    %19 = vector.load %arg2[%c0_5, %c0_6] : memref<1x128xf32, #tpu.memory_space<vmem>>, vector<1x128xf32>
    %20 = vector.broadcast %19 : vector<1x128xf32> to vector<16x128xf32>
    %21 = arith.mulf %18, %20 : vector<16x128xf32>
    %c0_7 = arith.constant 0 : index
    %c0_8 = arith.constant 0 : index
    %22 = vector.load %arg3[%c0_7, %c0_8] : memref<1x128xf32, #tpu.memory_space<vmem>>, vector<1x128xf32>
    %23 = vector.broadcast %22 : vector<1x128xf32> to vector<16x128xf32>
    %24 = arith.addf %21, %23 : vector<16x128xf32>
    %c0_9 = arith.constant 0 : index
    %c0_10 = arith.constant 0 : index
    %25 = vector.load %arg4[%c0_9, %c0_10] : memref<16x128xf32, #tpu.memory_space<vmem>>, vector<16x128xf32>
    tpu.vector_store %arg4[%c0_9, %c0_10], %24 {strides = array<i32>} : memref<16x128xf32, #tpu.memory_space<vmem>>, vector<16x128xf32>,
    return
  }
  func.func @transform_0(%arg0: i32) -> (i32, i32) {
    %c0_i32 = arith.constant 0 : i32
    %c0_i32_0 = arith.constant 0 : i32
    return %arg0, %c0_i32 : i32, i32
  }
  func.func @transform_1(%arg0: i32) -> (i32, i32) {
    %c0_i32 = arith.constant 0 : i32
    %c0_i32_0 = arith.constant 0 : i32
    %c0_i32_1 = arith.constant 0 : i32
    return %c0_i32, %c0_i32_0 : i32, i32
  }
  func.func @transform_2(%arg0: i32) -> (i32, i32) {
    %c0_i32 = arith.constant 0 : i32
    %c0_i32_0 = arith.constant 0 : i32
    %c0_i32_1 = arith.constant 0 : i32
    return %c0_i32, %c0_i32_0 : i32, i32
  }
  func.func @transform_3(%arg0: i32) -> (i32, i32) {
    %c0_i32 = arith.constant 0 : i32
    %c0_i32_0 = arith.constant 0 : i32
    return %arg0, %c0_i32 : i32, i32
  }
}

module attributes {stable_mosaic.version = 11 : i64} {
  func.func @_attn_kernel(%arg0: i32, %arg1: i32, %arg2: memref<1x8x128xbf16, #tpu.memory_space<vmem>>, %arg3: memref<1x8x128xbf16, #tpu.memory_space<vmem>>, %arg4: memref<1x8x128xbf16, #tpu.memory_space<vmem>>, %arg5: memref<1x1x8xf32, #tpu.memory_space<vmem>>, %arg6: memref<1x8x128xbf16, #tpu.memory_space<vmem>>) attributes {dimension_semantics = [#tpu.dimension_semantics<parallel>, #tpu.dimension_semantics<parallel>], iteration_bounds = array<i64: 2, 1>, scalar_prefetch = 0 : i64, scratch_operands = 0 : i64, tpu.core_type = #tpu.core_type<tc>, window_params = [{transform_indices = @transform_0, window_bounds = array<i64: 1, 8, 128>}, {transform_indices = @transform_1, window_bounds = array<i64: 1, 8, 128>}, {transform_indices = @transform_2, window_bounds = array<i64: 1, 8, 128>}, {transform_indices = @transform_3, window_bounds = array<i64: 1, 1, 8>}, {transform_indices = @transform_4, window_bounds = array<i64: 1, 8, 128>}]} {
    %c0 = arith.constant 0 : index
    %c0_0 = arith.constant 0 : index
    %c0_1 = arith.constant 0 : index
    %0 = vector.load %arg2[%c0, %c0_0, %c0_1] : memref<1x8x128xbf16, #tpu.memory_space<vmem>>, vector<1x8x128xbf16>
    %1 = vector.shape_cast %0 : vector<1x8x128xbf16> to vector<8x128xbf16>
    %c0_2 = arith.constant 0 : index
    %c0_3 = arith.constant 0 : index
    %c0_4 = arith.constant 0 : index
    %2 = vector.load %arg3[%c0_2, %c0_3, %c0_4] : memref<1x8x128xbf16, #tpu.memory_space<vmem>>, vector<1x8x128xbf16>
    %3 = vector.shape_cast %2 : vector<1x8x128xbf16> to vector<8x128xbf16>
    %c0_5 = arith.constant 0 : index
    %c0_6 = arith.constant 0 : index
    %c0_7 = arith.constant 0 : index
    %4 = vector.load %arg4[%c0_5, %c0_6, %c0_7] : memref<1x8x128xbf16, #tpu.memory_space<vmem>>, vector<1x8x128xbf16>
    %5 = vector.shape_cast %4 : vector<1x8x128xbf16> to vector<8x128xbf16>
    %c0_8 = arith.constant 0 : index
    %c0_9 = arith.constant 0 : index
    %c0_10 = arith.constant 0 : index
    %6 = vector.load %arg5[%c0_8, %c0_9, %c0_10] : memref<1x1x8xf32, #tpu.memory_space<vmem>>, vector<1x1x8xf32>
    %7 = vector.shape_cast %6 : vector<1x1x8xf32> to vector<1x8xf32>
    %8 = vector.extract_strided_slice %1 {offsets = [0, 0], sizes = [8, 64], strides = [1, 1]} : vector<8x128xbf16> to vector<8x64xbf16>
    %9 = vector.extract_strided_slice %3 {offsets = [0, 0], sizes = [8, 64], strides = [1, 1]} : vector<8x128xbf16> to vector<8x64xbf16>
    %cst = arith.constant dense<0.000000e+00> : vector<8x8xf32>
    %10 = tpu.matmul %8, %9, %cst {dimension_numbers = #tpu.dot_dimension_numbers<[1], [1], [0], [0], [0, 0, 1, 0], [], []>} : vector<8x64xbf16>, vector<8x64xbf16>, vector<8x8xf32> -> vector<8x8xf32>
    %cst_11 = arith.constant 1.250000e-01 : f32
    %11 = vector.broadcast %cst_11 : f32 to vector<8x8xf32>
    %12 = arith.mulf %10, %11 : vector<8x8xf32>
    %13 = vector.broadcast %7 : vector<1x8xf32> to vector<8x8xf32>
    %14 = arith.addf %12, %13 : vector<8x8xf32>
    %cst_12 = arith.constant dense<0xFF800000> : vector<8xf32>
    %15 = vector.multi_reduction <maximumf>, %14, %cst_12 [1] : vector<8x8xf32> to vector<8xf32>
    %16 = vector.shape_cast %15 : vector<8xf32> to vector<8x1xf32>
    %17 = vector.broadcast %16 : vector<8x1xf32> to vector<8x8xf32>
    %18 = arith.subf %14, %17 : vector<8x8xf32>
    %19 = math.exp %18 : vector<8x8xf32>
    %cst_13 = arith.constant dense<0.000000e+00> : vector<8xf32>
    %20 = vector.multi_reduction <add>, %19, %cst_13 [1] : vector<8x8xf32> to vector<8xf32>
    %21 = vector.shape_cast %20 : vector<8xf32> to vector<8x1xf32>
    %22 = tpu.reciprocal %21 {approx = true} : vector<8x1xf32> -> vector<8x1xf32>
    %23 = vector.broadcast %22 : vector<8x1xf32> to vector<8x8xf32>
    %24 = arith.mulf %19, %23 : vector<8x8xf32>
    %25 = arith.truncf %24 : vector<8x8xf32> to vector<8x8xbf16>
    %26 = vector.extract_strided_slice %5 {offsets = [0, 0], sizes = [8, 64], strides = [1, 1]} : vector<8x128xbf16> to vector<8x64xbf16>
    %cst_14 = arith.constant dense<0.000000e+00> : vector<8x64xf32>
    %27 = tpu.matmul %25, %26, %cst_14 {dimension_numbers = #tpu.dot_dimension_numbers<[1], [0], [0], [1], [0, 0, 1, 1], [], []>} : vector<8x8xbf16>, vector<8x64xbf16>, vector<8x64xf32> -> vector<8x64xf32>
    %28 = arith.truncf %27 : vector<8x64xf32> to vector<8x64xbf16>
    %c0_15 = arith.constant 0 : index
    %c0_16 = arith.constant 0 : index
    %c0_17 = arith.constant 0 : index
    %29 = vector.load %arg6[%c0_15, %c0_16, %c0_17] : memref<1x8x128xbf16, #tpu.memory_space<vmem>>, vector<1x8x64xbf16>
    %30 = vector.shape_cast %29 : vector<1x8x64xbf16> to vector<8x64xbf16>
    %31 = vector.shape_cast %28 : vector<8x64xbf16> to vector<1x8x64xbf16>
    tpu.vector_store %arg6[%c0_15, %c0_16, %c0_17], %31 {strides = array<i32>} : memref<1x8x128xbf16, #tpu.memory_space<vmem>>, vector<1x8x64xbf16>,
    %32 = vector.extract_strided_slice %1 {offsets = [0, 64], sizes = [8, 64], strides = [1, 1]} : vector<8x128xbf16> to vector<8x64xbf16>
    %33 = vector.extract_strided_slice %3 {offsets = [0, 64], sizes = [8, 64], strides = [1, 1]} : vector<8x128xbf16> to vector<8x64xbf16>
    %cst_18 = arith.constant dense<0.000000e+00> : vector<8x8xf32>
    %34 = tpu.matmul %32, %33, %cst_18 {dimension_numbers = #tpu.dot_dimension_numbers<[1], [1], [0], [0], [0, 0, 1, 0], [], []>} : vector<8x64xbf16>, vector<8x64xbf16>, vector<8x8xf32> -> vector<8x8xf32>
    %cst_19 = arith.constant 1.250000e-01 : f32
    %35 = vector.broadcast %cst_19 : f32 to vector<8x8xf32>
    %36 = arith.mulf %34, %35 : vector<8x8xf32>
    %37 = vector.broadcast %7 : vector<1x8xf32> to vector<8x8xf32>
    %38 = arith.addf %36, %37 : vector<8x8xf32>
    %cst_20 = arith.constant dense<0xFF800000> : vector<8xf32>
    %39 = vector.multi_reduction <maximumf>, %38, %cst_20 [1] : vector<8x8xf32> to vector<8xf32>
    %40 = vector.shape_cast %39 : vector<8xf32> to vector<8x1xf32>
    %41 = vector.broadcast %40 : vector<8x1xf32> to vector<8x8xf32>
    %42 = arith.subf %38, %41 : vector<8x8xf32>
    %43 = math.exp %42 : vector<8x8xf32>
    %cst_21 = arith.constant dense<0.000000e+00> : vector<8xf32>
    %44 = vector.multi_reduction <add>, %43, %cst_21 [1] : vector<8x8xf32> to vector<8xf32>
    %45 = vector.shape_cast %44 : vector<8xf32> to vector<8x1xf32>
    %46 = tpu.reciprocal %45 {approx = true} : vector<8x1xf32> -> vector<8x1xf32>
    %47 = vector.broadcast %46 : vector<8x1xf32> to vector<8x8xf32>
    %48 = arith.mulf %43, %47 : vector<8x8xf32>
    %49 = arith.truncf %48 : vector<8x8xf32> to vector<8x8xbf16>
    %50 = vector.extract_strided_slice %5 {offsets = [0, 64], sizes = [8, 64], strides = [1, 1]} : vector<8x128xbf16> to vector<8x64xbf16>
    %cst_22 = arith.constant dense<0.000000e+00> : vector<8x64xf32>
    %51 = tpu.matmul %49, %50, %cst_22 {dimension_numbers = #tpu.dot_dimension_numbers<[1], [0], [0], [1], [0, 0, 1, 1], [], []>} : vector<8x8xbf16>, vector<8x64xbf16>, vector<8x64xf32> -> vector<8x64xf32>
    %52 = arith.truncf %51 : vector<8x64xf32> to vector<8x64xbf16>
    %c0_23 = arith.constant 0 : index
    %c0_24 = arith.constant 0 : index
    %c64 = arith.constant 64 : index
    %53 = vector.load %arg6[%c0_23, %c0_24, %c64] : memref<1x8x128xbf16, #tpu.memory_space<vmem>>, vector<1x8x64xbf16>
    %54 = vector.shape_cast %53 : vector<1x8x64xbf16> to vector<8x64xbf16>
    %55 = vector.shape_cast %52 : vector<8x64xbf16> to vector<1x8x64xbf16>
    tpu.vector_store %arg6[%c0_23, %c0_24, %c64], %55 {strides = array<i32>} : memref<1x8x128xbf16, #tpu.memory_space<vmem>>, vector<1x8x64xbf16>,
    return
  }
  func.func @transform_0(%arg0: i32, %arg1: i32) -> (i32, i32, i32) {
    %c0_i32 = arith.constant 0 : i32
    %c0_i32_0 = arith.constant 0 : i32
    return %arg0, %arg1, %c0_i32 : i32, i32, i32
  }
  func.func @transform_1(%arg0: i32, %arg1: i32) -> (i32, i32, i32) {
    %c0_i32 = arith.constant 0 : i32
    %c1_i32 = arith.constant 1 : i32
    %c0_i32_0 = arith.constant 0 : i32
    return %arg0, %c0_i32, %c1_i32 : i32, i32, i32
  }
  func.func @transform_2(%arg0: i32, %arg1: i32) -> (i32, i32, i32) {
    %c0_i32 = arith.constant 0 : i32
    %c2_i32 = arith.constant 2 : i32
    %c0_i32_0 = arith.constant 0 : i32
    return %arg0, %c0_i32, %c2_i32 : i32, i32, i32
  }
  func.func @transform_3(%arg0: i32, %arg1: i32) -> (i32, i32, i32) {
    %c0_i32 = arith.constant 0 : i32
    %c0_i32_0 = arith.constant 0 : i32
    %c0_i32_1 = arith.constant 0 : i32
    return %arg0, %c0_i32, %c0_i32_0 : i32, i32, i32
  }
  func.func @transform_4(%arg0: i32, %arg1: i32) -> (i32, i32, i32) {
    %c0_i32 = arith.constant 0 : i32
    %c0_i32_0 = arith.constant 0 : i32
    return %arg0, %arg1, %c0_i32 : i32, i32, i32
  }
}

module attributes {stable_mosaic.version = 11 : i64} {
  func.func @_linear_kernel(%arg0: i32, %arg1: i32, %arg2: i32, %arg3: memref<16x128xbf16, #tpu.memory_space<vmem>>, %arg4: memref<128x384xbf16, #tpu.memory_space<vmem>>, %arg5: memref<1x384xf32, #tpu.memory_space<vmem>>, %arg6: memref<16x384xbf16, #tpu.memory_space<vmem>>, %arg7: memref<16x384xf32, #tpu.memory_space<vmem>>) attributes {dimension_semantics = [#tpu.dimension_semantics<parallel>, #tpu.dimension_semantics<parallel>, #tpu.dimension_semantics<arbitrary>], iteration_bounds = array<i64: 1, 1, 1>, scalar_prefetch = 0 : i64, scratch_operands = 1 : i64, tpu.core_type = #tpu.core_type<tc>, window_params = [{transform_indices = @transform_0, window_bounds = array<i64: 16, 128>}, {transform_indices = @transform_1, window_bounds = array<i64: 128, 384>}, {transform_indices = @transform_2, window_bounds = array<i64: 1, 384>}, {transform_indices = @transform_3, window_bounds = array<i64: 16, 384>}]} {
    %c0_i32 = arith.constant 0 : i32
    %0 = arith.cmpi eq, %arg2, %c0_i32 : i32
    %1 = arith.extui %0 : i1 to i32
    %c0_i32_0 = arith.constant 0 : i32
    %2 = arith.cmpi ne, %1, %c0_i32_0 : i32
    scf.if %2 {
      %cst_10 = arith.constant 0.000000e+00 : f32
      %12 = vector.broadcast %cst_10 : f32 to vector<16x384xf32>
      %c0_11 = arith.constant 0 : index
      %c0_12 = arith.constant 0 : index
      %13 = vector.load %arg7[%c0_11, %c0_12] : memref<16x384xf32, #tpu.memory_space<vmem>>, vector<16x384xf32>
      tpu.vector_store %arg7[%c0_11, %c0_12], %12 {strides = array<i32>} : memref<16x384xf32, #tpu.memory_space<vmem>>, vector<16x384xf32>,
    } else {
    }
    %c0 = arith.constant 0 : index
    %c0_1 = arith.constant 0 : index
    %3 = vector.load %arg7[%c0, %c0_1] : memref<16x384xf32, #tpu.memory_space<vmem>>, vector<16x384xf32>
    %c0_2 = arith.constant 0 : index
    %c0_3 = arith.constant 0 : index
    %4 = vector.load %arg3[%c0_2, %c0_3] : memref<16x128xbf16, #tpu.memory_space<vmem>>, vector<16x128xbf16>
    %c0_4 = arith.constant 0 : index
    %c0_5 = arith.constant 0 : index
    %5 = vector.load %arg4[%c0_4, %c0_5] : memref<128x384xbf16, #tpu.memory_space<vmem>>, vector<128x384xbf16>
    %cst = arith.constant dense<0.000000e+00> : vector<16x384xf32>
    %6 = tpu.matmul %4, %5, %cst {dimension_numbers = #tpu.dot_dimension_numbers<[1], [0], [0], [1], [0, 0, 1, 1], [], []>} : vector<16x128xbf16>, vector<128x384xbf16>, vector<16x384xf32> -> vector<16x384xf32>
    %7 = arith.addf %3, %6 : vector<16x384xf32>
    %c0_6 = arith.constant 0 : index
    %c0_7 = arith.constant 0 : index
    %8 = vector.load %arg7[%c0_6, %c0_7] : memref<16x384xf32, #tpu.memory_space<vmem>>, vector<16x384xf32>
    tpu.vector_store %arg7[%c0_6, %c0_7], %7 {strides = array<i32>} : memref<16x384xf32, #tpu.memory_space<vmem>>, vector<16x384xf32>,
    %c0_i32_8 = arith.constant 0 : i32
    %9 = arith.cmpi eq, %arg2, %c0_i32_8 : i32
    %10 = arith.extui %9 : i1 to i32
    %c0_i32_9 = arith.constant 0 : i32
    %11 = arith.cmpi ne, %10, %c0_i32_9 : i32
    scf.if %11 {
      %c0_10 = arith.constant 0 : index
      %c0_11 = arith.constant 0 : index
      %12 = vector.load %arg7[%c0_10, %c0_11] : memref<16x384xf32, #tpu.memory_space<vmem>>, vector<16x384xf32>
      %c0_12 = arith.constant 0 : index
      %c0_13 = arith.constant 0 : index
      %13 = vector.load %arg5[%c0_12, %c0_13] : memref<1x384xf32, #tpu.memory_space<vmem>>, vector<1x384xf32>
      %14 = vector.broadcast %13 : vector<1x384xf32> to vector<16x384xf32>
      %15 = arith.addf %12, %14 : vector<16x384xf32>
      %16 = arith.truncf %15 : vector<16x384xf32> to vector<16x384xbf16>
      %c0_14 = arith.constant 0 : index
      %c0_15 = arith.constant 0 : index
      %17 = vector.load %arg6[%c0_14, %c0_15] : memref<16x384xbf16, #tpu.memory_space<vmem>>, vector<16x384xbf16>
      tpu.vector_store %arg6[%c0_14, %c0_15], %16 {strides = array<i32>} : memref<16x384xbf16, #tpu.memory_space<vmem>>, vector<16x384xbf16>,
    } else {
    }
    return
  }
  func.func @transform_0(%arg0: i32, %arg1: i32, %arg2: i32) -> (i32, i32) {
    %c0_i32 = arith.constant 0 : i32
    return %arg0, %arg2 : i32, i32
  }
  func.func @transform_1(%arg0: i32, %arg1: i32, %arg2: i32) -> (i32, i32) {
    %c0_i32 = arith.constant 0 : i32
    return %arg2, %arg1 : i32, i32
  }
  func.func @transform_2(%arg0: i32, %arg1: i32, %arg2: i32) -> (i32, i32) {
    %c0_i32 = arith.constant 0 : i32
    %c0_i32_0 = arith.constant 0 : i32
    return %c0_i32, %arg1 : i32, i32
  }
  func.func @transform_3(%arg0: i32, %arg1: i32, %arg2: i32) -> (i32, i32) {
    %c0_i32 = arith.constant 0 : i32
    return %arg0, %arg1 : i32, i32
  }
}

module attributes {stable_mosaic.version = 11 : i64} {
  func.func @_linear_res_ln_kernel(%arg0: i32, %arg1: i32, %arg2: memref<16x128xbf16, #tpu.memory_space<vmem>>, %arg3: memref<128x128xbf16, #tpu.memory_space<vmem>>, %arg4: memref<1x128xf32, #tpu.memory_space<vmem>>, %arg5: memref<16x128xf32, #tpu.memory_space<vmem>>, %arg6: memref<1x128xf32, #tpu.memory_space<vmem>>, %arg7: memref<1x128xf32, #tpu.memory_space<vmem>>, %arg8: memref<16x128xf32, #tpu.memory_space<vmem>>, %arg9: memref<16x128xf32, #tpu.memory_space<vmem>>) attributes {dimension_semantics = [#tpu.dimension_semantics<parallel>, #tpu.dimension_semantics<arbitrary>], iteration_bounds = array<i64: 1, 1>, scalar_prefetch = 0 : i64, scratch_operands = 1 : i64, tpu.core_type = #tpu.core_type<tc>, window_params = [{transform_indices = @transform_0, window_bounds = array<i64: 16, 128>}, {transform_indices = @transform_1, window_bounds = array<i64: 128, 128>}, {pipeline_mode = #tpu.pipeline_mode<synchronous>, transform_indices = @transform_2, window_bounds = array<i64: 1, 128>}, {transform_indices = @transform_3, window_bounds = array<i64: 16, 128>}, {pipeline_mode = #tpu.pipeline_mode<synchronous>, transform_indices = @transform_4, window_bounds = array<i64: 1, 128>}, {pipeline_mode = #tpu.pipeline_mode<synchronous>, transform_indices = @transform_5, window_bounds = array<i64: 1, 128>}, {transform_indices = @transform_6, window_bounds = array<i64: 16, 128>}]} {
    %c0_i32 = arith.constant 0 : i32
    %0 = arith.cmpi eq, %arg1, %c0_i32 : i32
    %1 = arith.extui %0 : i1 to i32
    %c0_i32_0 = arith.constant 0 : i32
    %2 = arith.cmpi ne, %1, %c0_i32_0 : i32
    scf.if %2 {
      %cst_10 = arith.constant 0.000000e+00 : f32
      %12 = vector.broadcast %cst_10 : f32 to vector<16x128xf32>
      %c0_11 = arith.constant 0 : index
      %c0_12 = arith.constant 0 : index
      %13 = vector.load %arg9[%c0_11, %c0_12] : memref<16x128xf32, #tpu.memory_space<vmem>>, vector<16x128xf32>
      tpu.vector_store %arg9[%c0_11, %c0_12], %12 {strides = array<i32>} : memref<16x128xf32, #tpu.memory_space<vmem>>, vector<16x128xf32>,
    } else {
    }
    %c0 = arith.constant 0 : index
    %c0_1 = arith.constant 0 : index
    %3 = vector.load %arg9[%c0, %c0_1] : memref<16x128xf32, #tpu.memory_space<vmem>>, vector<16x128xf32>
    %c0_2 = arith.constant 0 : index
    %c0_3 = arith.constant 0 : index
    %4 = vector.load %arg2[%c0_2, %c0_3] : memref<16x128xbf16, #tpu.memory_space<vmem>>, vector<16x128xbf16>
    %c0_4 = arith.constant 0 : index
    %c0_5 = arith.constant 0 : index
    %5 = vector.load %arg3[%c0_4, %c0_5] : memref<128x128xbf16, #tpu.memory_space<vmem>>, vector<128x128xbf16>
    %cst = arith.constant dense<0.000000e+00> : vector<16x128xf32>
    %6 = tpu.matmul %4, %5, %cst {dimension_numbers = #tpu.dot_dimension_numbers<[1], [0], [0], [1], [0, 0, 1, 1], [], []>} : vector<16x128xbf16>, vector<128x128xbf16>, vector<16x128xf32> -> vector<16x128xf32>
    %7 = arith.addf %3, %6 : vector<16x128xf32>
    %c0_6 = arith.constant 0 : index
    %c0_7 = arith.constant 0 : index
    %8 = vector.load %arg9[%c0_6, %c0_7] : memref<16x128xf32, #tpu.memory_space<vmem>>, vector<16x128xf32>
    tpu.vector_store %arg9[%c0_6, %c0_7], %7 {strides = array<i32>} : memref<16x128xf32, #tpu.memory_space<vmem>>, vector<16x128xf32>,
    %c0_i32_8 = arith.constant 0 : i32
    %9 = arith.cmpi eq, %arg1, %c0_i32_8 : i32
    %10 = arith.extui %9 : i1 to i32
    %c0_i32_9 = arith.constant 0 : i32
    %11 = arith.cmpi ne, %10, %c0_i32_9 : i32
    scf.if %11 {
      %c0_10 = arith.constant 0 : index
      %c0_11 = arith.constant 0 : index
      %12 = vector.load %arg9[%c0_10, %c0_11] : memref<16x128xf32, #tpu.memory_space<vmem>>, vector<16x128xf32>
      %c0_12 = arith.constant 0 : index
      %c0_13 = arith.constant 0 : index
      %13 = vector.load %arg4[%c0_12, %c0_13] : memref<1x128xf32, #tpu.memory_space<vmem>>, vector<1x128xf32>
      %14 = vector.broadcast %13 : vector<1x128xf32> to vector<16x128xf32>
      %15 = arith.addf %12, %14 : vector<16x128xf32>
      %c0_14 = arith.constant 0 : index
      %c0_15 = arith.constant 0 : index
      %16 = vector.load %arg5[%c0_14, %c0_15] : memref<16x128xf32, #tpu.memory_space<vmem>>, vector<16x128xf32>
      %17 = arith.addf %15, %16 : vector<16x128xf32>
      %cst_16 = arith.constant dense<0.000000e+00> : vector<16xf32>
      %18 = vector.multi_reduction <add>, %17, %cst_16 [1] : vector<16x128xf32> to vector<16xf32>
      %19 = vector.shape_cast %18 : vector<16xf32> to vector<16x1xf32>
      %cst_17 = arith.constant 1.280000e+02 : f32
      %20 = vector.broadcast %cst_17 : f32 to vector<16x1xf32>
      %21 = arith.divf %19, %20 : vector<16x1xf32>
      %22 = vector.broadcast %21 : vector<16x1xf32> to vector<16x128xf32>
      %23 = arith.subf %17, %22 : vector<16x128xf32>
      %24 = arith.mulf %23, %23 : vector<16x128xf32>
      %cst_18 = arith.constant dense<0.000000e+00> : vector<16xf32>
      %25 = vector.multi_reduction <add>, %24, %cst_18 [1] : vector<16x128xf32> to vector<16xf32>
      %26 = vector.shape_cast %25 : vector<16xf32> to vector<16x1xf32>
      %cst_19 = arith.constant 1.280000e+02 : f32
      %27 = vector.broadcast %cst_19 : f32 to vector<16x1xf32>
      %28 = arith.divf %26, %27 : vector<16x1xf32>
      %29 = vector.broadcast %21 : vector<16x1xf32> to vector<16x128xf32>
      %30 = arith.subf %17, %29 : vector<16x128xf32>
      %cst_20 = arith.constant 9.99999996E-13 : f32
      %31 = vector.broadcast %cst_20 : f32 to vector<16x1xf32>
      %32 = arith.addf %28, %31 : vector<16x1xf32>
      %33 = math.rsqrt %32 : vector<16x1xf32>
      %34 = vector.broadcast %33 : vector<16x1xf32> to vector<16x128xf32>
      %35 = arith.mulf %30, %34 : vector<16x128xf32>
      %c0_21 = arith.constant 0 : index
      %c0_22 = arith.constant 0 : index
      %36 = vector.load %arg6[%c0_21, %c0_22] : memref<1x128xf32, #tpu.memory_space<vmem>>, vector<1x128xf32>
      %37 = vector.broadcast %36 : vector<1x128xf32> to vector<16x128xf32>
      %38 = arith.mulf %35, %37 : vector<16x128xf32>
      %c0_23 = arith.constant 0 : index
      %c0_24 = arith.constant 0 : index
      %39 = vector.load %arg7[%c0_23, %c0_24] : memref<1x128xf32, #tpu.memory_space<vmem>>, vector<1x128xf32>
      %40 = vector.broadcast %39 : vector<1x128xf32> to vector<16x128xf32>
      %41 = arith.addf %38, %40 : vector<16x128xf32>
      %c0_25 = arith.constant 0 : index
      %c0_26 = arith.constant 0 : index
      %42 = vector.load %arg8[%c0_25, %c0_26] : memref<16x128xf32, #tpu.memory_space<vmem>>, vector<16x128xf32>
      tpu.vector_store %arg8[%c0_25, %c0_26], %41 {strides = array<i32>} : memref<16x128xf32, #tpu.memory_space<vmem>>, vector<16x128xf32>,
    } else {
    }
    return
  }
  func.func @transform_0(%arg0: i32, %arg1: i32) -> (i32, i32) {
    %c0_i32 = arith.constant 0 : i32
    return %arg0, %arg1 : i32, i32
  }
  func.func @transform_1(%arg0: i32, %arg1: i32) -> (i32, i32) {
    %c0_i32 = arith.constant 0 : i32
    %c0_i32_0 = arith.constant 0 : i32
    return %arg1, %c0_i32 : i32, i32
  }
  func.func @transform_2(%arg0: i32, %arg1: i32) -> (i32, i32) {
    %c0_i32 = arith.constant 0 : i32
    %c0_i32_0 = arith.constant 0 : i32
    %c0_i32_1 = arith.constant 0 : i32
    return %c0_i32, %c0_i32_0 : i32, i32
  }
  func.func @transform_3(%arg0: i32, %arg1: i32) -> (i32, i32) {
    %c0_i32 = arith.constant 0 : i32
    %c0_i32_0 = arith.constant 0 : i32
    return %arg0, %c0_i32 : i32, i32
  }
  func.func @transform_4(%arg0: i32, %arg1: i32) -> (i32, i32) {
    %c0_i32 = arith.constant 0 : i32
    %c0_i32_0 = arith.constant 0 : i32
    %c0_i32_1 = arith.constant 0 : i32
    return %c0_i32, %c0_i32_0 : i32, i32
  }
  func.func @transform_5(%arg0: i32, %arg1: i32) -> (i32, i32) {
    %c0_i32 = arith.constant 0 : i32
    %c0_i32_0 = arith.constant 0 : i32
    %c0_i32_1 = arith.constant 0 : i32
    return %c0_i32, %c0_i32_0 : i32, i32
  }
  func.func @transform_6(%arg0: i32, %arg1: i32) -> (i32, i32) {
    %c0_i32 = arith.constant 0 : i32
    %c0_i32_0 = arith.constant 0 : i32
    return %arg0, %c0_i32 : i32, i32
  }
}

module attributes {stable_mosaic.version = 11 : i64} {
  func.func @_linear_kernel(%arg0: i32, %arg1: i32, %arg2: i32, %arg3: memref<16x128xbf16, #tpu.memory_space<vmem>>, %arg4: memref<128x256xbf16, #tpu.memory_space<vmem>>, %arg5: memref<1x256xf32, #tpu.memory_space<vmem>>, %arg6: memref<16x256xbf16, #tpu.memory_space<vmem>>, %arg7: memref<16x256xf32, #tpu.memory_space<vmem>>) attributes {dimension_semantics = [#tpu.dimension_semantics<parallel>, #tpu.dimension_semantics<parallel>, #tpu.dimension_semantics<arbitrary>], iteration_bounds = array<i64: 1, 1, 1>, scalar_prefetch = 0 : i64, scratch_operands = 1 : i64, tpu.core_type = #tpu.core_type<tc>, window_params = [{transform_indices = @transform_0, window_bounds = array<i64: 16, 128>}, {transform_indices = @transform_1, window_bounds = array<i64: 128, 256>}, {transform_indices = @transform_2, window_bounds = array<i64: 1, 256>}, {transform_indices = @transform_3, window_bounds = array<i64: 16, 256>}]} {
    %c0_i32 = arith.constant 0 : i32
    %0 = arith.cmpi eq, %arg2, %c0_i32 : i32
    %1 = arith.extui %0 : i1 to i32
    %c0_i32_0 = arith.constant 0 : i32
    %2 = arith.cmpi ne, %1, %c0_i32_0 : i32
    scf.if %2 {
      %cst_10 = arith.constant 0.000000e+00 : f32
      %12 = vector.broadcast %cst_10 : f32 to vector<16x256xf32>
      %c0_11 = arith.constant 0 : index
      %c0_12 = arith.constant 0 : index
      %13 = vector.load %arg7[%c0_11, %c0_12] : memref<16x256xf32, #tpu.memory_space<vmem>>, vector<16x256xf32>
      tpu.vector_store %arg7[%c0_11, %c0_12], %12 {strides = array<i32>} : memref<16x256xf32, #tpu.memory_space<vmem>>, vector<16x256xf32>,
    } else {
    }
    %c0 = arith.constant 0 : index
    %c0_1 = arith.constant 0 : index
    %3 = vector.load %arg7[%c0, %c0_1] : memref<16x256xf32, #tpu.memory_space<vmem>>, vector<16x256xf32>
    %c0_2 = arith.constant 0 : index
    %c0_3 = arith.constant 0 : index
    %4 = vector.load %arg3[%c0_2, %c0_3] : memref<16x128xbf16, #tpu.memory_space<vmem>>, vector<16x128xbf16>
    %c0_4 = arith.constant 0 : index
    %c0_5 = arith.constant 0 : index
    %5 = vector.load %arg4[%c0_4, %c0_5] : memref<128x256xbf16, #tpu.memory_space<vmem>>, vector<128x256xbf16>
    %cst = arith.constant dense<0.000000e+00> : vector<16x256xf32>
    %6 = tpu.matmul %4, %5, %cst {dimension_numbers = #tpu.dot_dimension_numbers<[1], [0], [0], [1], [0, 0, 1, 1], [], []>} : vector<16x128xbf16>, vector<128x256xbf16>, vector<16x256xf32> -> vector<16x256xf32>
    %7 = arith.addf %3, %6 : vector<16x256xf32>
    %c0_6 = arith.constant 0 : index
    %c0_7 = arith.constant 0 : index
    %8 = vector.load %arg7[%c0_6, %c0_7] : memref<16x256xf32, #tpu.memory_space<vmem>>, vector<16x256xf32>
    tpu.vector_store %arg7[%c0_6, %c0_7], %7 {strides = array<i32>} : memref<16x256xf32, #tpu.memory_space<vmem>>, vector<16x256xf32>,
    %c0_i32_8 = arith.constant 0 : i32
    %9 = arith.cmpi eq, %arg2, %c0_i32_8 : i32
    %10 = arith.extui %9 : i1 to i32
    %c0_i32_9 = arith.constant 0 : i32
    %11 = arith.cmpi ne, %10, %c0_i32_9 : i32
    scf.if %11 {
      %c0_10 = arith.constant 0 : index
      %c0_11 = arith.constant 0 : index
      %12 = vector.load %arg7[%c0_10, %c0_11] : memref<16x256xf32, #tpu.memory_space<vmem>>, vector<16x256xf32>
      %c0_12 = arith.constant 0 : index
      %c0_13 = arith.constant 0 : index
      %13 = vector.load %arg5[%c0_12, %c0_13] : memref<1x256xf32, #tpu.memory_space<vmem>>, vector<1x256xf32>
      %14 = vector.broadcast %13 : vector<1x256xf32> to vector<16x256xf32>
      %15 = arith.addf %12, %14 : vector<16x256xf32>
      %16 = arith.mulf %15, %15 : vector<16x256xf32>
      %17 = arith.mulf %15, %16 : vector<16x256xf32>
      %cst_14 = arith.constant 4.471500e-02 : f32
      %18 = vector.broadcast %cst_14 : f32 to vector<16x256xf32>
      %19 = arith.mulf %18, %17 : vector<16x256xf32>
      %20 = arith.addf %15, %19 : vector<16x256xf32>
      %cst_15 = arith.constant 0.797884583 : f32
      %21 = vector.broadcast %cst_15 : f32 to vector<16x256xf32>
      %22 = arith.mulf %21, %20 : vector<16x256xf32>
      %23 = math.tanh %22 : vector<16x256xf32>
      %cst_16 = arith.constant 1.000000e+00 : f32
      %24 = vector.broadcast %cst_16 : f32 to vector<16x256xf32>
      %25 = arith.addf %24, %23 : vector<16x256xf32>
      %cst_17 = arith.constant 5.000000e-01 : f32
      %26 = vector.broadcast %cst_17 : f32 to vector<16x256xf32>
      %27 = arith.mulf %26, %25 : vector<16x256xf32>
      %28 = arith.mulf %15, %27 : vector<16x256xf32>
      %29 = arith.truncf %28 : vector<16x256xf32> to vector<16x256xbf16>
      %c0_18 = arith.constant 0 : index
      %c0_19 = arith.constant 0 : index
      %30 = vector.load %arg6[%c0_18, %c0_19] : memref<16x256xbf16, #tpu.memory_space<vmem>>, vector<16x256xbf16>
      tpu.vector_store %arg6[%c0_18, %c0_19], %29 {strides = array<i32>} : memref<16x256xbf16, #tpu.memory_space<vmem>>, vector<16x256xbf16>,
    } else {
    }
    return
  }
  func.func @transform_0(%arg0: i32, %arg1: i32, %arg2: i32) -> (i32, i32) {
    %c0_i32 = arith.constant 0 : i32
    return %arg0, %arg2 : i32, i32
  }
  func.func @transform_1(%arg0: i32, %arg1: i32, %arg2: i32) -> (i32, i32) {
    %c0_i32 = arith.constant 0 : i32
    return %arg2, %arg1 : i32, i32
  }
  func.func @transform_2(%arg0: i32, %arg1: i32, %arg2: i32) -> (i32, i32) {
    %c0_i32 = arith.constant 0 : i32
    %c0_i32_0 = arith.constant 0 : i32
    return %c0_i32, %arg1 : i32, i32
  }
  func.func @transform_3(%arg0: i32, %arg1: i32, %arg2: i32) -> (i32, i32) {
    %c0_i32 = arith.constant 0 : i32
    return %arg0, %arg1 : i32, i32
  }
}

module attributes {stable_mosaic.version = 11 : i64} {
  func.func @_linear_res_ln_kernel(%arg0: i32, %arg1: i32, %arg2: memref<16x256xbf16, #tpu.memory_space<vmem>>, %arg3: memref<256x128xbf16, #tpu.memory_space<vmem>>, %arg4: memref<1x128xf32, #tpu.memory_space<vmem>>, %arg5: memref<16x128xf32, #tpu.memory_space<vmem>>, %arg6: memref<1x128xf32, #tpu.memory_space<vmem>>, %arg7: memref<1x128xf32, #tpu.memory_space<vmem>>, %arg8: memref<16x128xf32, #tpu.memory_space<vmem>>, %arg9: memref<16x128xf32, #tpu.memory_space<vmem>>) attributes {dimension_semantics = [#tpu.dimension_semantics<parallel>, #tpu.dimension_semantics<arbitrary>], iteration_bounds = array<i64: 1, 1>, scalar_prefetch = 0 : i64, scratch_operands = 1 : i64, tpu.core_type = #tpu.core_type<tc>, window_params = [{transform_indices = @transform_0, window_bounds = array<i64: 16, 256>}, {transform_indices = @transform_1, window_bounds = array<i64: 256, 128>}, {pipeline_mode = #tpu.pipeline_mode<synchronous>, transform_indices = @transform_2, window_bounds = array<i64: 1, 128>}, {transform_indices = @transform_3, window_bounds = array<i64: 16, 128>}, {pipeline_mode = #tpu.pipeline_mode<synchronous>, transform_indices = @transform_4, window_bounds = array<i64: 1, 128>}, {pipeline_mode = #tpu.pipeline_mode<synchronous>, transform_indices = @transform_5, window_bounds = array<i64: 1, 128>}, {transform_indices = @transform_6, window_bounds = array<i64: 16, 128>}]} {
    %c0_i32 = arith.constant 0 : i32
    %0 = arith.cmpi eq, %arg1, %c0_i32 : i32
    %1 = arith.extui %0 : i1 to i32
    %c0_i32_0 = arith.constant 0 : i32
    %2 = arith.cmpi ne, %1, %c0_i32_0 : i32
    scf.if %2 {
      %cst_10 = arith.constant 0.000000e+00 : f32
      %12 = vector.broadcast %cst_10 : f32 to vector<16x128xf32>
      %c0_11 = arith.constant 0 : index
      %c0_12 = arith.constant 0 : index
      %13 = vector.load %arg9[%c0_11, %c0_12] : memref<16x128xf32, #tpu.memory_space<vmem>>, vector<16x128xf32>
      tpu.vector_store %arg9[%c0_11, %c0_12], %12 {strides = array<i32>} : memref<16x128xf32, #tpu.memory_space<vmem>>, vector<16x128xf32>,
    } else {
    }
    %c0 = arith.constant 0 : index
    %c0_1 = arith.constant 0 : index
    %3 = vector.load %arg9[%c0, %c0_1] : memref<16x128xf32, #tpu.memory_space<vmem>>, vector<16x128xf32>
    %c0_2 = arith.constant 0 : index
    %c0_3 = arith.constant 0 : index
    %4 = vector.load %arg2[%c0_2, %c0_3] : memref<16x256xbf16, #tpu.memory_space<vmem>>, vector<16x256xbf16>
    %c0_4 = arith.constant 0 : index
    %c0_5 = arith.constant 0 : index
    %5 = vector.load %arg3[%c0_4, %c0_5] : memref<256x128xbf16, #tpu.memory_space<vmem>>, vector<256x128xbf16>
    %cst = arith.constant dense<0.000000e+00> : vector<16x128xf32>
    %6 = tpu.matmul %4, %5, %cst {dimension_numbers = #tpu.dot_dimension_numbers<[1], [0], [0], [1], [0, 0, 1, 1], [], []>} : vector<16x256xbf16>, vector<256x128xbf16>, vector<16x128xf32> -> vector<16x128xf32>
    %7 = arith.addf %3, %6 : vector<16x128xf32>
    %c0_6 = arith.constant 0 : index
    %c0_7 = arith.constant 0 : index
    %8 = vector.load %arg9[%c0_6, %c0_7] : memref<16x128xf32, #tpu.memory_space<vmem>>, vector<16x128xf32>
    tpu.vector_store %arg9[%c0_6, %c0_7], %7 {strides = array<i32>} : memref<16x128xf32, #tpu.memory_space<vmem>>, vector<16x128xf32>,
    %c0_i32_8 = arith.constant 0 : i32
    %9 = arith.cmpi eq, %arg1, %c0_i32_8 : i32
    %10 = arith.extui %9 : i1 to i32
    %c0_i32_9 = arith.constant 0 : i32
    %11 = arith.cmpi ne, %10, %c0_i32_9 : i32
    scf.if %11 {
      %c0_10 = arith.constant 0 : index
      %c0_11 = arith.constant 0 : index
      %12 = vector.load %arg9[%c0_10, %c0_11] : memref<16x128xf32, #tpu.memory_space<vmem>>, vector<16x128xf32>
      %c0_12 = arith.constant 0 : index
      %c0_13 = arith.constant 0 : index
      %13 = vector.load %arg4[%c0_12, %c0_13] : memref<1x128xf32, #tpu.memory_space<vmem>>, vector<1x128xf32>
      %14 = vector.broadcast %13 : vector<1x128xf32> to vector<16x128xf32>
      %15 = arith.addf %12, %14 : vector<16x128xf32>
      %c0_14 = arith.constant 0 : index
      %c0_15 = arith.constant 0 : index
      %16 = vector.load %arg5[%c0_14, %c0_15] : memref<16x128xf32, #tpu.memory_space<vmem>>, vector<16x128xf32>
      %17 = arith.addf %15, %16 : vector<16x128xf32>
      %cst_16 = arith.constant dense<0.000000e+00> : vector<16xf32>
      %18 = vector.multi_reduction <add>, %17, %cst_16 [1] : vector<16x128xf32> to vector<16xf32>
      %19 = vector.shape_cast %18 : vector<16xf32> to vector<16x1xf32>
      %cst_17 = arith.constant 1.280000e+02 : f32
      %20 = vector.broadcast %cst_17 : f32 to vector<16x1xf32>
      %21 = arith.divf %19, %20 : vector<16x1xf32>
      %22 = vector.broadcast %21 : vector<16x1xf32> to vector<16x128xf32>
      %23 = arith.subf %17, %22 : vector<16x128xf32>
      %24 = arith.mulf %23, %23 : vector<16x128xf32>
      %cst_18 = arith.constant dense<0.000000e+00> : vector<16xf32>
      %25 = vector.multi_reduction <add>, %24, %cst_18 [1] : vector<16x128xf32> to vector<16xf32>
      %26 = vector.shape_cast %25 : vector<16xf32> to vector<16x1xf32>
      %cst_19 = arith.constant 1.280000e+02 : f32
      %27 = vector.broadcast %cst_19 : f32 to vector<16x1xf32>
      %28 = arith.divf %26, %27 : vector<16x1xf32>
      %29 = vector.broadcast %21 : vector<16x1xf32> to vector<16x128xf32>
      %30 = arith.subf %17, %29 : vector<16x128xf32>
      %cst_20 = arith.constant 9.99999996E-13 : f32
      %31 = vector.broadcast %cst_20 : f32 to vector<16x1xf32>
      %32 = arith.addf %28, %31 : vector<16x1xf32>
      %33 = math.rsqrt %32 : vector<16x1xf32>
      %34 = vector.broadcast %33 : vector<16x1xf32> to vector<16x128xf32>
      %35 = arith.mulf %30, %34 : vector<16x128xf32>
      %c0_21 = arith.constant 0 : index
      %c0_22 = arith.constant 0 : index
      %36 = vector.load %arg6[%c0_21, %c0_22] : memref<1x128xf32, #tpu.memory_space<vmem>>, vector<1x128xf32>
      %37 = vector.broadcast %36 : vector<1x128xf32> to vector<16x128xf32>
      %38 = arith.mulf %35, %37 : vector<16x128xf32>
      %c0_23 = arith.constant 0 : index
      %c0_24 = arith.constant 0 : index
      %39 = vector.load %arg7[%c0_23, %c0_24] : memref<1x128xf32, #tpu.memory_space<vmem>>, vector<1x128xf32>
      %40 = vector.broadcast %39 : vector<1x128xf32> to vector<16x128xf32>
      %41 = arith.addf %38, %40 : vector<16x128xf32>
      %c0_25 = arith.constant 0 : index
      %c0_26 = arith.constant 0 : index
      %42 = vector.load %arg8[%c0_25, %c0_26] : memref<16x128xf32, #tpu.memory_space<vmem>>, vector<16x128xf32>
      tpu.vector_store %arg8[%c0_25, %c0_26], %41 {strides = array<i32>} : memref<16x128xf32, #tpu.memory_space<vmem>>, vector<16x128xf32>,
    } else {
    }
    return
  }
  func.func @transform_0(%arg0: i32, %arg1: i32) -> (i32, i32) {
    %c0_i32 = arith.constant 0 : i32
    return %arg0, %arg1 : i32, i32
  }
  func.func @transform_1(%arg0: i32, %arg1: i32) -> (i32, i32) {
    %c0_i32 = arith.constant 0 : i32
    %c0_i32_0 = arith.constant 0 : i32
    return %arg1, %c0_i32 : i32, i32
  }
  func.func @transform_2(%arg0: i32, %arg1: i32) -> (i32, i32) {
    %c0_i32 = arith.constant 0 : i32
    %c0_i32_0 = arith.constant 0 : i32
    %c0_i32_1 = arith.constant 0 : i32
    return %c0_i32, %c0_i32_0 : i32, i32
  }
  func.func @transform_3(%arg0: i32, %arg1: i32) -> (i32, i32) {
    %c0_i32 = arith.constant 0 : i32
    %c0_i32_0 = arith.constant 0 : i32
    return %arg0, %c0_i32 : i32, i32
  }
  func.func @transform_4(%arg0: i32, %arg1: i32) -> (i32, i32) {
    %c0_i32 = arith.constant 0 : i32
    %c0_i32_0 = arith.constant 0 : i32
    %c0_i32_1 = arith.constant 0 : i32
    return %c0_i32, %c0_i32_0 : i32, i32
  }
  func.func @transform_5(%arg0: i32, %arg1: i32) -> (i32, i32) {
    %c0_i32 = arith.constant 0 : i32
    %c0_i32_0 = arith.constant 0 : i32
    %c0_i32_1 = arith.constant 0 : i32
    return %c0_i32, %c0_i32_0 : i32, i32
  }
  func.func @transform_6(%arg0: i32, %arg1: i32) -> (i32, i32) {
    %c0_i32 = arith.constant 0 : i32
    %c0_i32_0 = arith.constant 0 : i32
    return %arg0, %c0_i32 : i32, i32
  }
}

module attributes {stable_mosaic.version = 11 : i64} {
  func.func @_linear_kernel(%arg0: i32, %arg1: i32, %arg2: i32, %arg3: memref<16x128xbf16, #tpu.memory_space<vmem>>, %arg4: memref<128x512xbf16, #tpu.memory_space<vmem>>, %arg5: memref<1x512xf32, #tpu.memory_space<vmem>>, %arg6: memref<16x512xf32, #tpu.memory_space<vmem>>, %arg7: memref<16x512xf32, #tpu.memory_space<vmem>>) attributes {dimension_semantics = [#tpu.dimension_semantics<parallel>, #tpu.dimension_semantics<parallel>, #tpu.dimension_semantics<arbitrary>], iteration_bounds = array<i64: 1, 1, 1>, scalar_prefetch = 0 : i64, scratch_operands = 1 : i64, tpu.core_type = #tpu.core_type<tc>, window_params = [{transform_indices = @transform_0, window_bounds = array<i64: 16, 128>}, {transform_indices = @transform_1, window_bounds = array<i64: 128, 512>}, {transform_indices = @transform_2, window_bounds = array<i64: 1, 512>}, {transform_indices = @transform_3, window_bounds = array<i64: 16, 512>}]} {
    %c0_i32 = arith.constant 0 : i32
    %0 = arith.cmpi eq, %arg2, %c0_i32 : i32
    %1 = arith.extui %0 : i1 to i32
    %c0_i32_0 = arith.constant 0 : i32
    %2 = arith.cmpi ne, %1, %c0_i32_0 : i32
    scf.if %2 {
      %cst_10 = arith.constant 0.000000e+00 : f32
      %12 = vector.broadcast %cst_10 : f32 to vector<16x512xf32>
      %c0_11 = arith.constant 0 : index
      %c0_12 = arith.constant 0 : index
      %13 = vector.load %arg7[%c0_11, %c0_12] : memref<16x512xf32, #tpu.memory_space<vmem>>, vector<16x512xf32>
      tpu.vector_store %arg7[%c0_11, %c0_12], %12 {strides = array<i32>} : memref<16x512xf32, #tpu.memory_space<vmem>>, vector<16x512xf32>,
    } else {
    }
    %c0 = arith.constant 0 : index
    %c0_1 = arith.constant 0 : index
    %3 = vector.load %arg7[%c0, %c0_1] : memref<16x512xf32, #tpu.memory_space<vmem>>, vector<16x512xf32>
    %c0_2 = arith.constant 0 : index
    %c0_3 = arith.constant 0 : index
    %4 = vector.load %arg3[%c0_2, %c0_3] : memref<16x128xbf16, #tpu.memory_space<vmem>>, vector<16x128xbf16>
    %c0_4 = arith.constant 0 : index
    %c0_5 = arith.constant 0 : index
    %5 = vector.load %arg4[%c0_4, %c0_5] : memref<128x512xbf16, #tpu.memory_space<vmem>>, vector<128x512xbf16>
    %cst = arith.constant dense<0.000000e+00> : vector<16x512xf32>
    %6 = tpu.matmul %4, %5, %cst {dimension_numbers = #tpu.dot_dimension_numbers<[1], [0], [0], [1], [0, 0, 1, 1], [], []>} : vector<16x128xbf16>, vector<128x512xbf16>, vector<16x512xf32> -> vector<16x512xf32>
    %7 = arith.addf %3, %6 : vector<16x512xf32>
    %c0_6 = arith.constant 0 : index
    %c0_7 = arith.constant 0 : index
    %8 = vector.load %arg7[%c0_6, %c0_7] : memref<16x512xf32, #tpu.memory_space<vmem>>, vector<16x512xf32>
    tpu.vector_store %arg7[%c0_6, %c0_7], %7 {strides = array<i32>} : memref<16x512xf32, #tpu.memory_space<vmem>>, vector<16x512xf32>,
    %c0_i32_8 = arith.constant 0 : i32
    %9 = arith.cmpi eq, %arg2, %c0_i32_8 : i32
    %10 = arith.extui %9 : i1 to i32
    %c0_i32_9 = arith.constant 0 : i32
    %11 = arith.cmpi ne, %10, %c0_i32_9 : i32
    scf.if %11 {
      %c0_10 = arith.constant 0 : index
      %c0_11 = arith.constant 0 : index
      %12 = vector.load %arg7[%c0_10, %c0_11] : memref<16x512xf32, #tpu.memory_space<vmem>>, vector<16x512xf32>
      %c0_12 = arith.constant 0 : index
      %c0_13 = arith.constant 0 : index
      %13 = vector.load %arg5[%c0_12, %c0_13] : memref<1x512xf32, #tpu.memory_space<vmem>>, vector<1x512xf32>
      %14 = vector.broadcast %13 : vector<1x512xf32> to vector<16x512xf32>
      %15 = arith.addf %12, %14 : vector<16x512xf32>
      %c0_14 = arith.constant 0 : index
      %c0_15 = arith.constant 0 : index
      %16 = vector.load %arg6[%c0_14, %c0_15] : memref<16x512xf32, #tpu.memory_space<vmem>>, vector<16x512xf32>
      tpu.vector_store %arg6[%c0_14, %c0_15], %15 {strides = array<i32>} : memref<16x512xf32, #tpu.memory_space<vmem>>, vector<16x512xf32>,
    } else {
    }
    return
  }
  func.func @transform_0(%arg0: i32, %arg1: i32, %arg2: i32) -> (i32, i32) {
    %c0_i32 = arith.constant 0 : i32
    return %arg0, %arg2 : i32, i32
  }
  func.func @transform_1(%arg0: i32, %arg1: i32, %arg2: i32) -> (i32, i32) {
    %c0_i32 = arith.constant 0 : i32
    return %arg2, %arg1 : i32, i32
  }
  func.func @transform_2(%arg0: i32, %arg1: i32, %arg2: i32) -> (i32, i32) {
    %c0_i32 = arith.constant 0 : i32
    %c0_i32_0 = arith.constant 0 : i32
    return %c0_i32, %arg1 : i32, i32
  }
  func.func @transform_3(%arg0: i32, %arg1: i32, %arg2: i32) -> (i32, i32) {
    %c0_i32 = arith.constant 0 : i32
    return %arg0, %arg1 : i32, i32
  }
}

module attributes {stable_mosaic.version = 11 : i64} {
  func.func @_lstm_kernel(%arg0: i32, %arg1: i32, %arg2: memref<8x2x256xf32, #tpu.memory_space<vmem>>, %arg3: memref<1x64x256xbf16, #tpu.memory_space<vmem>>, %arg4: memref<1x8x2x64xf32, #tpu.memory_space<vmem>>, %arg5: memref<2x64xf32, #tpu.memory_space<vmem>>, %arg6: memref<2x64xf32, #tpu.memory_space<vmem>>) attributes {dimension_semantics = [#tpu.dimension_semantics<parallel>, #tpu.dimension_semantics<arbitrary>], iteration_bounds = array<i64: 2, 1>, scalar_prefetch = 0 : i64, scratch_operands = 2 : i64, tpu.core_type = #tpu.core_type<tc>, window_params = [{transform_indices = @transform_0, window_bounds = array<i64: 8, 2, 256>}, {transform_indices = @transform_1, window_bounds = array<i64: 1, 64, 256>}, {transform_indices = @transform_2, window_bounds = array<i64: 1, 8, 2, 64>}]} {
    %c0_i32 = arith.constant 0 : i32
    %0 = arith.cmpi eq, %arg1, %c0_i32 : i32
    %1 = arith.extui %0 : i1 to i32
    %c0_i32_0 = arith.constant 0 : i32
    %2 = arith.cmpi ne, %1, %c0_i32_0 : i32
    scf.if %2 {
      %cst_163 = arith.constant 0.000000e+00 : f32
      %357 = vector.broadcast %cst_163 : f32 to vector<2x64xf32>
      %c0_164 = arith.constant 0 : index
      %c0_165 = arith.constant 0 : index
      %358 = vector.load %arg5[%c0_164, %c0_165] : memref<2x64xf32, #tpu.memory_space<vmem>>, vector<2x64xf32>
      tpu.vector_store %arg5[%c0_164, %c0_165], %357 {strides = array<i32>} : memref<2x64xf32, #tpu.memory_space<vmem>>, vector<2x64xf32>,
      %cst_166 = arith.constant 0.000000e+00 : f32
      %359 = vector.broadcast %cst_166 : f32 to vector<2x64xf32>
      %c0_167 = arith.constant 0 : index
      %c0_168 = arith.constant 0 : index
      %360 = vector.load %arg6[%c0_167, %c0_168] : memref<2x64xf32, #tpu.memory_space<vmem>>, vector<2x64xf32>
      tpu.vector_store %arg6[%c0_167, %c0_168], %359 {strides = array<i32>} : memref<2x64xf32, #tpu.memory_space<vmem>>, vector<2x64xf32>,
    } else {
    }
    %c0 = arith.constant 0 : index
    %c0_1 = arith.constant 0 : index
    %c0_2 = arith.constant 0 : index
    %3 = vector.load %arg3[%c0, %c0_1, %c0_2] : memref<1x64x256xbf16, #tpu.memory_space<vmem>>, vector<1x64x256xbf16>
    %4 = vector.shape_cast %3 : vector<1x64x256xbf16> to vector<64x256xbf16>
    %c7_i32 = arith.constant 7 : i32
    %5 = arith.muli %arg0, %c7_i32 : i32
    %c2_i32 = arith.constant 2 : i32
    %6 = arith.muli %c2_i32, %arg0 : i32
    %c1_i32 = arith.constant 1 : i32
    %7 = arith.subi %c1_i32, %6 : i32
    %c0_i32_3 = arith.constant 0 : i32
    %8 = arith.muli %7, %c0_i32_3 : i32
    %9 = arith.addi %5, %8 : i32
    %10 = arith.index_cast %9 : i32 to index
    %c0_4 = arith.constant 0 : index
    %c0_5 = arith.constant 0 : index
    %11 = vector.load %arg2[%10, %c0_4, %c0_5] : memref<8x2x256xf32, #tpu.memory_space<vmem>>, vector<1x2x256xf32>
    %12 = vector.shape_cast %11 : vector<1x2x256xf32> to vector<2x256xf32>
    %c0_6 = arith.constant 0 : index
    %c0_7 = arith.constant 0 : index
    %13 = vector.load %arg5[%c0_6, %c0_7] : memref<2x64xf32, #tpu.memory_space<vmem>>, vector<2x64xf32>
    %14 = arith.truncf %13 : vector<2x64xf32> to vector<2x64xbf16>
    %cst = arith.constant dense<0.000000e+00> : vector<2x256xf32>
    %15 = tpu.matmul %14, %4, %cst {dimension_numbers = #tpu.dot_dimension_numbers<[1], [0], [0], [1], [0, 0, 1, 1], [], []>} : vector<2x64xbf16>, vector<64x256xbf16>, vector<2x256xf32> -> vector<2x256xf32>
    %16 = arith.addf %12, %15 : vector<2x256xf32>
    %17 = vector.extract_strided_slice %16 {offsets = [0, 0], sizes = [2, 64], strides = [1, 1]} : vector<2x256xf32> to vector<2x64xf32>
    %18 = arith.negf %17 : vector<2x64xf32>
    %19 = math.exp %18 : vector<2x64xf32>
    %cst_8 = arith.constant 1.000000e+00 : f32
    %20 = vector.broadcast %cst_8 : f32 to vector<2x64xf32>
    %21 = arith.addf %20, %19 : vector<2x64xf32>
    %22 = arith.divf %20, %21 : vector<2x64xf32>
    %23 = vector.extract_strided_slice %16 {offsets = [0, 64], sizes = [2, 64], strides = [1, 1]} : vector<2x256xf32> to vector<2x64xf32>
    %24 = arith.negf %23 : vector<2x64xf32>
    %25 = math.exp %24 : vector<2x64xf32>
    %cst_9 = arith.constant 1.000000e+00 : f32
    %26 = vector.broadcast %cst_9 : f32 to vector<2x64xf32>
    %27 = arith.addf %26, %25 : vector<2x64xf32>
    %28 = arith.divf %26, %27 : vector<2x64xf32>
    %29 = vector.extract_strided_slice %16 {offsets = [0, 128], sizes = [2, 64], strides = [1, 1]} : vector<2x256xf32> to vector<2x64xf32>
    %30 = math.tanh %29 : vector<2x64xf32>
    %31 = vector.extract_strided_slice %16 {offsets = [0, 192], sizes = [2, 64], strides = [1, 1]} : vector<2x256xf32> to vector<2x64xf32>
    %32 = arith.negf %31 : vector<2x64xf32>
    %33 = math.exp %32 : vector<2x64xf32>
    %cst_10 = arith.constant 1.000000e+00 : f32
    %34 = vector.broadcast %cst_10 : f32 to vector<2x64xf32>
    %35 = arith.addf %34, %33 : vector<2x64xf32>
    %36 = arith.divf %34, %35 : vector<2x64xf32>
    %c0_11 = arith.constant 0 : index
    %c0_12 = arith.constant 0 : index
    %37 = vector.load %arg6[%c0_11, %c0_12] : memref<2x64xf32, #tpu.memory_space<vmem>>, vector<2x64xf32>
    %38 = arith.mulf %28, %37 : vector<2x64xf32>
    %39 = arith.mulf %22, %30 : vector<2x64xf32>
    %40 = arith.addf %38, %39 : vector<2x64xf32>
    %41 = math.tanh %40 : vector<2x64xf32>
    %42 = arith.mulf %36, %41 : vector<2x64xf32>
    %c0_13 = arith.constant 0 : index
    %c0_14 = arith.constant 0 : index
    %43 = vector.load %arg6[%c0_13, %c0_14] : memref<2x64xf32, #tpu.memory_space<vmem>>, vector<2x64xf32>
    tpu.vector_store %arg6[%c0_13, %c0_14], %40 {strides = array<i32>} : memref<2x64xf32, #tpu.memory_space<vmem>>, vector<2x64xf32>,
    %c0_15 = arith.constant 0 : index
    %c0_16 = arith.constant 0 : index
    %44 = vector.load %arg5[%c0_15, %c0_16] : memref<2x64xf32, #tpu.memory_space<vmem>>, vector<2x64xf32>
    tpu.vector_store %arg5[%c0_15, %c0_16], %42 {strides = array<i32>} : memref<2x64xf32, #tpu.memory_space<vmem>>, vector<2x64xf32>,
    %c0_17 = arith.constant 0 : index
    %45 = arith.index_cast %9 : i32 to index
    %c0_18 = arith.constant 0 : index
    %c0_19 = arith.constant 0 : index
    %46 = vector.load %arg4[%c0_17, %45, %c0_18, %c0_19] : memref<1x8x2x64xf32, #tpu.memory_space<vmem>>, vector<1x1x2x64xf32>
    %47 = vector.shape_cast %46 : vector<1x1x2x64xf32> to vector<2x64xf32>
    %48 = vector.shape_cast %42 : vector<2x64xf32> to vector<1x1x2x64xf32>
    tpu.vector_store %arg4[%c0_17, %45, %c0_18, %c0_19], %48 {strides = array<i32>} : memref<1x8x2x64xf32, #tpu.memory_space<vmem>>, vector<1x1x2x64xf32>,
    %c7_i32_20 = arith.constant 7 : i32
    %49 = arith.muli %arg0, %c7_i32_20 : i32
    %c2_i32_21 = arith.constant 2 : i32
    %50 = arith.muli %c2_i32_21, %arg0 : i32
    %c1_i32_22 = arith.constant 1 : i32
    %51 = arith.subi %c1_i32_22, %50 : i32
    %c1_i32_23 = arith.constant 1 : i32
    %52 = arith.muli %51, %c1_i32_23 : i32
    %53 = arith.addi %49, %52 : i32
    %54 = arith.index_cast %53 : i32 to index
    %c0_24 = arith.constant 0 : index
    %c0_25 = arith.constant 0 : index
    %55 = vector.load %arg2[%54, %c0_24, %c0_25] : memref<8x2x256xf32, #tpu.memory_space<vmem>>, vector<1x2x256xf32>
    %56 = vector.shape_cast %55 : vector<1x2x256xf32> to vector<2x256xf32>
    %c0_26 = arith.constant 0 : index
    %c0_27 = arith.constant 0 : index
    %57 = vector.load %arg5[%c0_26, %c0_27] : memref<2x64xf32, #tpu.memory_space<vmem>>, vector<2x64xf32>
    %58 = arith.truncf %57 : vector<2x64xf32> to vector<2x64xbf16>
    %cst_28 = arith.constant dense<0.000000e+00> : vector<2x256xf32>
    %59 = tpu.matmul %58, %4, %cst_28 {dimension_numbers = #tpu.dot_dimension_numbers<[1], [0], [0], [1], [0, 0, 1, 1], [], []>} : vector<2x64xbf16>, vector<64x256xbf16>, vector<2x256xf32> -> vector<2x256xf32>
    %60 = arith.addf %56, %59 : vector<2x256xf32>
    %61 = vector.extract_strided_slice %60 {offsets = [0, 0], sizes = [2, 64], strides = [1, 1]} : vector<2x256xf32> to vector<2x64xf32>
    %62 = arith.negf %61 : vector<2x64xf32>
    %63 = math.exp %62 : vector<2x64xf32>
    %cst_29 = arith.constant 1.000000e+00 : f32
    %64 = vector.broadcast %cst_29 : f32 to vector<2x64xf32>
    %65 = arith.addf %64, %63 : vector<2x64xf32>
    %66 = arith.divf %64, %65 : vector<2x64xf32>
    %67 = vector.extract_strided_slice %60 {offsets = [0, 64], sizes = [2, 64], strides = [1, 1]} : vector<2x256xf32> to vector<2x64xf32>
    %68 = arith.negf %67 : vector<2x64xf32>
    %69 = math.exp %68 : vector<2x64xf32>
    %cst_30 = arith.constant 1.000000e+00 : f32
    %70 = vector.broadcast %cst_30 : f32 to vector<2x64xf32>
    %71 = arith.addf %70, %69 : vector<2x64xf32>
    %72 = arith.divf %70, %71 : vector<2x64xf32>
    %73 = vector.extract_strided_slice %60 {offsets = [0, 128], sizes = [2, 64], strides = [1, 1]} : vector<2x256xf32> to vector<2x64xf32>
    %74 = math.tanh %73 : vector<2x64xf32>
    %75 = vector.extract_strided_slice %60 {offsets = [0, 192], sizes = [2, 64], strides = [1, 1]} : vector<2x256xf32> to vector<2x64xf32>
    %76 = arith.negf %75 : vector<2x64xf32>
    %77 = math.exp %76 : vector<2x64xf32>
    %cst_31 = arith.constant 1.000000e+00 : f32
    %78 = vector.broadcast %cst_31 : f32 to vector<2x64xf32>
    %79 = arith.addf %78, %77 : vector<2x64xf32>
    %80 = arith.divf %78, %79 : vector<2x64xf32>
    %c0_32 = arith.constant 0 : index
    %c0_33 = arith.constant 0 : index
    %81 = vector.load %arg6[%c0_32, %c0_33] : memref<2x64xf32, #tpu.memory_space<vmem>>, vector<2x64xf32>
    %82 = arith.mulf %72, %81 : vector<2x64xf32>
    %83 = arith.mulf %66, %74 : vector<2x64xf32>
    %84 = arith.addf %82, %83 : vector<2x64xf32>
    %85 = math.tanh %84 : vector<2x64xf32>
    %86 = arith.mulf %80, %85 : vector<2x64xf32>
    %c0_34 = arith.constant 0 : index
    %c0_35 = arith.constant 0 : index
    %87 = vector.load %arg6[%c0_34, %c0_35] : memref<2x64xf32, #tpu.memory_space<vmem>>, vector<2x64xf32>
    tpu.vector_store %arg6[%c0_34, %c0_35], %84 {strides = array<i32>} : memref<2x64xf32, #tpu.memory_space<vmem>>, vector<2x64xf32>,
    %c0_36 = arith.constant 0 : index
    %c0_37 = arith.constant 0 : index
    %88 = vector.load %arg5[%c0_36, %c0_37] : memref<2x64xf32, #tpu.memory_space<vmem>>, vector<2x64xf32>
    tpu.vector_store %arg5[%c0_36, %c0_37], %86 {strides = array<i32>} : memref<2x64xf32, #tpu.memory_space<vmem>>, vector<2x64xf32>,
    %c0_38 = arith.constant 0 : index
    %89 = arith.index_cast %53 : i32 to index
    %c0_39 = arith.constant 0 : index
    %c0_40 = arith.constant 0 : index
    %90 = vector.load %arg4[%c0_38, %89, %c0_39, %c0_40] : memref<1x8x2x64xf32, #tpu.memory_space<vmem>>, vector<1x1x2x64xf32>
    %91 = vector.shape_cast %90 : vector<1x1x2x64xf32> to vector<2x64xf32>
    %92 = vector.shape_cast %86 : vector<2x64xf32> to vector<1x1x2x64xf32>
    tpu.vector_store %arg4[%c0_38, %89, %c0_39, %c0_40], %92 {strides = array<i32>} : memref<1x8x2x64xf32, #tpu.memory_space<vmem>>, vector<1x1x2x64xf32>,
    %c7_i32_41 = arith.constant 7 : i32
    %93 = arith.muli %arg0, %c7_i32_41 : i32
    %c2_i32_42 = arith.constant 2 : i32
    %94 = arith.muli %c2_i32_42, %arg0 : i32
    %c1_i32_43 = arith.constant 1 : i32
    %95 = arith.subi %c1_i32_43, %94 : i32
    %c2_i32_44 = arith.constant 2 : i32
    %96 = arith.muli %95, %c2_i32_44 : i32
    %97 = arith.addi %93, %96 : i32
    %98 = arith.index_cast %97 : i32 to index
    %c0_45 = arith.constant 0 : index
    %c0_46 = arith.constant 0 : index
    %99 = vector.load %arg2[%98, %c0_45, %c0_46] : memref<8x2x256xf32, #tpu.memory_space<vmem>>, vector<1x2x256xf32>
    %100 = vector.shape_cast %99 : vector<1x2x256xf32> to vector<2x256xf32>
    %c0_47 = arith.constant 0 : index
    %c0_48 = arith.constant 0 : index
    %101 = vector.load %arg5[%c0_47, %c0_48] : memref<2x64xf32, #tpu.memory_space<vmem>>, vector<2x64xf32>
    %102 = arith.truncf %101 : vector<2x64xf32> to vector<2x64xbf16>
    %cst_49 = arith.constant dense<0.000000e+00> : vector<2x256xf32>
    %103 = tpu.matmul %102, %4, %cst_49 {dimension_numbers = #tpu.dot_dimension_numbers<[1], [0], [0], [1], [0, 0, 1, 1], [], []>} : vector<2x64xbf16>, vector<64x256xbf16>, vector<2x256xf32> -> vector<2x256xf32>
    %104 = arith.addf %100, %103 : vector<2x256xf32>
    %105 = vector.extract_strided_slice %104 {offsets = [0, 0], sizes = [2, 64], strides = [1, 1]} : vector<2x256xf32> to vector<2x64xf32>
    %106 = arith.negf %105 : vector<2x64xf32>
    %107 = math.exp %106 : vector<2x64xf32>
    %cst_50 = arith.constant 1.000000e+00 : f32
    %108 = vector.broadcast %cst_50 : f32 to vector<2x64xf32>
    %109 = arith.addf %108, %107 : vector<2x64xf32>
    %110 = arith.divf %108, %109 : vector<2x64xf32>
    %111 = vector.extract_strided_slice %104 {offsets = [0, 64], sizes = [2, 64], strides = [1, 1]} : vector<2x256xf32> to vector<2x64xf32>
    %112 = arith.negf %111 : vector<2x64xf32>
    %113 = math.exp %112 : vector<2x64xf32>
    %cst_51 = arith.constant 1.000000e+00 : f32
    %114 = vector.broadcast %cst_51 : f32 to vector<2x64xf32>
    %115 = arith.addf %114, %113 : vector<2x64xf32>
    %116 = arith.divf %114, %115 : vector<2x64xf32>
    %117 = vector.extract_strided_slice %104 {offsets = [0, 128], sizes = [2, 64], strides = [1, 1]} : vector<2x256xf32> to vector<2x64xf32>
    %118 = math.tanh %117 : vector<2x64xf32>
    %119 = vector.extract_strided_slice %104 {offsets = [0, 192], sizes = [2, 64], strides = [1, 1]} : vector<2x256xf32> to vector<2x64xf32>
    %120 = arith.negf %119 : vector<2x64xf32>
    %121 = math.exp %120 : vector<2x64xf32>
    %cst_52 = arith.constant 1.000000e+00 : f32
    %122 = vector.broadcast %cst_52 : f32 to vector<2x64xf32>
    %123 = arith.addf %122, %121 : vector<2x64xf32>
    %124 = arith.divf %122, %123 : vector<2x64xf32>
    %c0_53 = arith.constant 0 : index
    %c0_54 = arith.constant 0 : index
    %125 = vector.load %arg6[%c0_53, %c0_54] : memref<2x64xf32, #tpu.memory_space<vmem>>, vector<2x64xf32>
    %126 = arith.mulf %116, %125 : vector<2x64xf32>
    %127 = arith.mulf %110, %118 : vector<2x64xf32>
    %128 = arith.addf %126, %127 : vector<2x64xf32>
    %129 = math.tanh %128 : vector<2x64xf32>
    %130 = arith.mulf %124, %129 : vector<2x64xf32>
    %c0_55 = arith.constant 0 : index
    %c0_56 = arith.constant 0 : index
    %131 = vector.load %arg6[%c0_55, %c0_56] : memref<2x64xf32, #tpu.memory_space<vmem>>, vector<2x64xf32>
    tpu.vector_store %arg6[%c0_55, %c0_56], %128 {strides = array<i32>} : memref<2x64xf32, #tpu.memory_space<vmem>>, vector<2x64xf32>,
    %c0_57 = arith.constant 0 : index
    %c0_58 = arith.constant 0 : index
    %132 = vector.load %arg5[%c0_57, %c0_58] : memref<2x64xf32, #tpu.memory_space<vmem>>, vector<2x64xf32>
    tpu.vector_store %arg5[%c0_57, %c0_58], %130 {strides = array<i32>} : memref<2x64xf32, #tpu.memory_space<vmem>>, vector<2x64xf32>,
    %c0_59 = arith.constant 0 : index
    %133 = arith.index_cast %97 : i32 to index
    %c0_60 = arith.constant 0 : index
    %c0_61 = arith.constant 0 : index
    %134 = vector.load %arg4[%c0_59, %133, %c0_60, %c0_61] : memref<1x8x2x64xf32, #tpu.memory_space<vmem>>, vector<1x1x2x64xf32>
    %135 = vector.shape_cast %134 : vector<1x1x2x64xf32> to vector<2x64xf32>
    %136 = vector.shape_cast %130 : vector<2x64xf32> to vector<1x1x2x64xf32>
    tpu.vector_store %arg4[%c0_59, %133, %c0_60, %c0_61], %136 {strides = array<i32>} : memref<1x8x2x64xf32, #tpu.memory_space<vmem>>, vector<1x1x2x64xf32>,
    %c7_i32_62 = arith.constant 7 : i32
    %137 = arith.muli %arg0, %c7_i32_62 : i32
    %c2_i32_63 = arith.constant 2 : i32
    %138 = arith.muli %c2_i32_63, %arg0 : i32
    %c1_i32_64 = arith.constant 1 : i32
    %139 = arith.subi %c1_i32_64, %138 : i32
    %c3_i32 = arith.constant 3 : i32
    %140 = arith.muli %139, %c3_i32 : i32
    %141 = arith.addi %137, %140 : i32
    %142 = arith.index_cast %141 : i32 to index
    %c0_65 = arith.constant 0 : index
    %c0_66 = arith.constant 0 : index
    %143 = vector.load %arg2[%142, %c0_65, %c0_66] : memref<8x2x256xf32, #tpu.memory_space<vmem>>, vector<1x2x256xf32>
    %144 = vector.shape_cast %143 : vector<1x2x256xf32> to vector<2x256xf32>
    %c0_67 = arith.constant 0 : index
    %c0_68 = arith.constant 0 : index
    %145 = vector.load %arg5[%c0_67, %c0_68] : memref<2x64xf32, #tpu.memory_space<vmem>>, vector<2x64xf32>
    %146 = arith.truncf %145 : vector<2x64xf32> to vector<2x64xbf16>
    %cst_69 = arith.constant dense<0.000000e+00> : vector<2x256xf32>
    %147 = tpu.matmul %146, %4, %cst_69 {dimension_numbers = #tpu.dot_dimension_numbers<[1], [0], [0], [1], [0, 0, 1, 1], [], []>} : vector<2x64xbf16>, vector<64x256xbf16>, vector<2x256xf32> -> vector<2x256xf32>
    %148 = arith.addf %144, %147 : vector<2x256xf32>
    %149 = vector.extract_strided_slice %148 {offsets = [0, 0], sizes = [2, 64], strides = [1, 1]} : vector<2x256xf32> to vector<2x64xf32>
    %150 = arith.negf %149 : vector<2x64xf32>
    %151 = math.exp %150 : vector<2x64xf32>
    %cst_70 = arith.constant 1.000000e+00 : f32
    %152 = vector.broadcast %cst_70 : f32 to vector<2x64xf32>
    %153 = arith.addf %152, %151 : vector<2x64xf32>
    %154 = arith.divf %152, %153 : vector<2x64xf32>
    %155 = vector.extract_strided_slice %148 {offsets = [0, 64], sizes = [2, 64], strides = [1, 1]} : vector<2x256xf32> to vector<2x64xf32>
    %156 = arith.negf %155 : vector<2x64xf32>
    %157 = math.exp %156 : vector<2x64xf32>
    %cst_71 = arith.constant 1.000000e+00 : f32
    %158 = vector.broadcast %cst_71 : f32 to vector<2x64xf32>
    %159 = arith.addf %158, %157 : vector<2x64xf32>
    %160 = arith.divf %158, %159 : vector<2x64xf32>
    %161 = vector.extract_strided_slice %148 {offsets = [0, 128], sizes = [2, 64], strides = [1, 1]} : vector<2x256xf32> to vector<2x64xf32>
    %162 = math.tanh %161 : vector<2x64xf32>
    %163 = vector.extract_strided_slice %148 {offsets = [0, 192], sizes = [2, 64], strides = [1, 1]} : vector<2x256xf32> to vector<2x64xf32>
    %164 = arith.negf %163 : vector<2x64xf32>
    %165 = math.exp %164 : vector<2x64xf32>
    %cst_72 = arith.constant 1.000000e+00 : f32
    %166 = vector.broadcast %cst_72 : f32 to vector<2x64xf32>
    %167 = arith.addf %166, %165 : vector<2x64xf32>
    %168 = arith.divf %166, %167 : vector<2x64xf32>
    %c0_73 = arith.constant 0 : index
    %c0_74 = arith.constant 0 : index
    %169 = vector.load %arg6[%c0_73, %c0_74] : memref<2x64xf32, #tpu.memory_space<vmem>>, vector<2x64xf32>
    %170 = arith.mulf %160, %169 : vector<2x64xf32>
    %171 = arith.mulf %154, %162 : vector<2x64xf32>
    %172 = arith.addf %170, %171 : vector<2x64xf32>
    %173 = math.tanh %172 : vector<2x64xf32>
    %174 = arith.mulf %168, %173 : vector<2x64xf32>
    %c0_75 = arith.constant 0 : index
    %c0_76 = arith.constant 0 : index
    %175 = vector.load %arg6[%c0_75, %c0_76] : memref<2x64xf32, #tpu.memory_space<vmem>>, vector<2x64xf32>
    tpu.vector_store %arg6[%c0_75, %c0_76], %172 {strides = array<i32>} : memref<2x64xf32, #tpu.memory_space<vmem>>, vector<2x64xf32>,
    %c0_77 = arith.constant 0 : index
    %c0_78 = arith.constant 0 : index
    %176 = vector.load %arg5[%c0_77, %c0_78] : memref<2x64xf32, #tpu.memory_space<vmem>>, vector<2x64xf32>
    tpu.vector_store %arg5[%c0_77, %c0_78], %174 {strides = array<i32>} : memref<2x64xf32, #tpu.memory_space<vmem>>, vector<2x64xf32>,
    %c0_79 = arith.constant 0 : index
    %177 = arith.index_cast %141 : i32 to index
    %c0_80 = arith.constant 0 : index
    %c0_81 = arith.constant 0 : index
    %178 = vector.load %arg4[%c0_79, %177, %c0_80, %c0_81] : memref<1x8x2x64xf32, #tpu.memory_space<vmem>>, vector<1x1x2x64xf32>
    %179 = vector.shape_cast %178 : vector<1x1x2x64xf32> to vector<2x64xf32>
    %180 = vector.shape_cast %174 : vector<2x64xf32> to vector<1x1x2x64xf32>
    tpu.vector_store %arg4[%c0_79, %177, %c0_80, %c0_81], %180 {strides = array<i32>} : memref<1x8x2x64xf32, #tpu.memory_space<vmem>>, vector<1x1x2x64xf32>,
    %c7_i32_82 = arith.constant 7 : i32
    %181 = arith.muli %arg0, %c7_i32_82 : i32
    %c2_i32_83 = arith.constant 2 : i32
    %182 = arith.muli %c2_i32_83, %arg0 : i32
    %c1_i32_84 = arith.constant 1 : i32
    %183 = arith.subi %c1_i32_84, %182 : i32
    %c4_i32 = arith.constant 4 : i32
    %184 = arith.muli %183, %c4_i32 : i32
    %185 = arith.addi %181, %184 : i32
    %186 = arith.index_cast %185 : i32 to index
    %c0_85 = arith.constant 0 : index
    %c0_86 = arith.constant 0 : index
    %187 = vector.load %arg2[%186, %c0_85, %c0_86] : memref<8x2x256xf32, #tpu.memory_space<vmem>>, vector<1x2x256xf32>
    %188 = vector.shape_cast %187 : vector<1x2x256xf32> to vector<2x256xf32>
    %c0_87 = arith.constant 0 : index
    %c0_88 = arith.constant 0 : index
    %189 = vector.load %arg5[%c0_87, %c0_88] : memref<2x64xf32, #tpu.memory_space<vmem>>, vector<2x64xf32>
    %190 = arith.truncf %189 : vector<2x64xf32> to vector<2x64xbf16>
    %cst_89 = arith.constant dense<0.000000e+00> : vector<2x256xf32>
    %191 = tpu.matmul %190, %4, %cst_89 {dimension_numbers = #tpu.dot_dimension_numbers<[1], [0], [0], [1], [0, 0, 1, 1], [], []>} : vector<2x64xbf16>, vector<64x256xbf16>, vector<2x256xf32> -> vector<2x256xf32>
    %192 = arith.addf %188, %191 : vector<2x256xf32>
    %193 = vector.extract_strided_slice %192 {offsets = [0, 0], sizes = [2, 64], strides = [1, 1]} : vector<2x256xf32> to vector<2x64xf32>
    %194 = arith.negf %193 : vector<2x64xf32>
    %195 = math.exp %194 : vector<2x64xf32>
    %cst_90 = arith.constant 1.000000e+00 : f32
    %196 = vector.broadcast %cst_90 : f32 to vector<2x64xf32>
    %197 = arith.addf %196, %195 : vector<2x64xf32>
    %198 = arith.divf %196, %197 : vector<2x64xf32>
    %199 = vector.extract_strided_slice %192 {offsets = [0, 64], sizes = [2, 64], strides = [1, 1]} : vector<2x256xf32> to vector<2x64xf32>
    %200 = arith.negf %199 : vector<2x64xf32>
    %201 = math.exp %200 : vector<2x64xf32>
    %cst_91 = arith.constant 1.000000e+00 : f32
    %202 = vector.broadcast %cst_91 : f32 to vector<2x64xf32>
    %203 = arith.addf %202, %201 : vector<2x64xf32>
    %204 = arith.divf %202, %203 : vector<2x64xf32>
    %205 = vector.extract_strided_slice %192 {offsets = [0, 128], sizes = [2, 64], strides = [1, 1]} : vector<2x256xf32> to vector<2x64xf32>
    %206 = math.tanh %205 : vector<2x64xf32>
    %207 = vector.extract_strided_slice %192 {offsets = [0, 192], sizes = [2, 64], strides = [1, 1]} : vector<2x256xf32> to vector<2x64xf32>
    %208 = arith.negf %207 : vector<2x64xf32>
    %209 = math.exp %208 : vector<2x64xf32>
    %cst_92 = arith.constant 1.000000e+00 : f32
    %210 = vector.broadcast %cst_92 : f32 to vector<2x64xf32>
    %211 = arith.addf %210, %209 : vector<2x64xf32>
    %212 = arith.divf %210, %211 : vector<2x64xf32>
    %c0_93 = arith.constant 0 : index
    %c0_94 = arith.constant 0 : index
    %213 = vector.load %arg6[%c0_93, %c0_94] : memref<2x64xf32, #tpu.memory_space<vmem>>, vector<2x64xf32>
    %214 = arith.mulf %204, %213 : vector<2x64xf32>
    %215 = arith.mulf %198, %206 : vector<2x64xf32>
    %216 = arith.addf %214, %215 : vector<2x64xf32>
    %217 = math.tanh %216 : vector<2x64xf32>
    %218 = arith.mulf %212, %217 : vector<2x64xf32>
    %c0_95 = arith.constant 0 : index
    %c0_96 = arith.constant 0 : index
    %219 = vector.load %arg6[%c0_95, %c0_96] : memref<2x64xf32, #tpu.memory_space<vmem>>, vector<2x64xf32>
    tpu.vector_store %arg6[%c0_95, %c0_96], %216 {strides = array<i32>} : memref<2x64xf32, #tpu.memory_space<vmem>>, vector<2x64xf32>,
    %c0_97 = arith.constant 0 : index
    %c0_98 = arith.constant 0 : index
    %220 = vector.load %arg5[%c0_97, %c0_98] : memref<2x64xf32, #tpu.memory_space<vmem>>, vector<2x64xf32>
    tpu.vector_store %arg5[%c0_97, %c0_98], %218 {strides = array<i32>} : memref<2x64xf32, #tpu.memory_space<vmem>>, vector<2x64xf32>,
    %c0_99 = arith.constant 0 : index
    %221 = arith.index_cast %185 : i32 to index
    %c0_100 = arith.constant 0 : index
    %c0_101 = arith.constant 0 : index
    %222 = vector.load %arg4[%c0_99, %221, %c0_100, %c0_101] : memref<1x8x2x64xf32, #tpu.memory_space<vmem>>, vector<1x1x2x64xf32>
    %223 = vector.shape_cast %222 : vector<1x1x2x64xf32> to vector<2x64xf32>
    %224 = vector.shape_cast %218 : vector<2x64xf32> to vector<1x1x2x64xf32>
    tpu.vector_store %arg4[%c0_99, %221, %c0_100, %c0_101], %224 {strides = array<i32>} : memref<1x8x2x64xf32, #tpu.memory_space<vmem>>, vector<1x1x2x64xf32>,
    %c7_i32_102 = arith.constant 7 : i32
    %225 = arith.muli %arg0, %c7_i32_102 : i32
    %c2_i32_103 = arith.constant 2 : i32
    %226 = arith.muli %c2_i32_103, %arg0 : i32
    %c1_i32_104 = arith.constant 1 : i32
    %227 = arith.subi %c1_i32_104, %226 : i32
    %c5_i32 = arith.constant 5 : i32
    %228 = arith.muli %227, %c5_i32 : i32
    %229 = arith.addi %225, %228 : i32
    %230 = arith.index_cast %229 : i32 to index
    %c0_105 = arith.constant 0 : index
    %c0_106 = arith.constant 0 : index
    %231 = vector.load %arg2[%230, %c0_105, %c0_106] : memref<8x2x256xf32, #tpu.memory_space<vmem>>, vector<1x2x256xf32>
    %232 = vector.shape_cast %231 : vector<1x2x256xf32> to vector<2x256xf32>
    %c0_107 = arith.constant 0 : index
    %c0_108 = arith.constant 0 : index
    %233 = vector.load %arg5[%c0_107, %c0_108] : memref<2x64xf32, #tpu.memory_space<vmem>>, vector<2x64xf32>
    %234 = arith.truncf %233 : vector<2x64xf32> to vector<2x64xbf16>
    %cst_109 = arith.constant dense<0.000000e+00> : vector<2x256xf32>
    %235 = tpu.matmul %234, %4, %cst_109 {dimension_numbers = #tpu.dot_dimension_numbers<[1], [0], [0], [1], [0, 0, 1, 1], [], []>} : vector<2x64xbf16>, vector<64x256xbf16>, vector<2x256xf32> -> vector<2x256xf32>
    %236 = arith.addf %232, %235 : vector<2x256xf32>
    %237 = vector.extract_strided_slice %236 {offsets = [0, 0], sizes = [2, 64], strides = [1, 1]} : vector<2x256xf32> to vector<2x64xf32>
    %238 = arith.negf %237 : vector<2x64xf32>
    %239 = math.exp %238 : vector<2x64xf32>
    %cst_110 = arith.constant 1.000000e+00 : f32
    %240 = vector.broadcast %cst_110 : f32 to vector<2x64xf32>
    %241 = arith.addf %240, %239 : vector<2x64xf32>
    %242 = arith.divf %240, %241 : vector<2x64xf32>
    %243 = vector.extract_strided_slice %236 {offsets = [0, 64], sizes = [2, 64], strides = [1, 1]} : vector<2x256xf32> to vector<2x64xf32>
    %244 = arith.negf %243 : vector<2x64xf32>
    %245 = math.exp %244 : vector<2x64xf32>
    %cst_111 = arith.constant 1.000000e+00 : f32
    %246 = vector.broadcast %cst_111 : f32 to vector<2x64xf32>
    %247 = arith.addf %246, %245 : vector<2x64xf32>
    %248 = arith.divf %246, %247 : vector<2x64xf32>
    %249 = vector.extract_strided_slice %236 {offsets = [0, 128], sizes = [2, 64], strides = [1, 1]} : vector<2x256xf32> to vector<2x64xf32>
    %250 = math.tanh %249 : vector<2x64xf32>
    %251 = vector.extract_strided_slice %236 {offsets = [0, 192], sizes = [2, 64], strides = [1, 1]} : vector<2x256xf32> to vector<2x64xf32>
    %252 = arith.negf %251 : vector<2x64xf32>
    %253 = math.exp %252 : vector<2x64xf32>
    %cst_112 = arith.constant 1.000000e+00 : f32
    %254 = vector.broadcast %cst_112 : f32 to vector<2x64xf32>
    %255 = arith.addf %254, %253 : vector<2x64xf32>
    %256 = arith.divf %254, %255 : vector<2x64xf32>
    %c0_113 = arith.constant 0 : index
    %c0_114 = arith.constant 0 : index
    %257 = vector.load %arg6[%c0_113, %c0_114] : memref<2x64xf32, #tpu.memory_space<vmem>>, vector<2x64xf32>
    %258 = arith.mulf %248, %257 : vector<2x64xf32>
    %259 = arith.mulf %242, %250 : vector<2x64xf32>
    %260 = arith.addf %258, %259 : vector<2x64xf32>
    %261 = math.tanh %260 : vector<2x64xf32>
    %262 = arith.mulf %256, %261 : vector<2x64xf32>
    %c0_115 = arith.constant 0 : index
    %c0_116 = arith.constant 0 : index
    %263 = vector.load %arg6[%c0_115, %c0_116] : memref<2x64xf32, #tpu.memory_space<vmem>>, vector<2x64xf32>
    tpu.vector_store %arg6[%c0_115, %c0_116], %260 {strides = array<i32>} : memref<2x64xf32, #tpu.memory_space<vmem>>, vector<2x64xf32>,
    %c0_117 = arith.constant 0 : index
    %c0_118 = arith.constant 0 : index
    %264 = vector.load %arg5[%c0_117, %c0_118] : memref<2x64xf32, #tpu.memory_space<vmem>>, vector<2x64xf32>
    tpu.vector_store %arg5[%c0_117, %c0_118], %262 {strides = array<i32>} : memref<2x64xf32, #tpu.memory_space<vmem>>, vector<2x64xf32>,
    %c0_119 = arith.constant 0 : index
    %265 = arith.index_cast %229 : i32 to index
    %c0_120 = arith.constant 0 : index
    %c0_121 = arith.constant 0 : index
    %266 = vector.load %arg4[%c0_119, %265, %c0_120, %c0_121] : memref<1x8x2x64xf32, #tpu.memory_space<vmem>>, vector<1x1x2x64xf32>
    %267 = vector.shape_cast %266 : vector<1x1x2x64xf32> to vector<2x64xf32>
    %268 = vector.shape_cast %262 : vector<2x64xf32> to vector<1x1x2x64xf32>
    tpu.vector_store %arg4[%c0_119, %265, %c0_120, %c0_121], %268 {strides = array<i32>} : memref<1x8x2x64xf32, #tpu.memory_space<vmem>>, vector<1x1x2x64xf32>,
    %c7_i32_122 = arith.constant 7 : i32
    %269 = arith.muli %arg0, %c7_i32_122 : i32
    %c2_i32_123 = arith.constant 2 : i32
    %270 = arith.muli %c2_i32_123, %arg0 : i32
    %c1_i32_124 = arith.constant 1 : i32
    %271 = arith.subi %c1_i32_124, %270 : i32
    %c6_i32 = arith.constant 6 : i32
    %272 = arith.muli %271, %c6_i32 : i32
    %273 = arith.addi %269, %272 : i32
    %274 = arith.index_cast %273 : i32 to index
    %c0_125 = arith.constant 0 : index
    %c0_126 = arith.constant 0 : index
    %275 = vector.load %arg2[%274, %c0_125, %c0_126] : memref<8x2x256xf32, #tpu.memory_space<vmem>>, vector<1x2x256xf32>
    %276 = vector.shape_cast %275 : vector<1x2x256xf32> to vector<2x256xf32>
    %c0_127 = arith.constant 0 : index
    %c0_128 = arith.constant 0 : index
    %277 = vector.load %arg5[%c0_127, %c0_128] : memref<2x64xf32, #tpu.memory_space<vmem>>, vector<2x64xf32>
    %278 = arith.truncf %277 : vector<2x64xf32> to vector<2x64xbf16>
    %cst_129 = arith.constant dense<0.000000e+00> : vector<2x256xf32>
    %279 = tpu.matmul %278, %4, %cst_129 {dimension_numbers = #tpu.dot_dimension_numbers<[1], [0], [0], [1], [0, 0, 1, 1], [], []>} : vector<2x64xbf16>, vector<64x256xbf16>, vector<2x256xf32> -> vector<2x256xf32>
    %280 = arith.addf %276, %279 : vector<2x256xf32>
    %281 = vector.extract_strided_slice %280 {offsets = [0, 0], sizes = [2, 64], strides = [1, 1]} : vector<2x256xf32> to vector<2x64xf32>
    %282 = arith.negf %281 : vector<2x64xf32>
    %283 = math.exp %282 : vector<2x64xf32>
    %cst_130 = arith.constant 1.000000e+00 : f32
    %284 = vector.broadcast %cst_130 : f32 to vector<2x64xf32>
    %285 = arith.addf %284, %283 : vector<2x64xf32>
    %286 = arith.divf %284, %285 : vector<2x64xf32>
    %287 = vector.extract_strided_slice %280 {offsets = [0, 64], sizes = [2, 64], strides = [1, 1]} : vector<2x256xf32> to vector<2x64xf32>
    %288 = arith.negf %287 : vector<2x64xf32>
    %289 = math.exp %288 : vector<2x64xf32>
    %cst_131 = arith.constant 1.000000e+00 : f32
    %290 = vector.broadcast %cst_131 : f32 to vector<2x64xf32>
    %291 = arith.addf %290, %289 : vector<2x64xf32>
    %292 = arith.divf %290, %291 : vector<2x64xf32>
    %293 = vector.extract_strided_slice %280 {offsets = [0, 128], sizes = [2, 64], strides = [1, 1]} : vector<2x256xf32> to vector<2x64xf32>
    %294 = math.tanh %293 : vector<2x64xf32>
    %295 = vector.extract_strided_slice %280 {offsets = [0, 192], sizes = [2, 64], strides = [1, 1]} : vector<2x256xf32> to vector<2x64xf32>
    %296 = arith.negf %295 : vector<2x64xf32>
    %297 = math.exp %296 : vector<2x64xf32>
    %cst_132 = arith.constant 1.000000e+00 : f32
    %298 = vector.broadcast %cst_132 : f32 to vector<2x64xf32>
    %299 = arith.addf %298, %297 : vector<2x64xf32>
    %300 = arith.divf %298, %299 : vector<2x64xf32>
    %c0_133 = arith.constant 0 : index
    %c0_134 = arith.constant 0 : index
    %301 = vector.load %arg6[%c0_133, %c0_134] : memref<2x64xf32, #tpu.memory_space<vmem>>, vector<2x64xf32>
    %302 = arith.mulf %292, %301 : vector<2x64xf32>
    %303 = arith.mulf %286, %294 : vector<2x64xf32>
    %304 = arith.addf %302, %303 : vector<2x64xf32>
    %305 = math.tanh %304 : vector<2x64xf32>
    %306 = arith.mulf %300, %305 : vector<2x64xf32>
    %c0_135 = arith.constant 0 : index
    %c0_136 = arith.constant 0 : index
    %307 = vector.load %arg6[%c0_135, %c0_136] : memref<2x64xf32, #tpu.memory_space<vmem>>, vector<2x64xf32>
    tpu.vector_store %arg6[%c0_135, %c0_136], %304 {strides = array<i32>} : memref<2x64xf32, #tpu.memory_space<vmem>>, vector<2x64xf32>,
    %c0_137 = arith.constant 0 : index
    %c0_138 = arith.constant 0 : index
    %308 = vector.load %arg5[%c0_137, %c0_138] : memref<2x64xf32, #tpu.memory_space<vmem>>, vector<2x64xf32>
    tpu.vector_store %arg5[%c0_137, %c0_138], %306 {strides = array<i32>} : memref<2x64xf32, #tpu.memory_space<vmem>>, vector<2x64xf32>,
    %c0_139 = arith.constant 0 : index
    %309 = arith.index_cast %273 : i32 to index
    %c0_140 = arith.constant 0 : index
    %c0_141 = arith.constant 0 : index
    %310 = vector.load %arg4[%c0_139, %309, %c0_140, %c0_141] : memref<1x8x2x64xf32, #tpu.memory_space<vmem>>, vector<1x1x2x64xf32>
    %311 = vector.shape_cast %310 : vector<1x1x2x64xf32> to vector<2x64xf32>
    %312 = vector.shape_cast %306 : vector<2x64xf32> to vector<1x1x2x64xf32>
    tpu.vector_store %arg4[%c0_139, %309, %c0_140, %c0_141], %312 {strides = array<i32>} : memref<1x8x2x64xf32, #tpu.memory_space<vmem>>, vector<1x1x2x64xf32>,
    %c7_i32_142 = arith.constant 7 : i32
    %313 = arith.muli %arg0, %c7_i32_142 : i32
    %c2_i32_143 = arith.constant 2 : i32
    %314 = arith.muli %c2_i32_143, %arg0 : i32
    %c1_i32_144 = arith.constant 1 : i32
    %315 = arith.subi %c1_i32_144, %314 : i32
    %c7_i32_145 = arith.constant 7 : i32
    %316 = arith.muli %315, %c7_i32_145 : i32
    %317 = arith.addi %313, %316 : i32
    %318 = arith.index_cast %317 : i32 to index
    %c0_146 = arith.constant 0 : index
    %c0_147 = arith.constant 0 : index
    %319 = vector.load %arg2[%318, %c0_146, %c0_147] : memref<8x2x256xf32, #tpu.memory_space<vmem>>, vector<1x2x256xf32>
    %320 = vector.shape_cast %319 : vector<1x2x256xf32> to vector<2x256xf32>
    %c0_148 = arith.constant 0 : index
    %c0_149 = arith.constant 0 : index
    %321 = vector.load %arg5[%c0_148, %c0_149] : memref<2x64xf32, #tpu.memory_space<vmem>>, vector<2x64xf32>
    %322 = arith.truncf %321 : vector<2x64xf32> to vector<2x64xbf16>
    %cst_150 = arith.constant dense<0.000000e+00> : vector<2x256xf32>
    %323 = tpu.matmul %322, %4, %cst_150 {dimension_numbers = #tpu.dot_dimension_numbers<[1], [0], [0], [1], [0, 0, 1, 1], [], []>} : vector<2x64xbf16>, vector<64x256xbf16>, vector<2x256xf32> -> vector<2x256xf32>
    %324 = arith.addf %320, %323 : vector<2x256xf32>
    %325 = vector.extract_strided_slice %324 {offsets = [0, 0], sizes = [2, 64], strides = [1, 1]} : vector<2x256xf32> to vector<2x64xf32>
    %326 = arith.negf %325 : vector<2x64xf32>
    %327 = math.exp %326 : vector<2x64xf32>
    %cst_151 = arith.constant 1.000000e+00 : f32
    %328 = vector.broadcast %cst_151 : f32 to vector<2x64xf32>
    %329 = arith.addf %328, %327 : vector<2x64xf32>
    %330 = arith.divf %328, %329 : vector<2x64xf32>
    %331 = vector.extract_strided_slice %324 {offsets = [0, 64], sizes = [2, 64], strides = [1, 1]} : vector<2x256xf32> to vector<2x64xf32>
    %332 = arith.negf %331 : vector<2x64xf32>
    %333 = math.exp %332 : vector<2x64xf32>
    %cst_152 = arith.constant 1.000000e+00 : f32
    %334 = vector.broadcast %cst_152 : f32 to vector<2x64xf32>
    %335 = arith.addf %334, %333 : vector<2x64xf32>
    %336 = arith.divf %334, %335 : vector<2x64xf32>
    %337 = vector.extract_strided_slice %324 {offsets = [0, 128], sizes = [2, 64], strides = [1, 1]} : vector<2x256xf32> to vector<2x64xf32>
    %338 = math.tanh %337 : vector<2x64xf32>
    %339 = vector.extract_strided_slice %324 {offsets = [0, 192], sizes = [2, 64], strides = [1, 1]} : vector<2x256xf32> to vector<2x64xf32>
    %340 = arith.negf %339 : vector<2x64xf32>
    %341 = math.exp %340 : vector<2x64xf32>
    %cst_153 = arith.constant 1.000000e+00 : f32
    %342 = vector.broadcast %cst_153 : f32 to vector<2x64xf32>
    %343 = arith.addf %342, %341 : vector<2x64xf32>
    %344 = arith.divf %342, %343 : vector<2x64xf32>
    %c0_154 = arith.constant 0 : index
    %c0_155 = arith.constant 0 : index
    %345 = vector.load %arg6[%c0_154, %c0_155] : memref<2x64xf32, #tpu.memory_space<vmem>>, vector<2x64xf32>
    %346 = arith.mulf %336, %345 : vector<2x64xf32>
    %347 = arith.mulf %330, %338 : vector<2x64xf32>
    %348 = arith.addf %346, %347 : vector<2x64xf32>
    %349 = math.tanh %348 : vector<2x64xf32>
    %350 = arith.mulf %344, %349 : vector<2x64xf32>
    %c0_156 = arith.constant 0 : index
    %c0_157 = arith.constant 0 : index
    %351 = vector.load %arg6[%c0_156, %c0_157] : memref<2x64xf32, #tpu.memory_space<vmem>>, vector<2x64xf32>
    tpu.vector_store %arg6[%c0_156, %c0_157], %348 {strides = array<i32>} : memref<2x64xf32, #tpu.memory_space<vmem>>, vector<2x64xf32>,
    %c0_158 = arith.constant 0 : index
    %c0_159 = arith.constant 0 : index
    %352 = vector.load %arg5[%c0_158, %c0_159] : memref<2x64xf32, #tpu.memory_space<vmem>>, vector<2x64xf32>
    tpu.vector_store %arg5[%c0_158, %c0_159], %350 {strides = array<i32>} : memref<2x64xf32, #tpu.memory_space<vmem>>, vector<2x64xf32>,
    %c0_160 = arith.constant 0 : index
    %353 = arith.index_cast %317 : i32 to index
    %c0_161 = arith.constant 0 : index
    %c0_162 = arith.constant 0 : index
    %354 = vector.load %arg4[%c0_160, %353, %c0_161, %c0_162] : memref<1x8x2x64xf32, #tpu.memory_space<vmem>>, vector<1x1x2x64xf32>
    %355 = vector.shape_cast %354 : vector<1x1x2x64xf32> to vector<2x64xf32>
    %356 = vector.shape_cast %350 : vector<2x64xf32> to vector<1x1x2x64xf32>
    tpu.vector_store %arg4[%c0_160, %353, %c0_161, %c0_162], %356 {strides = array<i32>} : memref<1x8x2x64xf32, #tpu.memory_space<vmem>>, vector<1x1x2x64xf32>,
    return
  }
  func.func @transform_0(%arg0: i32, %arg1: i32) -> (i32, i32, i32) {
    %c0_i32 = arith.constant 0 : i32
    %0 = arith.muli %arg0, %c0_i32 : i32
    %c2_i32 = arith.constant 2 : i32
    %1 = arith.muli %c2_i32, %arg0 : i32
    %c1_i32 = arith.constant 1 : i32
    %2 = arith.subi %c1_i32, %1 : i32
    %3 = arith.muli %2, %arg1 : i32
    %4 = arith.addi %0, %3 : i32
    %c0_i32_0 = arith.constant 0 : i32
    %c0_i32_1 = arith.constant 0 : i32
    return %4, %c0_i32_0, %arg0 : i32, i32, i32
  }
  func.func @transform_1(%arg0: i32, %arg1: i32) -> (i32, i32, i32) {
    %c0_i32 = arith.constant 0 : i32
    %c0_i32_0 = arith.constant 0 : i32
    %c0_i32_1 = arith.constant 0 : i32
    return %arg0, %c0_i32, %c0_i32_0 : i32, i32, i32
  }
  func.func @transform_2(%arg0: i32, %arg1: i32) -> (i32, i32, i32, i32) {
    %c0_i32 = arith.constant 0 : i32
    %0 = arith.muli %arg0, %c0_i32 : i32
    %c2_i32 = arith.constant 2 : i32
    %1 = arith.muli %c2_i32, %arg0 : i32
    %c1_i32 = arith.constant 1 : i32
    %2 = arith.subi %c1_i32, %1 : i32
    %3 = arith.muli %2, %arg1 : i32
    %4 = arith.addi %0, %3 : i32
    %c0_i32_0 = arith.constant 0 : i32
    %c0_i32_1 = arith.constant 0 : i32
    %c0_i32_2 = arith.constant 0 : i32
    return %arg0, %4, %c0_i32_0, %c0_i32_1 : i32, i32, i32, i32
  }
}

module attributes {stable_mosaic.version = 11 : i64} {
  func.func @_linear_kernel(%arg0: i32, %arg1: i32, %arg2: i32, %arg3: memref<16x128xbf16, #tpu.memory_space<vmem>>, %arg4: memref<128x128xbf16, #tpu.memory_space<vmem>>, %arg5: memref<1x128xf32, #tpu.memory_space<vmem>>, %arg6: memref<16x128xf32, #tpu.memory_space<vmem>>, %arg7: memref<16x128xf32, #tpu.memory_space<vmem>>) attributes {dimension_semantics = [#tpu.dimension_semantics<parallel>, #tpu.dimension_semantics<parallel>, #tpu.dimension_semantics<arbitrary>], iteration_bounds = array<i64: 1, 1, 1>, scalar_prefetch = 0 : i64, scratch_operands = 1 : i64, tpu.core_type = #tpu.core_type<tc>, window_params = [{transform_indices = @transform_0, window_bounds = array<i64: 16, 128>}, {transform_indices = @transform_1, window_bounds = array<i64: 128, 128>}, {transform_indices = @transform_2, window_bounds = array<i64: 1, 128>}, {transform_indices = @transform_3, window_bounds = array<i64: 16, 128>}]} {
    %c0_i32 = arith.constant 0 : i32
    %0 = arith.cmpi eq, %arg2, %c0_i32 : i32
    %1 = arith.extui %0 : i1 to i32
    %c0_i32_0 = arith.constant 0 : i32
    %2 = arith.cmpi ne, %1, %c0_i32_0 : i32
    scf.if %2 {
      %cst_10 = arith.constant 0.000000e+00 : f32
      %12 = vector.broadcast %cst_10 : f32 to vector<16x128xf32>
      %c0_11 = arith.constant 0 : index
      %c0_12 = arith.constant 0 : index
      %13 = vector.load %arg7[%c0_11, %c0_12] : memref<16x128xf32, #tpu.memory_space<vmem>>, vector<16x128xf32>
      tpu.vector_store %arg7[%c0_11, %c0_12], %12 {strides = array<i32>} : memref<16x128xf32, #tpu.memory_space<vmem>>, vector<16x128xf32>,
    } else {
    }
    %c0 = arith.constant 0 : index
    %c0_1 = arith.constant 0 : index
    %3 = vector.load %arg7[%c0, %c0_1] : memref<16x128xf32, #tpu.memory_space<vmem>>, vector<16x128xf32>
    %c0_2 = arith.constant 0 : index
    %c0_3 = arith.constant 0 : index
    %4 = vector.load %arg3[%c0_2, %c0_3] : memref<16x128xbf16, #tpu.memory_space<vmem>>, vector<16x128xbf16>
    %c0_4 = arith.constant 0 : index
    %c0_5 = arith.constant 0 : index
    %5 = vector.load %arg4[%c0_4, %c0_5] : memref<128x128xbf16, #tpu.memory_space<vmem>>, vector<128x128xbf16>
    %cst = arith.constant dense<0.000000e+00> : vector<16x128xf32>
    %6 = tpu.matmul %4, %5, %cst {dimension_numbers = #tpu.dot_dimension_numbers<[1], [0], [0], [1], [0, 0, 1, 1], [], []>} : vector<16x128xbf16>, vector<128x128xbf16>, vector<16x128xf32> -> vector<16x128xf32>
    %7 = arith.addf %3, %6 : vector<16x128xf32>
    %c0_6 = arith.constant 0 : index
    %c0_7 = arith.constant 0 : index
    %8 = vector.load %arg7[%c0_6, %c0_7] : memref<16x128xf32, #tpu.memory_space<vmem>>, vector<16x128xf32>
    tpu.vector_store %arg7[%c0_6, %c0_7], %7 {strides = array<i32>} : memref<16x128xf32, #tpu.memory_space<vmem>>, vector<16x128xf32>,
    %c0_i32_8 = arith.constant 0 : i32
    %9 = arith.cmpi eq, %arg2, %c0_i32_8 : i32
    %10 = arith.extui %9 : i1 to i32
    %c0_i32_9 = arith.constant 0 : i32
    %11 = arith.cmpi ne, %10, %c0_i32_9 : i32
    scf.if %11 {
      %c0_10 = arith.constant 0 : index
      %c0_11 = arith.constant 0 : index
      %12 = vector.load %arg7[%c0_10, %c0_11] : memref<16x128xf32, #tpu.memory_space<vmem>>, vector<16x128xf32>
      %c0_12 = arith.constant 0 : index
      %c0_13 = arith.constant 0 : index
      %13 = vector.load %arg5[%c0_12, %c0_13] : memref<1x128xf32, #tpu.memory_space<vmem>>, vector<1x128xf32>
      %14 = vector.broadcast %13 : vector<1x128xf32> to vector<16x128xf32>
      %15 = arith.addf %12, %14 : vector<16x128xf32>
      %c0_14 = arith.constant 0 : index
      %c0_15 = arith.constant 0 : index
      %16 = vector.load %arg6[%c0_14, %c0_15] : memref<16x128xf32, #tpu.memory_space<vmem>>, vector<16x128xf32>
      tpu.vector_store %arg6[%c0_14, %c0_15], %15 {strides = array<i32>} : memref<16x128xf32, #tpu.memory_space<vmem>>, vector<16x128xf32>,
    } else {
    }
    return
  }
  func.func @transform_0(%arg0: i32, %arg1: i32, %arg2: i32) -> (i32, i32) {
    %c0_i32 = arith.constant 0 : i32
    return %arg0, %arg2 : i32, i32
  }
  func.func @transform_1(%arg0: i32, %arg1: i32, %arg2: i32) -> (i32, i32) {
    %c0_i32 = arith.constant 0 : i32
    return %arg2, %arg1 : i32, i32
  }
  func.func @transform_2(%arg0: i32, %arg1: i32, %arg2: i32) -> (i32, i32) {
    %c0_i32 = arith.constant 0 : i32
    %c0_i32_0 = arith.constant 0 : i32
    return %c0_i32, %arg1 : i32, i32
  }
  func.func @transform_3(%arg0: i32, %arg1: i32, %arg2: i32) -> (i32, i32) {
    %c0_i32 = arith.constant 0 : i32
    return %arg0, %arg1 : i32, i32
  }
}

</mosaic_0001>

<bundles_post_ra>
// kernel: _lambda_.14
= control target key start
LH: loop header
LB: loop body
LE: loop exit
PB: predicated region body
PF: predicated region fallthrough
CT: control target
= control target key end

     0   :  { %s107_s0 = inlined_call_operand.vmem [shape: f32[16,128], index: 0, kind: input, shape index: {}]   ;;  %s108_s1 = inlined_call_operand.vmem [shape: f32[1,128], index: 1, kind: input, shape index: {}]   ;;  %s109_s2 = inlined_call_operand.vmem [shape: f32[1,128], index: 2, kind: input, shape index: {}]   ;;  %s110_s3 = inlined_call_operand.vmem [shape: f32[16,128], index: 3, kind: output, shape index: {}]  }
   0x1   :  { %v14_v0 = vld [vmem:[%s107_s0] sm:$0xff]  ;;  %v15_v1 = vld [vmem:[%s107_s0 + $0x8] sm:$0xff] }
   0x2   :  { %16 = vadd.xlane.f32.xlu0 %v14_v0  ;;  %v63_v17 = vld [vmem:[%s108_s1] ss:$0 sm:$0xff] }
   0x3   :  { %v64_v19 = vld [vmem:[%s109_s2] ss:$0 sm:$0xff] }
   0x6   :  { %18 = vadd.xlane.f32.xlu0 %v15_v1 }
  0x8f   :  { %v17_v2 = vpop.xlane.xlu0 %16 }
  0x90   :  { %v21_v3 = vmul.f32 0.0078125, %v17_v2 }
  0x92   :  { %v23_v4 = vsub.f32 %v14_v0, %v21_v3 }
  0x93   :  { %v19_v5 = vpop.xlane.xlu0 %18 }
  0x94   :  { %v22_v6 = vmul.f32 0.0078125, %v19_v5  ;;  %v25_v7 = vmul.f32 %v23_v4, %v23_v4 }
  0x96   :  { %v24_v8 = vsub.f32 %v15_v1, %v22_v6  ;;  %27 = vadd.xlane.f32.xlu1 %v25_v7 }
  0x98   :  { %v26_v9 = vmul.f32 %v24_v8, %v24_v8 }
  0x9a   :  { %29 = vadd.xlane.f32.xlu1 %v26_v9 }
 0x123   :  { %v28_v10 = vpop.xlane.xlu1 %27 }
 0x124   :  { %v31_v11 = vmul.f32 0.0078125, %v28_v10 }
 0x126   :  { %v33_v12 = vadd.f32 1e-12, %v31_v11 }
 0x127   :  { %v30_v13 = vpop.xlane.xlu1 %29 }
 0x128   :  { %65 = vrsqrt.f32 %v33_v12  ;;  %v32_v14 = vmul.f32 0.0078125, %v30_v13 }
 0x12a   :  { %v34_v15 = vadd.f32 1e-12, %v32_v14 }
 0x12c   :  { %67 = vrsqrt.f32 %v34_v15 }
 0x132   :  { %v66_v16 = vpop.eup %65 }
 0x133   :  { %v37_v18 = vmul.f32 %v66_v16, %v23_v4 }
 0x135   :  { %v46_v20 = vmul.f32 %v63_v17, %v37_v18 }
 0x136   :  { %v68_v21 = vpop.eup %67 }
 0x137   :  { %v55_v22 = vadd.f32 %v64_v19, %v46_v20  ;;  %v38_v23 = vmul.f32 %v68_v21, %v24_v8 }
 0x139   :  { %57 = vst [vmem:[%s110_s3] sm:$0xff] %v55_v22  ;;  %v47_v24 = vmul.f32 %v63_v17, %v38_v23 }
 0x13b   :  { %v56_v25 = vadd.f32 %v64_v19, %v47_v24 }
 0x13d   :  { %58 = vst [vmem:[%s110_s3 + $0x8] sm:$0xff] %v56_v25 }

// kernel: _lambda_.17
= control target key start
LH: loop header
LB: loop body
LE: loop exit
PB: predicated region body
PF: predicated region fallthrough
CT: control target
= control target key end

     0   :  { %v270_v0 = vmov 0.0   ;;  %vm271_vm0 = vmmov 0   ;;  %s355_s1 = inlined_call_operand.vmem [shape: bf16[128,128], index: 1, kind: input, shape index: {}]   ;;  %s356_s0 = inlined_call_operand.vmem [shape: bf16[16,128], index: 0, kind: input, shape index: {}]   ;;  %s357_s2 = inlined_call_operand.vmem [shape: f32[1,128], index: 2, kind: input, shape index: {}]   ;;  %s358_s3 = inlined_call_operand.vmem [shape: f32[16,128], index: 3, kind: input, shape index: {}]   ;;  %s359_s4 = inlined_call_operand.vmem [shape: f32[1,128], index: 4, kind: input, shape index: {}]   ;;  %s360_s5 = inlined_call_operand.vmem [shape: f32[1,128], index: 5, kind: input, shape index: {}]   ;;  %s361_s6 = inlined_call_operand.vmem [shape: f32[16,128], index: 6, kind: output, shape index: {}]  }
   0x1   :  { %235 = vmatprep.subr.bf16.mxu0 %v270_v0  ;;  %v257_v1 = vld [vmem:[%s355_s1] sm:$0xff]   ;;  %251 = vmatprep.mubr.msk.bf16.mxu0 %vm271_vm0, %v270_v0  ;;  %v258_v2 = vld [vmem:[%s355_s1 + $0x8] sm:$0xff]   ;;  %v259_v3 = vld [vmem:[%s355_s1 + $0x10] sm:$0xff]  }
   0x2   :  { %236 = vmatpush3.bf16.msra.mxu0 %v257_v1  ;;  %v260_v4 = vld [vmem:[%s355_s1 + $0x18] sm:$0xff]   ;;  %v261_v5 = vld [vmem:[%s355_s1 + $0x20] sm:$0xff]   ;;  %v262_v6 = vld [vmem:[%s355_s1 + $0x28] sm:$0xff]  }
   0x3   :  { %237 = vmatprep.subr.bf16.mxu0 %v270_v0  ;;  %v263_v7 = vld [vmem:[%s355_s1 + $0x30] sm:$0xff]   ;;  %v264_v8 = vld [vmem:[%s355_s1 + $0x38] sm:$0xff]   ;;  %v265_v9 = vld [vmem:[%s356_s0] sm:$0xff]  }
   0x4   :  { %v223_v10 = vld [vmem:[%s357_s2] ss:$0 sm:$0xff]  ;;  %v164_v19 = vld [vmem:[%s358_s3 + $0x8] sm:$0xff] }
   0x5   :  { %v163_v12 = vld [vmem:[%s358_s3] sm:$0xff] }
   0x6   :  { %238 = vmatpush3.bf16.msra.mxu0 %v258_v2  ;;  %v224_v36 = vld [vmem:[%s359_s4] ss:$0 sm:$0xff] }
   0x7   :  { %239 = vmatprep.subr.bf16.mxu0 %v270_v0  ;;  %v225_v38 = vld [vmem:[%s360_s5] ss:$0 sm:$0xff] }
   0xa   :  { %240 = vmatpush3.bf16.msra.mxu0 %v259_v3 }
   0xb   :  { %241 = vmatprep.subr.bf16.mxu0 %v270_v0 }
   0xe   :  { %242 = vmatpush3.bf16.msra.mxu0 %v260_v4 }
   0xf   :  { %243 = vmatprep.subr.bf16.mxu0 %v270_v0 }
  0x12   :  { %244 = vmatpush3.bf16.msra.mxu0 %v261_v5 }
  0x13   :  { %245 = vmatprep.subr.bf16.mxu0 %v270_v0 }
  0x16   :  { %246 = vmatpush3.bf16.msra.mxu0 %v262_v6 }
  0x17   :  { %247 = vmatprep.subr.bf16.mxu0 %v270_v0 }
  0x1a   :  { %248 = vmatpush3.bf16.msra.mxu0 %v263_v7 }
  0x1b   :  { %249 = vmatprep.subr.bf16.mxu0 %v270_v0 }
  0x1e   :  { %250 = vmatpush3.bf16.msra.mxu0 %v264_v8 }
  0x21   :  { %252 = vmatmul.mubr.bf16.vlgmr.msra.gmra.mrb[0].mxu0 %v265_v9 }
  0xf4   :  { %v138_v11 = vpop.f32.mrb[0].mxu0 }
  0xf5   :  { %v161_v13 = vadd.f32 %v223_v10, %v138_v11  ;;  %v253_v14 = vpop.f32.mrb[1].mxu0 }
  0xf6   :  { %v141_v15 = vpop.f32.mrb[2].mxu0 }
  0xf7   :  { %v162_v16 = vadd.f32 %v223_v10, %v141_v15  ;;  %v254_v17 = vpop.f32.mrb[3].mxu0  ;;  %v165_v18 = vadd.f32 %v163_v12, %v161_v13 }
  0xf9   :  { %167 = vadd.xlane.f32.xlu0 %v165_v18  ;;  %v166_v20 = vadd.f32 %v164_v19, %v162_v16 }
  0xfd   :  { %169 = vadd.xlane.f32.xlu0 %v166_v20 }
 0x186   :  { %v168_v21 = vpop.xlane.xlu0 %167 }
 0x187   :  { %v172_v22 = vmul.f32 0.0078125, %v168_v21 }
 0x189   :  { %v174_v23 = vsub.f32 %v165_v18, %v172_v22 }
 0x18a   :  { %v170_v24 = vpop.xlane.xlu0 %169 }
 0x18b   :  { %v173_v25 = vmul.f32 0.0078125, %v170_v24  ;;  %v176_v26 = vmul.f32 %v174_v23, %v174_v23 }
 0x18d   :  { %v175_v27 = vsub.f32 %v166_v20, %v173_v25  ;;  %178 = vadd.xlane.f32.xlu1 %v176_v26 }
 0x18f   :  { %v177_v28 = vmul.f32 %v175_v27, %v175_v27 }
 0x191   :  { %180 = vadd.xlane.f32.xlu1 %v177_v28 }
 0x21a   :  { %v179_v29 = vpop.xlane.xlu1 %178 }
 0x21b   :  { %v182_v30 = vmul.f32 0.0078125, %v179_v29 }
 0x21d   :  { %v184_v31 = vadd.f32 1e-12, %v182_v30 }
 0x21e   :  { %v181_v32 = vpop.xlane.xlu1 %180 }
 0x21f   :  { %266 = vrsqrt.f32 %v184_v31  ;;  %v183_v33 = vmul.f32 0.0078125, %v181_v32 }
 0x221   :  { %v185_v34 = vadd.f32 1e-12, %v183_v33 }
 0x223   :  { %268 = vrsqrt.f32 %v185_v34 }
 0x229   :  { %v267_v35 = vpop.eup %266 }
 0x22a   :  { %v188_v37 = vmul.f32 %v267_v35, %v174_v23 }
 0x22c   :  { %v197_v39 = vmul.f32 %v224_v36, %v188_v37 }
 0x22d   :  { %v269_v40 = vpop.eup %268 }
 0x22e   :  { %v206_v41 = vadd.f32 %v225_v38, %v197_v39  ;;  %v189_v42 = vmul.f32 %v269_v40, %v175_v27 }
 0x230   :  { %208 = vst [vmem:[%s361_s6] sm:$0xff] %v206_v41  ;;  %v198_v43 = vmul.f32 %v224_v36, %v189_v42 }
 0x232   :  { %v207_v44 = vadd.f32 %v225_v38, %v198_v43 }
 0x234   :  { %209 = vst [vmem:[%s361_s6 + $0x8] sm:$0xff] %v207_v44 }

// kernel: _lambda_.16
= control target key start
LH: loop header
LB: loop body
LE: loop exit
PB: predicated region body
PF: predicated region fallthrough
CT: control target
= control target key end

     0   :  { %s814_s15 = smov 0   ;;  %s816_s16 = smov 0   ;;  %s890_s0 = inlined_call_operand.vmem [shape: bf16[2,8,384], index: 0, kind: input, shape index: {}, may-alias: {0,1,2}]   ;;  %s891_s1 = inlined_call_operand.vmem [shape: bf16[2,8,384], index: 1, kind: input, shape index: {}, may-alias: {0,1,2}]   ;;  %s892_s2 = inlined_call_operand.vmem [shape: bf16[2,8,384], index: 2, kind: input, shape index: {}, may-alias: {0,1,2}]   ;;  %s893_s3 = inlined_call_operand.vmem [shape: f32[2,1,8], index: 3, kind: input, shape index: {}]   ;;  %s894_s4 = inlined_call_operand.vmem [shape: bf16[2,8,128], index: 4, kind: output, shape index: {}]  }
   0x1   :  { %s818_s17 = smov 0  }
   0x2 LB: > { %s26_s18 = sadd.s32 1, %s780_s16  ;;  %p672_p0 = scmp.ge.s32.totalorder %s784_s17, 1  ;;  %s784_s17 = sphi %s818_s17, %s14_s17   ;;  %s780_s16 = sphi %s816_s16, %s896_s16   ;;  %s776_s15 = sphi %s814_s15, %s895_s15  }
   0x3   : > { %p28_p1 = scmp.ge.s32.totalorder %s26_s18, 2  ;;  %p212_p2 = scmp.lt.s32.totalorder %s784_s17, 3 }
   0x5   : > { %s898_s18 = smov (%p28_p1, %s26_s18), 0  ;;  %p213_p3 = pnand %p672_p0, %p212_p2 }
   0x6   : > { %p259_p4 = scmp.lt.s32.totalorder (!%p213_p3), %s776_s15, 1  ;;  %v786_v0 = vmov (!%p213_p3), 0.0   ;;  %vm787_vm0 = vmmov (!%p213_p3), 0   ;;  %vm295_vm1 = vcmask (!%p213_p3), 523264   ;;  %vm350_vm2 = vcmask (!%p213_p3), 64512   ;;  %s788_s29 = smov (!%p213_p3), 64  }
   0x7   : > { %216 = sbr.rel (%p213_p3) target bundleno = 1429 (0x595), region = 36  ;;  %699 = vmatprep.subr.bf16.mxu0 (!%p213_p3), %v786_v0  ;;  %701 = vmatprep.mubr.msk.bf16.mxu0 (!%p213_p3), %vm787_vm0, %v786_v0  ;;  %vm366_vm3 = vcmask (!%p213_p3), 1043456   ;;  %vm411_vm4 = vcmask (!%p213_p3), 519168   ;;  %vm541_vm5 = vcmask (!%p213_p3), 1043968  }
   0x8   : > { %705 = vmatprep.subr.bf16.mxu1 (!%p213_p3), %v786_v0  ;;  %707 = vmatprep.mubr.msk.bf16.mxu1 (!%p213_p3), %vm787_vm0, %v786_v0 }
   0xe   : > { %s900_s15 = smov (!%p259_p4, %s776_s15), 1 }
   0xf   : > { %s837_s19 = smul.u32 12, %s900_s15  ;;  %s282_s28 = scalar_lea.vmem %s893_s3, %s900_s15 }
  0x10   : > { %v680_v5 = vld [vmem:[%s282_s28] ss:$0 sm:$0xff]  ;;  %s676_s7 = sshll.u32 %s900_s15, 2 }
  0x11   : > { %s606_s22 = scalar_lea.vmem %s891_s1, %s837_s19  ;;  %s267_s25 = scalar_lea.vmem %s890_s0, %s837_s19 }
  0x12   : > { %v677_v1 = vld [vmem:[%s606_s22 + $0x4] sm:$0xf]  ;;  %v291_v3 = vld [vmem:[%s267_s25] sm:$0xf]  ;;  %s610_s6 = scalar_lea.vmem %s892_s2, %s837_s19  ;;  %s871_s10 = scalar_lea.vmem %s894_s4, %s676_s7 }
  0x13   : > { %v300_v2 = vsel %vm295_vm1, %v677_v1, 0  ;;  %v683_v12 = vcombine.low %v677_v1, %v677_v1  ;;  %v682_v13 = vcombine.low %v291_v3, %v291_v3  ;;  %v678_v19 = vld [vmem:[%s610_s6 + $0x8] sm:$0xf] }
  0x14   : > { %700 = vmatpush3.bf16.xpose.msra.mxu0 %v300_v2  ;;  %v368_v20 = vsel %vm366_vm3, %v678_v19, 0  ;;  %v685_v40 = vcombine.low %v678_v19, %v678_v19 }
  0x15   : > { %717 = vmatprep.subr.bf16.mxu0 %v786_v0  ;;  %421 = vrot.lane.b32.xlu1 %v683_v12, %s788_s29 }
  0x16   : > { %706 = vmatpush3.bf16.msra.mxu1 %v368_v20 }
  0x17   : > { %711 = vmatprep.subr.bf16.mxu1 %v786_v0 }
  0x19   : > { %416 = vrot.lane.b32.xlu1 %v682_v13, %s788_s29 }
  0x1b   : > { %702 = vmatmul.mubr.msk.bf16.vlgmr.msra.gmra.mrb[0].mxu0 %vm295_vm1, %v291_v3 }
  0x1c   : > { %719 = vmatprep.mubr.msk.bf16.mxu0 %vm787_vm0, %v786_v0 }
  0x87   : > { %v422_v23 = vpop.permute.xlu1 %421 }
  0x88   : > { %v427_v25 = vsel %vm295_vm1, %v422_v23, 0 }
  0x8b   : > { %v417_v27 = vpop.permute.xlu1 %416 }
  0xee   : > { %v336_v4 = vpop.f32.mrb[0].mxu0 }
  0xef   : > { %v342_v6 = vmul.f32 0.125, %v336_v4  ;;  %v703_v7 = vpop.f32.mrb[1].mxu0 }
  0xf0   : > { %v339_v8 = vpop.f32.mrb[2].mxu0 }
  0xf1   : > { %v704_v9 = vpop.f32.mrb[3].mxu0  ;;  %v349_v10 = vadd.f32 %v680_v5, %v342_v6 }
  0xf3   : > { %v351_v11 = vsel %vm350_vm2, %v349_v10, -inf }
  0xf4   : > { %352 = vmax.xlane.f32.xlu0 %v351_v11 }
 0x181   : > { %v353_v14 = vpop.xlane.xlu0 %352 }
 0x182   : > { %v354_v15 = vsub.f32 %v349_v10, %v353_v14 }
 0x184   : > { %v355_v16 = vmul.f32 1.442695, %v354_v15 }
 0x186   : > { %754 = vpow2.f32 %v355_v16 }
 0x190   : > { %v755_v17 = vpop.eup %754 }
 0x191   : > { %v357_v18 = vsel %vm350_vm2, %v755_v17, 0.0 }
 0x192   : > { %358 = vadd.xlane.f32.xlu0 %v357_v18 }
 0x21f   : > { %v359_v21 = vpop.xlane.xlu0 %358 }
 0x220   : > { %756 = vrcp.f32 %v359_v21 }
 0x22a   : > { %v757_v22 = vpop.eup %756 }
 0x22b   : > { %v361_v24 = vmul.f32 %v757_v22, %v755_v17 }
 0x22d   : > { %v362_v26 = vpack.c.bf16 %v361_v24, %v361_v24 }
 0x22f   : > { %708 = vmatmul.mubr.msk.bf16.vlgmr.msra.gmra.mrb[0].mxu1 %vm350_vm2, %v362_v26 }
 0x230   : > { %712 = vmatpush3.bf16.xpose.msra.mxu1 %v427_v25  ;;  %713 = vmatprep.mubr.msk.bf16.mxu1 %vm787_vm0, %v786_v0 }
 0x237   : > { %714 = vmatmul.mubr.msk.bf16.vlgmr.msra.gmra.mrb[4].mxu1 %vm295_vm1, %v417_v27 }
 0x302   : > { %v404_v28 = vpop.f32.mrb[0].mxu1 }
 0x303   : > { %v410_v29 = vpack.c.bf16 %v404_v28, %v404_v28  ;;  %v709_v30 = vpop.f32.mrb[1].mxu1 }
 0x304   : > { %v407_v31 = vpop.f32.mrb[2].mxu1 }
 0x305   : > { %412 = vst.msk [vmem:[%s871_s10] sm:$0xf] %vm411_vm4, %v410_v29  ;;  %v710_v32 = vpop.f32.mrb[3].mxu1 }
 0x30a   : > { %v463_v33 = vpop.f32.mrb[4].mxu1 }
 0x30b   : > { %v469_v34 = vmul.f32 0.125, %v463_v33  ;;  %v715_v35 = vpop.f32.mrb[5].mxu1 }
 0x30c   : > { %v466_v36 = vpop.f32.mrb[6].mxu1 }
 0x30d   : > { %v716_v37 = vpop.f32.mrb[7].mxu1  ;;  %v470_v38 = vadd.f32 %v680_v5, %v469_v34 }
 0x30f   : > { %v471_v39 = vsel %vm350_vm2, %v470_v38, -inf }
 0x310   : > { %472 = vmax.xlane.f32.xlu0 %v471_v39 }
 0x326   : > { %486 = vrot.lane.b32.xlu0 %v685_v40, %s788_s29 }
 0x39d   : > { %v473_v41 = vpop.xlane.xlu0 %472 }
 0x39e   : > { %v474_v42 = vsub.f32 %v470_v38, %v473_v41 }
 0x3a0   : > { %v475_v43 = vmul.f32 1.442695, %v474_v42 }
 0x3a1   : > { %v487_v46 = vpop.permute.xlu0 %486 }
 0x3a2   : > { %758 = vpow2.f32 %v475_v43  ;;  %v492_v47 = vsel %vm366_vm3, %v487_v46, 0 }
 0x3a3   : > { %718 = vmatpush3.bf16.msra.mxu0 %v492_v47 }
 0x3ac   : > { %v759_v44 = vpop.eup %758 }
 0x3ad   : > { %v477_v45 = vsel %vm350_vm2, %v759_v44, 0.0 }
 0x3ae   : > { %478 = vadd.xlane.f32.xlu1 %v477_v45 }
 0x43b   : > { %v479_v48 = vpop.xlane.xlu1 %478 }
 0x43c   : > { %760 = vrcp.f32 %v479_v48 }
 0x446   : > { %v761_v49 = vpop.eup %760 }
 0x447   : > { %v481_v50 = vmul.f32 %v761_v49, %v759_v44 }
 0x449   : > { %v482_v51 = vpack.c.bf16 %v481_v50, %v481_v50 }
 0x44b   : > { %720 = vmatmul.mubr.msk.bf16.vlgmr.msra.gmra.mrb[4].mxu0 %vm350_vm2, %v482_v51 }
 0x51e   : > { %v528_v52 = vpop.f32.mrb[4].mxu0 }
 0x51f   : > { %v690_v53 = vpack.c.bf16 %v528_v52, %v528_v52  ;;  %v721_v54 = vpop.f32.mrb[5].mxu0 }
 0x520   : > { %v531_v55 = vpop.f32.mrb[6].mxu0 }
 0x521   : > { %538 = vrot.lane.b32.xlu0 %v690_v53, %s788_s29  ;;  %v722_v56 = vpop.f32.mrb[7].mxu0 }
 0x593   : > { %v539_v57 = vpop.permute.xlu0 %538 }
 0x594   : > { %542 = vst.msk [vmem:[%s871_s10] sm:$0xf] %vm541_vm5, %v539_v57 }
 0x595 PF: > { %s14_s17 = sadd.s32 1, %s784_s17   ;;  %s895_s15 = smov %s780_s16 }
 0x596   : > { %p11_p5 = scmp.ge.s32.totalorder %s14_s17, 4   ;;  %s896_s16 = smov %s898_s18 }
 0x598   :  { %13 = sbr.rel (!%p11_p5) target bundleno = 2 (0x2), region = 75 }

// kernel: _lambda_.15
= control target key start
LH: loop header
LB: loop body
LE: loop exit
PB: predicated region body
PF: predicated region fallthrough
CT: control target
= control target key end

     0   :  { %v453_v0 = vmov 0.0   ;;  %vm454_vm0 = vmmov 0   ;;  %v455_v3 = vmov 0   ;;  %v306_v27 = vlaneseq  ;;  %s566_s1 = inlined_call_operand.vmem [shape: bf16[128,384], index: 1, kind: input, shape index: {}]   ;;  %s567_s0 = inlined_call_operand.vmem [shape: bf16[16,128], index: 0, kind: input, shape index: {}]   ;;  %s568_s2 = inlined_call_operand.vmem [shape: f32[1,384], index: 2, kind: input, shape index: {}]   ;;  %s569_s3 = inlined_call_operand.vmem [shape: bf16[16,384], index: 3, kind: output, shape index: {}]  }
   0x1   :  { %397 = vmatprep.subr.bf16.mxu1 %v453_v0  ;;  %v420_v1 = vld [vmem:[%s566_s1 + $0x4] ss:$12 sps:$4 sm:$0xff]   ;;  %413 = vmatprep.mubr.msk.bf16.mxu1 %vm454_vm0, %v453_v0  ;;  %v422_v2 = vld [vmem:[%s566_s1 + $0x8] ss:$12 sps:$4 sm:$0xff]   ;;  %v423_v4 = vld [vmem:[%s566_s1] ss:$12 sps:$4 sm:$0xff]  }
   0x2   :  { %231 = vmatprep.mubr.bf16.mxu0 %v455_v3  ;;  %199 = vmatprep.subr.bf16.mxu0 %v420_v1  ;;  %v424_v5 = vld [vmem:[%s566_s1 + $0x1c] ss:$12 sps:$4 sm:$0xff]   ;;  %v426_v6 = vld [vmem:[%s566_s1 + $0x20] ss:$12 sps:$4 sm:$0xff]   ;;  %v427_v7 = vld [vmem:[%s566_s1 + $0x18] ss:$12 sps:$4 sm:$0xff]  }
   0x3   :  { %398 = vmatpush3.bf16.msra.mxu1 %v422_v2  ;;  %200 = vmatpush1.bf16.msra.mxu0 %v423_v4  ;;  %v428_v8 = vld [vmem:[%s566_s1 + $0x34] ss:$12 sps:$4 sm:$0xff]   ;;  %v430_v9 = vld [vmem:[%s566_s1 + $0x38] ss:$12 sps:$4 sm:$0xff]   ;;  %v431_v10 = vld [vmem:[%s566_s1 + $0x30] ss:$12 sps:$4 sm:$0xff]  }
   0x4   :  { %399 = vmatprep.subr.bf16.mxu1 %v453_v0  ;;  %201 = vmatprep.subr.bf16.mxu0 %v424_v5  ;;  %v432_v11 = vld [vmem:[%s566_s1 + $0x4c] ss:$12 sps:$4 sm:$0xff]   ;;  %v434_v12 = vld [vmem:[%s566_s1 + $0x50] ss:$12 sps:$4 sm:$0xff]   ;;  %v435_v13 = vld [vmem:[%s566_s1 + $0x48] ss:$12 sps:$4 sm:$0xff]  }
   0x5   :  { %v436_v14 = vld [vmem:[%s566_s1 + $0x64] ss:$12 sps:$4 sm:$0xff]   ;;  %v438_v15 = vld [vmem:[%s566_s1 + $0x68] ss:$12 sps:$4 sm:$0xff]   ;;  %v439_v16 = vld [vmem:[%s566_s1 + $0x60] ss:$12 sps:$4 sm:$0xff]  }
   0x6   :  { %v440_v17 = vld [vmem:[%s566_s1 + $0x7c] ss:$12 sps:$4 sm:$0xff]   ;;  %v442_v18 = vld [vmem:[%s566_s1 + $0x80] ss:$12 sps:$4 sm:$0xff]   ;;  %v443_v19 = vld [vmem:[%s566_s1 + $0x78] ss:$12 sps:$4 sm:$0xff]  }
   0x7   :  { %400 = vmatpush3.bf16.msra.mxu1 %v426_v6  ;;  %202 = vmatpush1.bf16.msra.mxu0 %v427_v7  ;;  %v444_v20 = vld [vmem:[%s566_s1 + $0x94] ss:$12 sps:$4 sm:$0xff]   ;;  %v446_v21 = vld [vmem:[%s566_s1 + $0x98] ss:$12 sps:$4 sm:$0xff]   ;;  %v447_v22 = vld [vmem:[%s566_s1 + $0x90] ss:$12 sps:$4 sm:$0xff]  }
   0x8   :  { %401 = vmatprep.subr.bf16.mxu1 %v453_v0  ;;  %203 = vmatprep.subr.bf16.mxu0 %v428_v8  ;;  %v448_v23 = vld [vmem:[%s566_s1 + $0xac] ss:$12 sps:$4 sm:$0xff]   ;;  %v450_v24 = vld [vmem:[%s566_s1 + $0xb0] ss:$12 sps:$4 sm:$0xff]   ;;  %v451_v25 = vld [vmem:[%s566_s1 + $0xa8] ss:$12 sps:$4 sm:$0xff]  }
   0x9   :  { %v452_v26 = vld [vmem:[%s567_s0] sm:$0xff]   ;;  %v307_v28 = vshrl.u32 %v306_v27, 7 }
   0xa   :  { %v304_v30 = vld [vmem:[%s568_s2] sm:$0x7] }
   0xb   :  { %402 = vmatpush3.bf16.msra.mxu1 %v430_v9  ;;  %204 = vmatpush1.bf16.msra.mxu0 %v431_v10  ;;  %v316_v29 = vsub.s32 2, %v307_v28  ;;  %v308_v31 = vsub.s32 0, %v307_v28  ;;  %v312_v32 = vsub.s32 1, %v307_v28 }
   0xc   :  { %403 = vmatprep.subr.bf16.mxu1 %v453_v0  ;;  %205 = vmatprep.subr.bf16.mxu0 %v432_v11 }
   0xd   :  { %v317_v33 = vrot.slane %v304_v30, %v316_v29  ;;  %v309_v34 = vrot.slane %v304_v30, %v308_v31  ;;  %v313_v35 = vrot.slane %v304_v30, %v312_v32 }
   0xf   :  { %404 = vmatpush3.bf16.msra.mxu1 %v434_v12  ;;  %206 = vmatpush1.bf16.msra.mxu0 %v435_v13 }
  0x10   :  { %405 = vmatprep.subr.bf16.mxu1 %v453_v0  ;;  %207 = vmatprep.subr.bf16.mxu0 %v436_v14 }
  0x13   :  { %406 = vmatpush3.bf16.msra.mxu1 %v438_v15  ;;  %208 = vmatpush1.bf16.msra.mxu0 %v439_v16 }
  0x14   :  { %407 = vmatprep.subr.bf16.mxu1 %v453_v0  ;;  %209 = vmatprep.subr.bf16.mxu0 %v440_v17 }
  0x17   :  { %408 = vmatpush3.bf16.msra.mxu1 %v442_v18  ;;  %210 = vmatpush1.bf16.msra.mxu0 %v443_v19 }
  0x18   :  { %409 = vmatprep.subr.bf16.mxu1 %v453_v0  ;;  %211 = vmatprep.subr.bf16.mxu0 %v444_v20 }
  0x1b   :  { %410 = vmatpush3.bf16.msra.mxu1 %v446_v21  ;;  %212 = vmatpush1.bf16.msra.mxu0 %v447_v22 }
  0x1c   :  { %411 = vmatprep.subr.bf16.mxu1 %v453_v0  ;;  %213 = vmatprep.subr.bf16.mxu0 %v448_v23 }
  0x1f   :  { %412 = vmatpush3.bf16.msra.mxu1 %v450_v24  ;;  %214 = vmatpush1.bf16.msra.mxu0 %v451_v25 }
  0x22   :  { %414 = vmatmul.mubr.bf16.vlgmr.msra.gmra.mrb[0].mxu1 %v452_v26  ;;  %232 = vmatmul.mubr.bf16.vlgmr.msra.gmra.mrb[0].mxu0 %v452_v26 }
  0xf5   :  { %v276_v36 = vpop.f32.mrb[0].mxu1  ;;  %v233_v38 = vpop.f32.mrb[0].mxu0 }
  0xf6   :  { %v323_v37 = vadd.f32 %v317_v33, %v276_v36  ;;  %v415_v39 = vpop.f32.mrb[1].mxu1  ;;  %v321_v40 = vadd.f32 %v309_v34, %v233_v38  ;;  %v235_v41 = vpop.f32.mrb[1].mxu0 }
  0xf7   :  { %v279_v42 = vpop.f32.mrb[2].mxu1  ;;  %v322_v44 = vadd.f32 %v313_v35, %v235_v41  ;;  %v237_v46 = vpop.f32.mrb[2].mxu0 }
  0xf8   :  { %v385_v43 = vpack.c.bf16 %v323_v37, %v323_v37  ;;  %v326_v45 = vadd.f32 %v317_v33, %v279_v42  ;;  %v416_v47 = vpop.f32.mrb[3].mxu1  ;;  %v324_v48 = vadd.f32 %v309_v34, %v237_v46  ;;  %v239_v49 = vpop.f32.mrb[3].mxu0 }
  0xf9   :  { %v384_v50 = vpack.c.bf16 %v322_v44, %v321_v40  ;;  %v325_v52 = vadd.f32 %v313_v35, %v239_v49 }
  0xfa   :  { %348 = vst [vmem:[%s569_s3 + $0x8] sm:$0xf] %v385_v43  ;;  %v387_v51 = vpack.c.bf16 %v326_v45, %v326_v45 }
  0xfb   :  { %347 = vst [vmem:[%s569_s3] sm:$0xff] %v384_v50  ;;  %v386_v53 = vpack.c.bf16 %v325_v52, %v324_v48 }
  0xfc   :  { %350 = vst [vmem:[%s569_s3 + $0x14] sm:$0xf] %v387_v51 }
  0xfd   :  { %349 = vst [vmem:[%s569_s3 + $0xc] sm:$0xff] %v386_v53 }

// kernel: _lambda_.19
= control target key start
LH: loop header
LB: loop body
LE: loop exit
PB: predicated region body
PF: predicated region fallthrough
CT: control target
= control target key end

     0   :  { %s458_s1 = inlined_call_operand.vmem [shape: bf16[256,128], index: 1, kind: input, shape index: {}]   ;;  %s459_s0 = inlined_call_operand.vmem [shape: bf16[16,256], index: 0, kind: input, shape index: {}]   ;;  %s460_s2 = inlined_call_operand.vmem [shape: f32[1,128], index: 2, kind: input, shape index: {}]   ;;  %s461_s3 = inlined_call_operand.vmem [shape: f32[16,128], index: 3, kind: input, shape index: {}]   ;;  %s462_s4 = inlined_call_operand.vmem [shape: f32[1,128], index: 4, kind: input, shape index: {}]   ;;  %s463_s5 = inlined_call_operand.vmem [shape: f32[1,128], index: 5, kind: input, shape index: {}]   ;;  %s464_s6 = inlined_call_operand.vmem [shape: f32[16,128], index: 6, kind: output, shape index: {}]  }
   0x1   :  { %v325_v0 = vld [vmem:[%s458_s1 + $0x40] sm:$0xff]   ;;  %v327_v2 = vld [vmem:[%s458_s1 + $0x48] sm:$0xff]   ;;  %v329_v4 = vld [vmem:[%s458_s1 + $0x50] sm:$0xff]  }
   0x2   :  { %v326_v1 = vld [vmem:[%s458_s1] sm:$0xff]   ;;  %303 = vmatprep.subr.bf16.mxu0 %v325_v0  ;;  %v328_v3 = vld [vmem:[%s458_s1 + $0x8] sm:$0xff]   ;;  %v330_v5 = vld [vmem:[%s458_s1 + $0x10] sm:$0xff]  }
   0x3   :  { %304 = vmatpush3.bf16.msra.mxu0 %v326_v1  ;;  %v331_v6 = vld [vmem:[%s458_s1 + $0x58] sm:$0xff]   ;;  %v333_v8 = vld [vmem:[%s458_s1 + $0x60] sm:$0xff]   ;;  %v335_v10 = vld [vmem:[%s458_s1 + $0x68] sm:$0xff]  }
   0x4   :  { %305 = vmatprep.subr.bf16.mxu0 %v327_v2  ;;  %v332_v7 = vld [vmem:[%s458_s1 + $0x18] sm:$0xff]   ;;  %v334_v9 = vld [vmem:[%s458_s1 + $0x20] sm:$0xff]   ;;  %v336_v12 = vld [vmem:[%s458_s1 + $0x28] sm:$0xff]  }
   0x5   :  { %v343_v11 = vld [vmem:[%s459_s0 + $0x4] ss:$8 sps:$4 sm:$0xff]   ;;  %v337_v13 = vld [vmem:[%s458_s1 + $0x70] sm:$0xff]   ;;  %v339_v15 = vld [vmem:[%s458_s1 + $0x78] sm:$0xff]  }
   0x6   :  { %204 = vmatprep.mubr.bf16.mxu0 %v343_v11  ;;  %v338_v14 = vld [vmem:[%s458_s1 + $0x30] sm:$0xff]   ;;  %v340_v16 = vld [vmem:[%s458_s1 + $0x38] sm:$0xff]   ;;  %v341_v17 = vld [vmem:[%s459_s0] ss:$8 sps:$4 sm:$0xff]  }
   0x7   :  { %306 = vmatpush3.bf16.msra.mxu0 %v328_v3  ;;  %v300_v20 = vld [vmem:[%s460_s2] ss:$0 sm:$0xff]  ;;  %v232_v29 = vld [vmem:[%s461_s3 + $0x8] sm:$0xff] }
   0x8   :  { %307 = vmatprep.subr.bf16.mxu0 %v329_v4  ;;  %v231_v24 = vld [vmem:[%s461_s3] sm:$0xff] }
   0x9   :  { %v301_v46 = vld [vmem:[%s462_s4] ss:$0 sm:$0xff] }
   0xa   :  { %v302_v48 = vld [vmem:[%s463_s5] ss:$0 sm:$0xff] }
   0xb   :  { %308 = vmatpush3.bf16.msra.mxu0 %v330_v5 }
   0xc   :  { %309 = vmatprep.subr.bf16.mxu0 %v331_v6 }
   0xf   :  { %310 = vmatpush3.bf16.msra.mxu0 %v332_v7 }
  0x10   :  { %311 = vmatprep.subr.bf16.mxu0 %v333_v8 }
  0x13   :  { %312 = vmatpush3.bf16.msra.mxu0 %v334_v9 }
  0x14   :  { %313 = vmatprep.subr.bf16.mxu0 %v335_v10 }
  0x17   :  { %314 = vmatpush3.bf16.msra.mxu0 %v336_v12 }
  0x18   :  { %315 = vmatprep.subr.bf16.mxu0 %v337_v13 }
  0x1b   :  { %316 = vmatpush3.bf16.msra.mxu0 %v338_v14 }
  0x1c   :  { %317 = vmatprep.subr.bf16.mxu0 %v339_v15 }
  0x1f   :  { %318 = vmatpush3.bf16.msra.mxu0 %v340_v16 }
  0x22   :  { %205 = vmatmul.mubr.bf16.vlgmr.msra.gmra.mrb[0].mxu0 %v341_v17 }
  0xf5   :  { %v319_v18 = vpop.f32.mrb[0].mxu0 }
  0xf6   :  { %v320_v19 = vpop.f32.mrb[1].mxu0 }
  0xf7   :  { %v321_v21 = vadd.f32 %v320_v19, %v319_v18  ;;  %v322_v22 = vpop.f32.mrb[2].mxu0 }
  0xf8   :  { %v323_v23 = vpop.f32.mrb[3].mxu0 }
  0xf9   :  { %v229_v25 = vadd.f32 %v321_v21, %v300_v20  ;;  %v324_v26 = vadd.f32 %v323_v23, %v322_v22 }
  0xfb   :  { %v230_v27 = vadd.f32 %v324_v26, %v300_v20  ;;  %v233_v28 = vadd.f32 %v231_v24, %v229_v25 }
  0xfd   :  { %235 = vadd.xlane.f32.xlu0 %v233_v28  ;;  %v234_v30 = vadd.f32 %v232_v29, %v230_v27 }
 0x101   :  { %237 = vadd.xlane.f32.xlu0 %v234_v30 }
 0x18a   :  { %v236_v31 = vpop.xlane.xlu0 %235 }
 0x18b   :  { %v240_v32 = vmul.f32 0.0078125, %v236_v31 }
 0x18d   :  { %v242_v33 = vsub.f32 %v233_v28, %v240_v32 }
 0x18e   :  { %v238_v34 = vpop.xlane.xlu0 %237 }
 0x18f   :  { %v241_v35 = vmul.f32 0.0078125, %v238_v34  ;;  %v244_v36 = vmul.f32 %v242_v33, %v242_v33 }
 0x191   :  { %v243_v37 = vsub.f32 %v234_v30, %v241_v35  ;;  %246 = vadd.xlane.f32.xlu1 %v244_v36 }
 0x193   :  { %v245_v38 = vmul.f32 %v243_v37, %v243_v37 }
 0x195   :  { %248 = vadd.xlane.f32.xlu1 %v245_v38 }
 0x21e   :  { %v247_v39 = vpop.xlane.xlu1 %246 }
 0x21f   :  { %v250_v40 = vmul.f32 0.0078125, %v247_v39 }
 0x221   :  { %v252_v41 = vadd.f32 1e-12, %v250_v40 }
 0x222   :  { %v249_v42 = vpop.xlane.xlu1 %248 }
 0x223   :  { %344 = vrsqrt.f32 %v252_v41  ;;  %v251_v43 = vmul.f32 0.0078125, %v249_v42 }
 0x225   :  { %v253_v44 = vadd.f32 1e-12, %v251_v43 }
 0x227   :  { %346 = vrsqrt.f32 %v253_v44 }
 0x22d   :  { %v345_v45 = vpop.eup %344 }
 0x22e   :  { %v256_v47 = vmul.f32 %v345_v45, %v242_v33 }
 0x230   :  { %v265_v49 = vmul.f32 %v301_v46, %v256_v47 }
 0x231   :  { %v347_v50 = vpop.eup %346 }
 0x232   :  { %v274_v51 = vadd.f32 %v302_v48, %v265_v49  ;;  %v257_v52 = vmul.f32 %v347_v50, %v243_v37 }
 0x234   :  { %276 = vst [vmem:[%s464_s6] sm:$0xff] %v274_v51  ;;  %v266_v53 = vmul.f32 %v301_v46, %v257_v52 }
 0x236   :  { %v275_v54 = vadd.f32 %v302_v48, %v266_v53 }
 0x238   :  { %277 = vst [vmem:[%s464_s6 + $0x8] sm:$0xff] %v275_v54 }

// kernel: _lambda_.18
= control target key start
LH: loop header
LB: loop body
LE: loop exit
PB: predicated region body
PF: predicated region fallthrough
CT: control target
= control target key end

     0   :  { %v314_v1 = vmov 0   ;;  %v191_v18 = vlaneseq  ;;  %s395_s1 = inlined_call_operand.vmem [shape: bf16[128,256], index: 1, kind: input, shape index: {}]   ;;  %s396_s0 = inlined_call_operand.vmem [shape: bf16[16,128], index: 0, kind: input, shape index: {}]   ;;  %s397_s2 = inlined_call_operand.vmem [shape: f32[1,256], index: 2, kind: input, shape index: {}]   ;;  %s398_s3 = inlined_call_operand.vmem [shape: bf16[16,256], index: 3, kind: output, shape index: {}]  }
   0x1   :  { %v281_v0 = vld [vmem:[%s395_s1 + $0x4] ss:$8 sps:$4 sm:$0xff]   ;;  %163 = vmatprep.mubr.bf16.mxu0 %v314_v1  ;;  %v283_v2 = vld [vmem:[%s395_s1] ss:$8 sps:$4 sm:$0xff]   ;;  %v284_v3 = vld [vmem:[%s395_s1 + $0x14] ss:$8 sps:$4 sm:$0xff]  }
   0x2   :  { %131 = vmatprep.subr.bf16.mxu0 %v281_v0  ;;  %v286_v4 = vld [vmem:[%s395_s1 + $0x10] ss:$8 sps:$4 sm:$0xff]   ;;  %v287_v5 = vld [vmem:[%s395_s1 + $0x24] ss:$8 sps:$4 sm:$0xff]   ;;  %v289_v6 = vld [vmem:[%s395_s1 + $0x20] ss:$8 sps:$4 sm:$0xff]  }
   0x3   :  { %132 = vmatpush1.bf16.msra.mxu0 %v283_v2  ;;  %v290_v7 = vld [vmem:[%s395_s1 + $0x34] ss:$8 sps:$4 sm:$0xff]   ;;  %v292_v8 = vld [vmem:[%s395_s1 + $0x30] ss:$8 sps:$4 sm:$0xff]   ;;  %v293_v9 = vld [vmem:[%s395_s1 + $0x44] ss:$8 sps:$4 sm:$0xff]  }
   0x4   :  { %133 = vmatprep.subr.bf16.mxu0 %v284_v3  ;;  %v295_v10 = vld [vmem:[%s395_s1 + $0x40] ss:$8 sps:$4 sm:$0xff]   ;;  %v296_v11 = vld [vmem:[%s395_s1 + $0x54] ss:$8 sps:$4 sm:$0xff]   ;;  %v298_v12 = vld [vmem:[%s395_s1 + $0x50] ss:$8 sps:$4 sm:$0xff]  }
   0x5   :  { %v299_v13 = vld [vmem:[%s395_s1 + $0x64] ss:$8 sps:$4 sm:$0xff]   ;;  %v301_v14 = vld [vmem:[%s395_s1 + $0x60] ss:$8 sps:$4 sm:$0xff]   ;;  %v302_v15 = vld [vmem:[%s395_s1 + $0x74] ss:$8 sps:$4 sm:$0xff]  }
   0x6   :  { %v304_v16 = vld [vmem:[%s395_s1 + $0x70] ss:$8 sps:$4 sm:$0xff]   ;;  %v305_v17 = vld [vmem:[%s396_s0] sm:$0xff]   ;;  %v192_v19 = vshrl.u32 %v191_v18, 7 }
   0x7   :  { %134 = vmatpush1.bf16.msra.mxu0 %v286_v4  ;;  %v189_v21 = vld [vmem:[%s397_s2] sm:$0x3] }
   0x8   :  { %135 = vmatprep.subr.bf16.mxu0 %v287_v5  ;;  %v193_v20 = vsub.s32 0, %v192_v19  ;;  %v197_v22 = vsub.s32 1, %v192_v19 }
   0xa   :  { %v194_v23 = vrot.slane %v189_v21, %v193_v20  ;;  %v198_v24 = vrot.slane %v189_v21, %v197_v22 }
   0xb   :  { %136 = vmatpush1.bf16.msra.mxu0 %v289_v6 }
   0xc   :  { %137 = vmatprep.subr.bf16.mxu0 %v290_v7 }
   0xf   :  { %138 = vmatpush1.bf16.msra.mxu0 %v292_v8 }
  0x10   :  { %139 = vmatprep.subr.bf16.mxu0 %v293_v9 }
  0x13   :  { %140 = vmatpush1.bf16.msra.mxu0 %v295_v10 }
  0x14   :  { %141 = vmatprep.subr.bf16.mxu0 %v296_v11 }
  0x17   :  { %142 = vmatpush1.bf16.msra.mxu0 %v298_v12 }
  0x18   :  { %143 = vmatprep.subr.bf16.mxu0 %v299_v13 }
  0x1b   :  { %144 = vmatpush1.bf16.msra.mxu0 %v301_v14 }
  0x1c   :  { %145 = vmatprep.subr.bf16.mxu0 %v302_v15 }
  0x1f   :  { %146 = vmatpush1.bf16.msra.mxu0 %v304_v16 }
  0x22   :  { %164 = vmatmul.mubr.bf16.vlgmr.msra.gmra.mrb[0].mxu0 %v305_v17 }
  0xf5   :  { %v165_v25 = vpop.f32.mrb[0].mxu0 }
  0xf6   :  { %v201_v26 = vadd.f32 %v194_v23, %v165_v25  ;;  %v167_v27 = vpop.f32.mrb[1].mxu0 }
  0xf7   :  { %v202_v28 = vadd.f32 %v198_v24, %v167_v27  ;;  %v169_v29 = vpop.f32.mrb[2].mxu0 }
  0xf8   :  { %v205_v30 = vmul.f32 %v201_v26, %v201_v26  ;;  %v203_v31 = vadd.f32 %v194_v23, %v169_v29  ;;  %v171_v32 = vpop.f32.mrb[3].mxu0 }
  0xf9   :  { %v206_v33 = vmul.f32 %v202_v28, %v202_v28  ;;  %v204_v34 = vadd.f32 %v198_v24, %v171_v32 }
  0xfa   :  { %v209_v35 = vmul.f32 %v205_v30, %v201_v26  ;;  %v207_v36 = vmul.f32 %v203_v31, %v203_v31 }
  0xfb   :  { %v210_v37 = vmul.f32 %v206_v33, %v202_v28  ;;  %v208_v38 = vmul.f32 %v204_v34, %v204_v34 }
  0xfc   :  { %v213_v39 = vmul.f32 0.044715, %v209_v35  ;;  %v211_v40 = vmul.f32 %v207_v36, %v203_v31 }
  0xfd   :  { %v214_v41 = vmul.f32 0.044715, %v210_v37  ;;  %v212_v42 = vmul.f32 %v208_v38, %v204_v34 }
  0xfe   :  { %v217_v43 = vadd.f32 %v213_v39, %v201_v26  ;;  %v215_v44 = vmul.f32 0.044715, %v211_v40 }
  0xff   :  { %v218_v45 = vadd.f32 %v214_v41, %v202_v28  ;;  %v216_v46 = vmul.f32 0.044715, %v212_v42 }
 0x100   :  { %v221_v47 = vmul.f32 0.7978846, %v217_v43  ;;  %v219_v48 = vadd.f32 %v215_v44, %v203_v31 }
 0x101   :  { %v222_v49 = vmul.f32 0.7978846, %v218_v45  ;;  %v220_v50 = vadd.f32 %v216_v46, %v204_v34 }
 0x102   :  { %306 = vtanh.f32 %v221_v47  ;;  %v223_v51 = vmul.f32 0.7978846, %v219_v48 }
 0x103   :  { %308 = vtanh.f32 %v222_v49  ;;  %v224_v52 = vmul.f32 0.7978846, %v220_v50 }
 0x104   :  { %310 = vtanh.f32 %v223_v51 }
 0x105   :  { %312 = vtanh.f32 %v224_v52 }
 0x10c   :  { %v307_v53 = vpop.eup %306 }
 0x10d   :  { %v309_v54 = vpop.eup %308  ;;  %v229_v55 = vadd.f32 1.0, %v307_v53 }
 0x10e   :  { %v311_v56 = vpop.eup %310  ;;  %v230_v57 = vadd.f32 1.0, %v309_v54 }
 0x10f   :  { %v313_v58 = vpop.eup %312  ;;  %v233_v59 = vmul.f32 0.5, %v229_v55  ;;  %v231_v60 = vadd.f32 1.0, %v311_v56 }
 0x110   :  { %v234_v61 = vmul.f32 0.5, %v230_v57  ;;  %v232_v62 = vadd.f32 1.0, %v313_v58 }
 0x111   :  { %v237_v63 = vmul.f32 %v233_v59, %v201_v26  ;;  %v235_v0 = vmul.f32 0.5, %v231_v60 }
 0x112   :  { %v238_v1 = vmul.f32 %v234_v61, %v202_v28  ;;  %v236_v2 = vmul.f32 0.5, %v232_v62 }
 0x113   :  { %v239_v3 = vmul.f32 %v235_v0, %v203_v31 }
 0x114   :  { %v278_v4 = vpack.c.bf16 %v238_v1, %v237_v63  ;;  %v240_v5 = vmul.f32 %v236_v2, %v204_v34 }
 0x116   :  { %253 = vst [vmem:[%s398_s3] sm:$0xff] %v278_v4  ;;  %v279_v6 = vpack.c.bf16 %v240_v5, %v239_v3 }
 0x118   :  { %254 = vst [vmem:[%s398_s3 + $0x8] sm:$0xff] %v279_v6 }

// kernel: _lambda_.25
= control target key start
LH: loop header
LB: loop body
LE: loop exit
PB: predicated region body
PF: predicated region fallthrough
CT: control target
= control target key end

     0   :  { %v473_v1 = vmov 0   ;;  %v350_v34 = vlaneseq  ;;  %s620_s1 = inlined_call_operand.vmem [shape: bf16[128,512], index: 1, kind: input, shape index: {}]   ;;  %s621_s0 = inlined_call_operand.vmem [shape: bf16[16,128], index: 0, kind: input, shape index: {}]   ;;  %s622_s2 = inlined_call_operand.vmem [shape: f32[1,512], index: 2, kind: input, shape index: {}]   ;;  %s623_s3 = inlined_call_operand.vmem [shape: f32[16,512], index: 3, kind: output, shape index: {}]  }
   0x1   :  { %v424_v0 = vld [vmem:[%s620_s1 + $0x4] ss:$16 sps:$4 sm:$0xff]   ;;  %267 = vmatprep.mubr.bf16.mxu0 %v473_v1  ;;  %310 = vmatprep.mubr.bf16.mxu1 %v473_v1  ;;  %v426_v2 = vld [vmem:[%s620_s1 + $0xc] ss:$16 sps:$4 sm:$0xff]   ;;  %v428_v3 = vld [vmem:[%s620_s1] ss:$16 sps:$4 sm:$0xff]  }
   0x2   :  { %235 = vmatprep.subr.bf16.mxu0 %v424_v0  ;;  %v429_v4 = vld [vmem:[%s620_s1 + $0x8] ss:$16 sps:$4 sm:$0xff]   ;;  %278 = vmatprep.subr.bf16.mxu1 %v426_v2  ;;  %v430_v5 = vld [vmem:[%s620_s1 + $0x24] ss:$16 sps:$4 sm:$0xff]   ;;  %v432_v6 = vld [vmem:[%s620_s1 + $0x2c] ss:$16 sps:$4 sm:$0xff]  }
   0x3   :  { %236 = vmatpush1.bf16.msra.mxu0 %v428_v3  ;;  %279 = vmatpush1.bf16.msra.mxu1 %v429_v4  ;;  %v434_v7 = vld [vmem:[%s620_s1 + $0x20] ss:$16 sps:$4 sm:$0xff]   ;;  %v435_v8 = vld [vmem:[%s620_s1 + $0x28] ss:$16 sps:$4 sm:$0xff]   ;;  %v436_v9 = vld [vmem:[%s620_s1 + $0x44] ss:$16 sps:$4 sm:$0xff]  }
   0x4   :  { %237 = vmatprep.subr.bf16.mxu0 %v430_v5  ;;  %280 = vmatprep.subr.bf16.mxu1 %v432_v6  ;;  %v438_v10 = vld [vmem:[%s620_s1 + $0x4c] ss:$16 sps:$4 sm:$0xff]   ;;  %v440_v11 = vld [vmem:[%s620_s1 + $0x40] ss:$16 sps:$4 sm:$0xff]   ;;  %v441_v12 = vld [vmem:[%s620_s1 + $0x48] ss:$16 sps:$4 sm:$0xff]  }
   0x5   :  { %v442_v13 = vld [vmem:[%s620_s1 + $0x64] ss:$16 sps:$4 sm:$0xff]   ;;  %v444_v14 = vld [vmem:[%s620_s1 + $0x6c] ss:$16 sps:$4 sm:$0xff]   ;;  %v446_v15 = vld [vmem:[%s620_s1 + $0x60] ss:$16 sps:$4 sm:$0xff]  }
   0x6   :  { %v447_v16 = vld [vmem:[%s620_s1 + $0x68] ss:$16 sps:$4 sm:$0xff]   ;;  %v448_v17 = vld [vmem:[%s620_s1 + $0x84] ss:$16 sps:$4 sm:$0xff]   ;;  %v450_v18 = vld [vmem:[%s620_s1 + $0x8c] ss:$16 sps:$4 sm:$0xff]  }
   0x7   :  { %238 = vmatpush1.bf16.msra.mxu0 %v434_v7  ;;  %281 = vmatpush1.bf16.msra.mxu1 %v435_v8  ;;  %v452_v19 = vld [vmem:[%s620_s1 + $0x80] ss:$16 sps:$4 sm:$0xff]   ;;  %v453_v20 = vld [vmem:[%s620_s1 + $0x88] ss:$16 sps:$4 sm:$0xff]   ;;  %v454_v21 = vld [vmem:[%s620_s1 + $0xa4] ss:$16 sps:$4 sm:$0xff]  }
   0x8   :  { %239 = vmatprep.subr.bf16.mxu0 %v436_v9  ;;  %282 = vmatprep.subr.bf16.mxu1 %v438_v10  ;;  %v456_v22 = vld [vmem:[%s620_s1 + $0xac] ss:$16 sps:$4 sm:$0xff]   ;;  %v458_v23 = vld [vmem:[%s620_s1 + $0xa0] ss:$16 sps:$4 sm:$0xff]   ;;  %v459_v24 = vld [vmem:[%s620_s1 + $0xa8] ss:$16 sps:$4 sm:$0xff]  }
   0x9   :  { %v460_v25 = vld [vmem:[%s620_s1 + $0xc4] ss:$16 sps:$4 sm:$0xff]   ;;  %v462_v26 = vld [vmem:[%s620_s1 + $0xcc] ss:$16 sps:$4 sm:$0xff]   ;;  %v464_v27 = vld [vmem:[%s620_s1 + $0xc0] ss:$16 sps:$4 sm:$0xff]  }
   0xa   :  { %v465_v28 = vld [vmem:[%s620_s1 + $0xc8] ss:$16 sps:$4 sm:$0xff]   ;;  %v466_v29 = vld [vmem:[%s620_s1 + $0xe4] ss:$16 sps:$4 sm:$0xff]   ;;  %v468_v30 = vld [vmem:[%s620_s1 + $0xec] ss:$16 sps:$4 sm:$0xff]  }
   0xb   :  { %240 = vmatpush1.bf16.msra.mxu0 %v440_v11  ;;  %283 = vmatpush1.bf16.msra.mxu1 %v441_v12  ;;  %v470_v31 = vld [vmem:[%s620_s1 + $0xe0] ss:$16 sps:$4 sm:$0xff]   ;;  %v471_v32 = vld [vmem:[%s620_s1 + $0xe8] ss:$16 sps:$4 sm:$0xff]   ;;  %v351_v35 = vshrl.u32 %v350_v34, 7 }
   0xc   :  { %241 = vmatprep.subr.bf16.mxu0 %v442_v13  ;;  %284 = vmatprep.subr.bf16.mxu1 %v444_v14  ;;  %v472_v33 = vld [vmem:[%s621_s0] sm:$0xff]  }
   0xd   :  { %v352_v36 = vsub.s32 0, %v351_v35  ;;  %v360_v37 = vsub.s32 2, %v351_v35  ;;  %v348_v38 = vld [vmem:[%s622_s2] sm:$0xf]  ;;  %v356_v39 = vsub.s32 1, %v351_v35  ;;  %v364_v40 = vsub.s32 3, %v351_v35 }
   0xf   :  { %242 = vmatpush1.bf16.msra.mxu0 %v446_v15  ;;  %285 = vmatpush1.bf16.msra.mxu1 %v447_v16  ;;  %v353_v41 = vrot.slane %v348_v38, %v352_v36  ;;  %v361_v42 = vrot.slane %v348_v38, %v360_v37  ;;  %v357_v43 = vrot.slane %v348_v38, %v356_v39 }
  0x10   :  { %243 = vmatprep.subr.bf16.mxu0 %v448_v17  ;;  %286 = vmatprep.subr.bf16.mxu1 %v450_v18  ;;  %v365_v44 = vrot.slane %v348_v38, %v364_v40 }
  0x13   :  { %244 = vmatpush1.bf16.msra.mxu0 %v452_v19  ;;  %287 = vmatpush1.bf16.msra.mxu1 %v453_v20 }
  0x14   :  { %245 = vmatprep.subr.bf16.mxu0 %v454_v21  ;;  %288 = vmatprep.subr.bf16.mxu1 %v456_v22 }
  0x17   :  { %246 = vmatpush1.bf16.msra.mxu0 %v458_v23  ;;  %289 = vmatpush1.bf16.msra.mxu1 %v459_v24 }
  0x18   :  { %247 = vmatprep.subr.bf16.mxu0 %v460_v25  ;;  %290 = vmatprep.subr.bf16.mxu1 %v462_v26 }
  0x1b   :  { %248 = vmatpush1.bf16.msra.mxu0 %v464_v27  ;;  %291 = vmatpush1.bf16.msra.mxu1 %v465_v28 }
  0x1c   :  { %249 = vmatprep.subr.bf16.mxu0 %v466_v29  ;;  %292 = vmatprep.subr.bf16.mxu1 %v468_v30 }
  0x1f   :  { %250 = vmatpush1.bf16.msra.mxu0 %v470_v31  ;;  %293 = vmatpush1.bf16.msra.mxu1 %v471_v32 }
  0x22   :  { %268 = vmatmul.mubr.bf16.vlgmr.msra.gmra.mrb[0].mxu0 %v472_v33  ;;  %311 = vmatmul.mubr.bf16.vlgmr.msra.gmra.mrb[0].mxu1 %v472_v33 }
  0xf5   :  { %v269_v45 = vpop.f32.mrb[0].mxu0  ;;  %v312_v46 = vpop.f32.mrb[0].mxu1 }
  0xf6   :  { %v370_v47 = vadd.f32 %v353_v41, %v269_v45  ;;  %v372_v48 = vadd.f32 %v361_v42, %v312_v46  ;;  %v271_v49 = vpop.f32.mrb[1].mxu0  ;;  %v314_v50 = vpop.f32.mrb[1].mxu1 }
  0xf7   :  { %v371_v51 = vadd.f32 %v357_v43, %v271_v49  ;;  %v373_v52 = vadd.f32 %v365_v44, %v314_v50  ;;  %v273_v53 = vpop.f32.mrb[2].mxu0  ;;  %v316_v54 = vpop.f32.mrb[2].mxu1 }
  0xf8   :  { %378 = vst [vmem:[%s623_s3] sm:$0xff] %v370_v47  ;;  %380 = vst [vmem:[%s623_s3 + $0x10] sm:$0xff] %v372_v48  ;;  %v374_v55 = vadd.f32 %v353_v41, %v273_v53  ;;  %v376_v56 = vadd.f32 %v361_v42, %v316_v54  ;;  %v275_v57 = vpop.f32.mrb[3].mxu0  ;;  %v318_v58 = vpop.f32.mrb[3].mxu1 }
  0xf9   :  { %379 = vst [vmem:[%s623_s3 + $0x8] sm:$0xff] %v371_v51  ;;  %381 = vst [vmem:[%s623_s3 + $0x18] sm:$0xff] %v373_v52  ;;  %v375_v59 = vadd.f32 %v357_v43, %v275_v57  ;;  %v377_v60 = vadd.f32 %v365_v44, %v318_v58 }
  0xfa   :  { %382 = vst [vmem:[%s623_s3 + $0x20] sm:$0xff] %v374_v55  ;;  %384 = vst [vmem:[%s623_s3 + $0x30] sm:$0xff] %v376_v56 }
  0xfb   :  { %383 = vst [vmem:[%s623_s3 + $0x28] sm:$0xff] %v375_v59  ;;  %385 = vst [vmem:[%s623_s3 + $0x38] sm:$0xff] %v377_v60 }

// kernel: _lambda_.26
= control target key start
LH: loop header
LB: loop body
LE: loop exit
PB: predicated region body
PF: predicated region fallthrough
CT: control target
= control target key end

     0   :  { %s1826_s9 = smov 0   ;;  %s1828_s10 = smov 0   ;;  %s2149_s0 = inlined_call_operand.vmem [shape: f32[8,2,512], index: 0, kind: input, shape index: {}]   ;;  %s2150_s1 = inlined_call_operand.vmem [shape: bf16[2,64,256], index: 1, kind: input, shape index: {}]   ;;  %s2151_s2 = inlined_call_operand.vmem [shape: f32[2,8,2,64], index: 2, kind: output, shape index: {}]  }
   0x1   :  { %s1830_s11 = smov 0   ;;  %s1832_s12 = smov 0  }
   0x2   :  { %s1834_s13 = smov 0  }
   0x3 LB: > { %s24_s14 = sadd.s32 1, %s1801_s12  ;;  %p46_p1 = scmp.ne.s32.totalorder %s1793_s10, %s1789_s9  ;;  %s1805_s13 = sphi %s1834_s13, %s12_s13   ;;  %s1801_s12 = sphi %s1832_s12, %s2155_s12   ;;  %s1797_s11 = sphi %s1830_s11, %s2154_s11   ;;  %s1793_s10 = sphi %s1828_s10, %s2153_s10   ;;  %s1789_s9 = sphi %s1826_s9, %s2152_s9  }
   0x4   : > { %p26_p0 = scmp.ge.s32.totalorder %s24_s14, 2  ;;  %p47_p2 = scmp.eq.s32.totalorder %s1805_s13, 0 }
   0x5   : > { %s39_s16 = sadd.s32 1, %s1793_s10  ;;  %p1531_p5 = scmp.ge.s32.totalorder %s1805_s13, 2 }
   0x6   : > { %s2157_s14 = smov (%p26_p0, %s24_s14), 0  ;;  %p48_p3 = por %p47_p2, %p46_p1 }
   0x7   : > { %s35_s15 = ssub.s32 %s1801_s12, %s2157_s14  ;;  %132 = sbr.rel (%p1531_p5) target bundleno = 23 (0x17), region = 16 }
   0x8   : > { %p37_p4 = scmp.eq.s32.totalorder %s35_s15, 0 }
   0xa   : > { %s1861_s17 = scalar_select %p37_p4, %s1793_s10, %s39_s16  }
   0xe   : > { %135 = sbr.rel (!%p48_p3) target bundleno = 23 (0x17), region = 20  ;;  %s137_s18 = sand.u32 (%p48_p3), 1, %s1793_s10  }
   0xf   : > { %s1604_s19 = sshll.u32 (%p48_p3), %s1801_s12, 2  ;;  %s1532_s20 = sshll.u32 (%p48_p3), %s137_s18, 5 }
  0x10   : > { %s148_s23 = scalar_lea.vmem (%p48_p3), %s2149_s0, %s1604_s19  ;;  %s139_s24 = scalar_lea.vmem (%p48_p3), [#allocation4], %s1532_s20 }
  0x11   : > { %v164_v0 = vld [vmem:[%s148_s23] sm:$0xf] (%p48_p3)  ;;  %v166_v1 = vld [vmem:[%s148_s23 + $0x8] sm:$0xf] (%p48_p3)  ;;  %v168_v2 = vld [vmem:[%s148_s23 + $0x10] sm:$0xf] (%p48_p3) }
  0x12   : > { %165 = vst [vmem:[%s139_s24] sm:$0xf] (%p48_p3), %v164_v0  ;;  %167 = vst [vmem:[%s139_s24 + $0x4] sm:$0xf] (%p48_p3), %v166_v1  ;;  %v170_v3 = vld [vmem:[%s148_s23 + $0x18] sm:$0xf] (%p48_p3) }
  0x13   : > { %v172_v4 = vld [vmem:[%s148_s23 + $0x20] sm:$0xf] (%p48_p3)  ;;  %169 = vst [vmem:[%s139_s24 + $0x8] sm:$0xf] (%p48_p3), %v168_v2  ;;  %171 = vst [vmem:[%s139_s24 + $0xc] sm:$0xf] (%p48_p3), %v170_v3 }
  0x14   : > { %173 = vst [vmem:[%s139_s24 + $0x10] sm:$0xf] (%p48_p3), %v172_v4  ;;  %v174_v5 = vld [vmem:[%s148_s23 + $0x28] sm:$0xf] (%p48_p3)  ;;  %v176_v6 = vld [vmem:[%s148_s23 + $0x30] sm:$0xf] (%p48_p3) }
  0x15   : > { %v178_v7 = vld [vmem:[%s148_s23 + $0x38] sm:$0xf]  ;;  %175 = vst [vmem:[%s139_s24 + $0x14] sm:$0xf] %v174_v5  ;;  %177 = vst [vmem:[%s139_s24 + $0x18] sm:$0xf] %v176_v6 }
  0x16   : > { %179 = vst [vmem:[%s139_s24 + $0x1c] sm:$0xf] %v178_v7 }
  0x17 PF: > { %p1536_p6 = scmp.ge.s32.totalorder %s1805_s13, 1  ;;  %p225_p7 = scmp.lt.s32.totalorder %s1805_s13, 3 }
  0x19   : > { %p226_p8 = pnand %p1536_p6, %p225_p7 }
  0x1a   : > { %p270_p9 = scmp.lt.s32.totalorder (!%p226_p8), %s1797_s11, 1  ;;  %vm296_vm0 = vcmask (!%p226_p8), 517120   ;;  %v1807_v8 = vmov (!%p226_p8), 0   ;;  %v1808_v9 = vmov (!%p226_p8), 0.0   ;;  %s1809_s30 = smov (!%p226_p8), 64   ;;  %vm354_vm1 = vcmask (!%p226_p8), 523264  }
  0x1b   : > { %229 = sbr.rel (%p226_p8) target bundleno = 4062 (0xfde), region = 65  ;;  %390 = vmatprep.mubr.bf16.mxu0 (!%p226_p8), %v1807_v8  ;;  %297 = vst.msk [vmem:[#allocation2] sm:$0x3] (!%p226_p8), %vm296_vm0, %v1808_v9  ;;  %298 = vst.msk [vmem:[#allocation3] sm:$0x3] (!%p226_p8), %vm296_vm0, %v1808_v9  ;;  %516 = vmatprep.mubr.bf16.mxu1 (!%p226_p8), %v1807_v8  ;;  %s232_s3 = sand.u32 (!%p226_p8), 1, %s1789_s9   ;;  %v405_v23 = vlaneseq (!%p226_p8) }
  0x1c   : > { %v1810_v21 = vmov (!%p226_p8), 1983009808   ;;  %s1537_s4 = sshll.u32 (!%p226_p8), %s232_s3, 5  ;;  %s1607_s5 = smul.u32 (!%p226_p8), 28, %s1797_s11 }
  0x1d   : > { %v403_v22 = vunpack.c.l.s4 (!%p226_p8), %v1810_v21  ;;  %v406_v25 = vshrl.u32 (!%p226_p8), %v405_v23, 7  ;;  %s1932_s6 = scalar_lea.vmem (!%p226_p8), [#allocation4], %s1537_s4  ;;  %s1543_s9 = smul.u32 (!%p226_p8), 14, %s1797_s11 }
  0x1e   : > { %s310_s7 = scalar_lea.vmem (!%p226_p8), %s1932_s6, %s1607_s5 [#allocation4]  ;;  %s1557_s20 = sshll.u32 (!%p226_p8), %s1797_s11, 1 }
  0x1f   : > { %v404_v24 = vunpack.c.0.s8 (!%p226_p8), %v403_v22  ;;  %v311_v32 = vld [vmem:[%s310_s7] sm:$0xf] (!%p226_p8)  ;;  %s1965_s21 = smul.u32 (!%p226_p8), 7, %s1797_s11  ;;  %s1967_s22 = ssub.s32 (!%p226_p8), 1, %s1557_s20 }
  0x20   : > { %s1564_s27 = sshll.u32 (!%p226_p8), %s1967_s22, 1  ;;  %s721_s7 = smul.u32 (!%p226_p8), 3, %s1967_s22 }
  0x21   : > { %v1930_v27 = vsub.s32 (!%p226_p8), %v404_v24, %v406_v25  ;;  %s1971_s23 = sadd.s32 (!%p226_p8), %s1967_s22, %s1965_s21  ;;  %s1999_s28 = sadd.s32 (!%p226_p8), %s1564_s27, %s1965_s21 }
  0x22   : > { %s1877_s25 = scalar_select %p270_p9, %s1797_s11, 1  ;;  %v1556_v15 = vld.sshfl [vmem:[#allocation3] sm:$0x3 pattern:$0x76325410] }
  0x23   : > { %440 = vrot.lane.b32.xlu0 %v1556_v15, %s1809_s30  ;;  %v312_v19 = vld [vmem:[#allocation2] sm:$0x3]  ;;  %s1608_s24 = sshll.u32 %s1971_s23, 2  ;;  %s1558_s11 = sshll.u32 %s1971_s23, 1 }
  0x24   : > { %s1605_s26 = sshll.u32 %s1877_s25, 6  ;;  %v313_v20 = vpack.c.bf16 %v312_v19, %v312_v19  ;;  %s1606_s8 = sshll.u32 %s1877_s25, 4 }
  0x25   : > { %s274_s29 = scalar_lea.vmem %s2150_s1, %s1605_s26  ;;  %s1947_s18 = scalar_lea.vmem %s2151_s2, %s1606_s8 }
  0x26   : > { %v1883_v10 = vld [vmem:[%s274_s29 + $0x4] ss:$8 sps:$4 sm:$0xff]   ;;  %v1885_v11 = vld [vmem:[%s274_s29] ss:$8 sps:$4 sm:$0xff]   ;;  %v1888_v12 = vld [vmem:[%s274_s29 + $0x14] ss:$8 sps:$4 sm:$0xff]   ;;  %s470_s19 = scalar_lea.vmem %s1947_s18, %s1543_s9  ;;  %s477_s25 = scalar_lea.vmem %s1932_s6, %s1608_s24 [#allocation4] }
  0x27   : > { %358 = vmatprep.subr.bf16.mxu0 %v1883_v10  ;;  %484 = vmatprep.subr.bf16.mxu1 %v1883_v10  ;;  %v1892_v13 = vld [vmem:[%s274_s29 + $0x10] ss:$8 sps:$4 sm:$0xff]   ;;  %v1896_v14 = vld [vmem:[%s274_s29 + $0x24] ss:$8 sps:$4 sm:$0xff]   ;;  %v1900_v16 = vld [vmem:[%s274_s29 + $0x20] ss:$8 sps:$4 sm:$0xff]   ;;  %s595_s26 = scalar_lea.vmem %s1947_s18, %s1558_s11  ;;  %s2027_s8 = sadd.s32 %s721_s7, %s1965_s21 }
  0x28   : > { %359 = vmatpush1.bf16.msra.mxu0 %v1885_v11  ;;  %485 = vmatpush1.bf16.msra.mxu1 %v1885_v11  ;;  %v1904_v17 = vld [vmem:[%s274_s29 + $0x34] ss:$8 sps:$4 sm:$0xff]   ;;  %v1909_v18 = vld [vmem:[%s274_s29 + $0x30] ss:$8 sps:$4 sm:$0xff]   ;;  %v478_v1 = vld [vmem:[%s477_s25] sm:$0xf] }
  0x29   : > { %360 = vmatprep.subr.bf16.mxu0 %v1888_v12  ;;  %486 = vmatprep.subr.bf16.mxu1 %v1888_v12  ;;  %s1609_s29 = sshll.u32 %s1999_s28, 2  ;;  %s1565_s4 = sshll.u32 %s1999_s28, 1 }
  0x2a   : > { %s601_s3 = scalar_lea.vmem %s1932_s6, %s1609_s29 [#allocation4]  ;;  %s719_s5 = scalar_lea.vmem %s1947_s18, %s1565_s4 }
  0x2b   : > { %s1610_s9 = sshll.u32 %s2027_s8, 2  ;;  %s1571_s16 = sshll.u32 %s2027_s8, 1 }
  0x2c   : > { %361 = vmatpush1.bf16.msra.mxu0 %v1892_v13  ;;  %487 = vmatpush1.bf16.msra.mxu1 %v1892_v13  ;;  %s725_s15 = scalar_lea.vmem %s1932_s6, %s1610_s9 [#allocation4]  ;;  %s1577_s20 = sshll.u32 %s1967_s22, 2 }
  0x2d   : > { %362 = vmatprep.subr.bf16.mxu0 %v1896_v14  ;;  %488 = vmatprep.subr.bf16.mxu1 %v1896_v14  ;;  %s2054_s23 = sadd.s32 %s1577_s20, %s1965_s21  ;;  %s969_s27 = smul.u32 5, %s1967_s22 }
  0x2e   : > { %s1611_s24 = sshll.u32 %s2054_s23, 2  ;;  %s1578_s11 = sshll.u32 %s2054_s23, 1 }
  0x2f   : > { %s849_s25 = scalar_lea.vmem %s1932_s6, %s1611_s24 [#allocation4]  ;;  %s2081_s28 = sadd.s32 %s969_s27, %s1965_s21 }
  0x30   : > { %363 = vmatpush1.bf16.msra.mxu0 %v1900_v16  ;;  %489 = vmatpush1.bf16.msra.mxu1 %v1900_v16  ;;  %s1612_s29 = sshll.u32 %s2081_s28, 2  ;;  %s1584_s4 = sshll.u32 %s2081_s28, 1 }
  0x31   : > { %364 = vmatprep.subr.bf16.mxu0 %v1904_v17  ;;  %490 = vmatprep.subr.bf16.mxu1 %v1904_v17  ;;  %s1093_s7 = smul.u32 6, %s1967_s22 }
  0x32   : > { %s1217_s20 = smul.u32 7, %s1967_s22 }
  0x33   : > { %s2100_s8 = sadd.s32 %s1093_s7, %s1965_s21 }
  0x34   : > { %365 = vmatpush1.bf16.msra.mxu0 %v1909_v18  ;;  %491 = vmatpush1.bf16.msra.mxu1 %v1909_v18  ;;  %s1613_s9 = sshll.u32 %s2100_s8, 2  ;;  %s2119_s23 = sadd.s32 %s1217_s20, %s1965_s21 }
  0x35   : > { %608 = vmatprep.subr.bf16.mxu0 %v1883_v10  ;;  %732 = vmatprep.subr.bf16.mxu1 %v1883_v10  ;;  %s1614_s24 = sshll.u32 %s2119_s23, 2 }
  0x37   : > { %1553 = vmatmul.mubr.msk.bf16.vlgmr.msra.gmra.mrb[0].mxu0 %vm354_vm1, %v313_v20 }
  0x38   : > { %609 = vmatpush1.bf16.msra.mxu0 %v1885_v11  ;;  %640 = vmatprep.mubr.bf16.mxu0 %v1807_v8 }
  0x39   : > { %610 = vmatprep.subr.bf16.mxu0 %v1888_v12 }
  0x3c   : > { %611 = vmatpush1.bf16.msra.mxu0 %v1892_v13 }
  0x3d   : > { %612 = vmatprep.subr.bf16.mxu0 %v1896_v14 }
  0x40   : > { %613 = vmatpush1.bf16.msra.mxu0 %v1900_v16 }
  0x41   : > { %614 = vmatprep.subr.bf16.mxu0 %v1904_v17 }
  0x44   : > { %615 = vmatpush1.bf16.msra.mxu0 %v1909_v18 }
  0x45   : > { %856 = vmatprep.subr.bf16.mxu0 %v1883_v10 }
  0x95   : > { %v441_v42 = vpop.permute.xlu0 %440 }
 0x10a   : > { %v392_v26 = vpop.f32.mrb[0].mxu0 }
 0x10b   : > { %v394_v28 = vpop.f32.mrb[1].mxu0 }
 0x10c   : > { %v401_v29 = vcombine.low %v392_v26, %v394_v28  ;;  %v396_v30 = vpop.f32.mrb[2].mxu0 }
 0x10d   : > { %v397_v31 = vpop.f32.mrb[3].mxu0 }
 0x10e   : > { %v408_v33 = vrot.slane %v401_v29, %v1930_v27 }
 0x110   : > { %v410_v34 = vadd.f32 %v408_v33, %v311_v32 }
 0x112   : > { %421 = vrot.lane.b32.xlu1 %v410_v34, %s1809_s30  ;;  %v1554_v35 = vmul.f32 -1.442695, %v410_v34  ;;  %v418_v36 = vrot.slane %v410_v34, 2 }
 0x114   : > { %1671 = vpow2.f32 %v1554_v35 }
 0x115   : > { %1673 = vtanh.f32 %v418_v36 }
 0x11e   : > { %v1672_v37 = vpop.eup %1671 }
 0x11f   : > { %v414_v38 = vadd.f32 1.0, %v1672_v37  ;;  %v1674_v39 = vpop.eup %1673 }
 0x121   : > { %1675 = vrcp.f32 %v414_v38 }
 0x12b   : > { %v1676_v40 = vpop.eup %1675 }
 0x12c   : > { %v444_v41 = vmul.f32 %v1676_v40, %v1674_v39  ;;  %v443_v43 = vmul.f32 %v1676_v40, %v441_v42 }
 0x12e   : > { %446 = vrot.lane.b32.xlu0 %v444_v41, %s1809_s30 }
 0x184   : > { %v422_v48 = vpop.permute.xlu1 %421 }
 0x185   : > { %v423_v49 = vrot.slane %v422_v48, 2 }
 0x187   : > { %v1555_v50 = vmul.f32 -1.442695, %v423_v49 }
 0x1a0   : > { %v447_v44 = vpop.permute.xlu0 %446 }
 0x1a1   : > { %v449_v45 = vadd.f32 %v447_v44, %v443_v43  ;;  %v602_v44 = vld [vmem:[%s601_s3] sm:$0xf]  ;;  %s973_s3 = scalar_lea.vmem %s1932_s6, %s1612_s29 [#allocation4] }
 0x1a3   : > { %1677 = vtanh.f32 %v449_v45  ;;  %v463_v46 = vrot.slane %v449_v45, %v1930_v27 }
 0x1a4   : > { %1679 = vpow2.f32 %v1555_v50 }
 0x1a5   : > { %464 = vrot.lane.b32.xlu0 %v463_v46, %s1809_s30 }
 0x1ad   : > { %v1678_v47 = vpop.eup %1677 }
 0x1ae   : > { %452 = vrot.lane.b32.xlu1 %v1678_v47, %s1809_s30  ;;  %v1680_v51 = vpop.eup %1679 }
 0x1af   : > { %v428_v52 = vadd.f32 1.0, %v1680_v51 }
 0x1b1   : > { %1681 = vrcp.f32 %v428_v52 }
 0x1bb   : > { %v1682_v55 = vpop.eup %1681 }
 0x217   : > { %v465_v53 = vpop.permute.xlu0 %464 }
 0x218   : > { %468 = vst.msk [vmem:[#allocation3] sm:$0x3] %vm296_vm0, %v465_v53 }
 0x21f   : > { %v1563_v54 = vld.sshfl [vmem:[#allocation3] sm:$0x3 pattern:$0x76325410] }
 0x220   : > { %566 = vrot.lane.b32.xlu1 %v1563_v54, %s1809_s30  ;;  %v453_v56 = vpop.permute.xlu1 %452 }
 0x221   : > { %v455_v57 = vmul.f32 %v1682_v55, %v453_v56 }
 0x223   : > { %469 = vst.msk [vmem:[#allocation2] sm:$0x3] %vm296_vm0, %v455_v57  ;;  %471 = vst.msk [vmem:[%s470_s19] sm:$0x3] %vm296_vm0, %v455_v57  ;;  %s843_s19 = scalar_lea.vmem %s1947_s18, %s1571_s16  ;;  %s1590_s16 = sshll.u32 %s2100_s8, 1 }
 0x22a   : > { %v479_v58 = vld [vmem:[#allocation2] sm:$0x3] }
 0x22b   : > { %v480_v59 = vpack.c.bf16 %v479_v58, %v479_v58 }
 0x22d   : > { %1560 = vmatmul.mubr.msk.bf16.vlgmr.msra.gmra.mrb[0].mxu1 %vm354_vm1, %v480_v59 }
 0x22e   : > { %733 = vmatpush1.bf16.msra.mxu1 %v1885_v11  ;;  %764 = vmatprep.mubr.bf16.mxu1 %v1807_v8 }
 0x22f   : > { %734 = vmatprep.subr.bf16.mxu1 %v1888_v12 }
 0x232   : > { %735 = vmatpush1.bf16.msra.mxu1 %v1892_v13 }
 0x233   : > { %736 = vmatprep.subr.bf16.mxu1 %v1896_v14 }
 0x236   : > { %737 = vmatpush1.bf16.msra.mxu1 %v1900_v16 }
 0x237   : > { %738 = vmatprep.subr.bf16.mxu1 %v1904_v17 }
 0x23a   : > { %739 = vmatpush1.bf16.msra.mxu1 %v1909_v18 }
 0x23b   : > { %980 = vmatprep.subr.bf16.mxu1 %v1883_v10 }
 0x292   : > { %v567_v20 = vpop.permute.xlu1 %566 }
 0x300   : > { %v518_v60 = vpop.f32.mrb[0].mxu1 }
 0x301   : > { %v520_v61 = vpop.f32.mrb[1].mxu1 }
 0x302   : > { %v527_v62 = vcombine.low %v518_v60, %v520_v61  ;;  %v522_v63 = vpop.f32.mrb[2].mxu1 }
 0x303   : > { %v523_v0 = vpop.f32.mrb[3].mxu1 }
 0x304   : > { %v534_v2 = vrot.slane %v527_v62, %v1930_v27 }
 0x306   : > { %v536_v3 = vadd.f32 %v534_v2, %v478_v1 }
 0x308   : > { %547 = vrot.lane.b32.xlu1 %v536_v3, %s1809_s30  ;;  %v1561_v4 = vmul.f32 -1.442695, %v536_v3  ;;  %v544_v5 = vrot.slane %v536_v3, 2 }
 0x30a   : > { %1683 = vpow2.f32 %v1561_v4 }
 0x30b   : > { %1685 = vtanh.f32 %v544_v5 }
 0x314   : > { %v1684_v6 = vpop.eup %1683 }
 0x315   : > { %v540_v7 = vadd.f32 1.0, %v1684_v6  ;;  %v1686_v9 = vpop.eup %1685 }
 0x317   : > { %1687 = vrcp.f32 %v540_v7 }
 0x321   : > { %v1688_v15 = vpop.eup %1687 }
 0x322   : > { %v570_v19 = vmul.f32 %v1688_v15, %v1686_v9  ;;  %v569_v21 = vmul.f32 %v1688_v15, %v567_v20 }
 0x324   : > { %572 = vrot.lane.b32.xlu0 %v570_v19, %s1809_s30 }
 0x37a   : > { %v548_v26 = vpop.permute.xlu1 %547 }
 0x37b   : > { %v549_v28 = vrot.slane %v548_v26, 2 }
 0x37d   : > { %v1562_v29 = vmul.f32 -1.442695, %v549_v28 }
 0x396   : > { %v573_v22 = vpop.permute.xlu0 %572 }
 0x397   : > { %v575_v23 = vadd.f32 %v573_v22, %v569_v21  ;;  %v726_v22 = vld [vmem:[%s725_s15] sm:$0xf]  ;;  %s1097_s15 = scalar_lea.vmem %s1932_s6, %s1613_s9 [#allocation4] }
 0x399   : > { %1689 = vtanh.f32 %v575_v23  ;;  %v589_v24 = vrot.slane %v575_v23, %v1930_v27 }
 0x39a   : > { %1691 = vpow2.f32 %v1562_v29 }
 0x39b   : > { %590 = vrot.lane.b32.xlu1 %v589_v24, %s1809_s30 }
 0x3a3   : > { %v1690_v25 = vpop.eup %1689 }
 0x3a4   : > { %578 = vrot.lane.b32.xlu0 %v1690_v25, %s1809_s30  ;;  %v1692_v30 = vpop.eup %1691 }
 0x3a5   : > { %v554_v31 = vadd.f32 1.0, %v1692_v30 }
 0x3a7   : > { %1693 = vrcp.f32 %v554_v31 }
 0x3b1   : > { %v1694_v34 = vpop.eup %1693 }
 0x40d   : > { %v591_v32 = vpop.permute.xlu1 %590 }
 0x40e   : > { %593 = vst.msk [vmem:[#allocation3] sm:$0x3] %vm296_vm0, %v591_v32 }
 0x415   : > { %v1570_v33 = vld.sshfl [vmem:[#allocation3] sm:$0x3 pattern:$0x76325410] }
 0x416   : > { %v579_v35 = vpop.permute.xlu0 %578  ;;  %690 = vrot.lane.b32.xlu0 %v1570_v33, %s1809_s30 }
 0x417   : > { %v581_v36 = vmul.f32 %v1694_v34, %v579_v35 }
 0x419   : > { %594 = vst.msk [vmem:[#allocation2] sm:$0x3] %vm296_vm0, %v581_v36  ;;  %596 = vst.msk [vmem:[%s595_s26] sm:$0x3] %vm296_vm0, %v581_v36  ;;  %s967_s26 = scalar_lea.vmem %s1947_s18, %s1578_s11 }
 0x420   : > { %v603_v37 = vld [vmem:[#allocation2] sm:$0x3] }
 0x421   : > { %v604_v38 = vpack.c.bf16 %v603_v37, %v603_v37 }
 0x423   : > { %1567 = vmatmul.mubr.msk.bf16.vlgmr.msra.gmra.mrb[4].mxu0 %vm354_vm1, %v604_v38 }
 0x424   : > { %857 = vmatpush1.bf16.msra.mxu0 %v1885_v11  ;;  %888 = vmatprep.mubr.bf16.mxu0 %v1807_v8 }
 0x425   : > { %858 = vmatprep.subr.bf16.mxu0 %v1888_v12 }
 0x428   : > { %859 = vmatpush1.bf16.msra.mxu0 %v1892_v13 }
 0x429   : > { %860 = vmatprep.subr.bf16.mxu0 %v1896_v14 }
 0x42c   : > { %861 = vmatpush1.bf16.msra.mxu0 %v1900_v16 }
 0x42d   : > { %862 = vmatprep.subr.bf16.mxu0 %v1904_v17 }
 0x430   : > { %863 = vmatpush1.bf16.msra.mxu0 %v1909_v18 }
 0x431   : > { %1104 = vmatprep.subr.bf16.mxu0 %v1883_v10 }
 0x488   : > { %v691_v54 = vpop.permute.xlu0 %690 }
 0x4f6   : > { %v642_v39 = vpop.f32.mrb[4].mxu0 }
 0x4f7   : > { %v644_v40 = vpop.f32.mrb[5].mxu0 }
 0x4f8   : > { %v651_v41 = vcombine.low %v642_v39, %v644_v40  ;;  %v646_v42 = vpop.f32.mrb[6].mxu0 }
 0x4f9   : > { %v647_v43 = vpop.f32.mrb[7].mxu0 }
 0x4fa   : > { %v658_v45 = vrot.slane %v651_v41, %v1930_v27 }
 0x4fc   : > { %v660_v46 = vadd.f32 %v658_v45, %v602_v44 }
 0x4fe   : > { %v1568_v47 = vmul.f32 -1.442695, %v660_v46  ;;  %671 = vrot.lane.b32.xlu0 %v660_v46, %s1809_s30  ;;  %v668_v48 = vrot.slane %v660_v46, 2 }
 0x500   : > { %1695 = vpow2.f32 %v1568_v47 }
 0x501   : > { %1697 = vtanh.f32 %v668_v48 }
 0x50a   : > { %v1696_v49 = vpop.eup %1695 }
 0x50b   : > { %v664_v50 = vadd.f32 1.0, %v1696_v49  ;;  %v1698_v51 = vpop.eup %1697 }
 0x50d   : > { %1699 = vrcp.f32 %v664_v50 }
 0x517   : > { %v1700_v52 = vpop.eup %1699 }
 0x518   : > { %v694_v53 = vmul.f32 %v1700_v52, %v1698_v51  ;;  %v693_v55 = vmul.f32 %v1700_v52, %v691_v54 }
 0x51a   : > { %696 = vrot.lane.b32.xlu1 %v694_v53, %s1809_s30 }
 0x570   : > { %v672_v60 = vpop.permute.xlu0 %671 }
 0x571   : > { %v673_v61 = vrot.slane %v672_v60, 2 }
 0x573   : > { %v1569_v62 = vmul.f32 -1.442695, %v673_v61 }
 0x58c   : > { %v697_v56 = vpop.permute.xlu1 %696 }
 0x58d   : > { %v699_v57 = vadd.f32 %v697_v56, %v693_v55  ;;  %v850_v55 = vld [vmem:[%s849_s25] sm:$0xf]  ;;  %s1221_s25 = scalar_lea.vmem %s1932_s6, %s1614_s24 [#allocation4]  ;;  %s1596_s6 = sshll.u32 %s2119_s23, 1 }
 0x58e   : > { %s1339_s21 = scalar_lea.vmem %s1947_s18, %s1596_s6 }
 0x58f   : > { %1701 = vtanh.f32 %v699_v57  ;;  %v713_v58 = vrot.slane %v699_v57, %v1930_v27 }
 0x590   : > { %1703 = vpow2.f32 %v1569_v62 }
 0x591   : > { %714 = vrot.lane.b32.xlu0 %v713_v58, %s1809_s30 }
 0x599   : > { %v1702_v59 = vpop.eup %1701 }
 0x59a   : > { %702 = vrot.lane.b32.xlu1 %v1702_v59, %s1809_s30  ;;  %v1704_v63 = vpop.eup %1703 }
 0x59b   : > { %v678_v0 = vadd.f32 1.0, %v1704_v63 }
 0x59d   : > { %1705 = vrcp.f32 %v678_v0 }
 0x5a7   : > { %v1706_v3 = vpop.eup %1705 }
 0x603   : > { %v715_v1 = vpop.permute.xlu0 %714 }
 0x604   : > { %717 = vst.msk [vmem:[#allocation3] sm:$0x3] %vm296_vm0, %v715_v1 }
 0x60b   : > { %v1576_v2 = vld.sshfl [vmem:[#allocation3] sm:$0x3 pattern:$0x76325410] }
 0x60c   : > { %814 = vrot.lane.b32.xlu1 %v1576_v2, %s1809_s30  ;;  %v703_v4 = vpop.permute.xlu1 %702 }
 0x60d   : > { %v705_v5 = vmul.f32 %v1706_v3, %v703_v4 }
 0x60f   : > { %718 = vst.msk [vmem:[#allocation2] sm:$0x3] %vm296_vm0, %v705_v5  ;;  %720 = vst.msk [vmem:[%s719_s5] sm:$0x3] %vm296_vm0, %v705_v5  ;;  %s1091_s5 = scalar_lea.vmem %s1947_s18, %s1584_s4 }
 0x616   : > { %v727_v6 = vld [vmem:[#allocation2] sm:$0x3] }
 0x617   : > { %v728_v7 = vpack.c.bf16 %v727_v6, %v727_v6 }
 0x619   : > { %1573 = vmatmul.mubr.msk.bf16.vlgmr.msra.gmra.mrb[4].mxu1 %vm354_vm1, %v728_v7 }
 0x61a   : > { %981 = vmatpush1.bf16.msra.mxu1 %v1885_v11  ;;  %1012 = vmatprep.mubr.bf16.mxu1 %v1807_v8 }
 0x61b   : > { %982 = vmatprep.subr.bf16.mxu1 %v1888_v12 }
 0x61e   : > { %983 = vmatpush1.bf16.msra.mxu1 %v1892_v13 }
 0x61f   : > { %984 = vmatprep.subr.bf16.mxu1 %v1896_v14 }
 0x622   : > { %985 = vmatpush1.bf16.msra.mxu1 %v1900_v16 }
 0x623   : > { %986 = vmatprep.subr.bf16.mxu1 %v1904_v17 }
 0x626   : > { %987 = vmatpush1.bf16.msra.mxu1 %v1909_v18 }
 0x627   : > { %1228 = vmatprep.subr.bf16.mxu1 %v1883_v10 }
 0x67e   : > { %v815_v32 = vpop.permute.xlu1 %814 }
 0x6ec   : > { %v766_v9 = vpop.f32.mrb[4].mxu1 }
 0x6ed   : > { %v768_v15 = vpop.f32.mrb[5].mxu1 }
 0x6ee   : > { %v775_v19 = vcombine.low %v766_v9, %v768_v15  ;;  %v770_v20 = vpop.f32.mrb[6].mxu1 }
 0x6ef   : > { %v771_v21 = vpop.f32.mrb[7].mxu1 }
 0x6f0   : > { %v782_v23 = vrot.slane %v775_v19, %v1930_v27 }
 0x6f2   : > { %v784_v24 = vadd.f32 %v782_v23, %v726_v22 }
 0x6f4   : > { %795 = vrot.lane.b32.xlu1 %v784_v24, %s1809_s30  ;;  %v1574_v25 = vmul.f32 -1.442695, %v784_v24  ;;  %v792_v10 = vrot.slane %v784_v24, 2 }
 0x6f6   : > { %1707 = vpow2.f32 %v1574_v25 }
 0x6f7   : > { %1709 = vtanh.f32 %v792_v10 }
 0x700   : > { %v1708_v26 = vpop.eup %1707 }
 0x701   : > { %v788_v28 = vadd.f32 1.0, %v1708_v26  ;;  %v1710_v29 = vpop.eup %1709 }
 0x703   : > { %1711 = vrcp.f32 %v788_v28 }
 0x70d   : > { %v1712_v30 = vpop.eup %1711 }
 0x70e   : > { %v818_v31 = vmul.f32 %v1712_v30, %v1710_v29  ;;  %v817_v33 = vmul.f32 %v1712_v30, %v815_v32 }
 0x710   : > { %820 = vrot.lane.b32.xlu0 %v818_v31, %s1809_s30 }
 0x766   : > { %v796_v38 = vpop.permute.xlu1 %795 }
 0x767   : > { %v797_v39 = vrot.slane %v796_v38, 2 }
 0x769   : > { %v1575_v40 = vmul.f32 -1.442695, %v797_v39 }
 0x782   : > { %v821_v34 = vpop.permute.xlu0 %820 }
 0x783   : > { %v823_v35 = vadd.f32 %v821_v34, %v817_v33 }
 0x785   : > { %1713 = vtanh.f32 %v823_v35  ;;  %v837_v36 = vrot.slane %v823_v35, %v1930_v27 }
 0x786   : > { %1715 = vpow2.f32 %v1575_v40 }
 0x787   : > { %838 = vrot.lane.b32.xlu1 %v837_v36, %s1809_s30 }
 0x78f   : > { %v1714_v37 = vpop.eup %1713 }
 0x790   : > { %826 = vrot.lane.b32.xlu0 %v1714_v37, %s1809_s30  ;;  %v1716_v41 = vpop.eup %1715 }
 0x791   : > { %v802_v42 = vadd.f32 1.0, %v1716_v41 }
 0x793   : > { %1717 = vrcp.f32 %v802_v42 }
 0x79d   : > { %v1718_v45 = vpop.eup %1717 }
 0x7f9   : > { %v839_v43 = vpop.permute.xlu1 %838 }
 0x7fa   : > { %841 = vst.msk [vmem:[#allocation3] sm:$0x3] %vm296_vm0, %v839_v43 }
 0x801   : > { %v1583_v44 = vld.sshfl [vmem:[#allocation3] sm:$0x3 pattern:$0x76325410] }
 0x802   : > { %v827_v46 = vpop.permute.xlu0 %826  ;;  %938 = vrot.lane.b32.xlu0 %v1583_v44, %s1809_s30 }
 0x803   : > { %v829_v47 = vmul.f32 %v1718_v45, %v827_v46 }
 0x805   : > { %842 = vst.msk [vmem:[#allocation2] sm:$0x3] %vm296_vm0, %v829_v47  ;;  %844 = vst.msk [vmem:[%s843_s19] sm:$0x3] %vm296_vm0, %v829_v47  ;;  %s1215_s19 = scalar_lea.vmem %s1947_s18, %s1590_s16 }
 0x80c   : > { %v851_v48 = vld [vmem:[#allocation2] sm:$0x3] }
 0x80d   : > { %v852_v49 = vpack.c.bf16 %v851_v48, %v851_v48 }
 0x80f   : > { %1580 = vmatmul.mubr.msk.bf16.vlgmr.msra.gmra.mrb[8].mxu0 %vm354_vm1, %v852_v49 }
 0x810   : > { %1105 = vmatpush1.bf16.msra.mxu0 %v1885_v11  ;;  %1136 = vmatprep.mubr.bf16.mxu0 %v1807_v8 }
 0x811   : > { %1106 = vmatprep.subr.bf16.mxu0 %v1888_v12 }
 0x814   : > { %1107 = vmatpush1.bf16.msra.mxu0 %v1892_v13 }
 0x815   : > { %1108 = vmatprep.subr.bf16.mxu0 %v1896_v14 }
 0x818   : > { %1109 = vmatpush1.bf16.msra.mxu0 %v1900_v16 }
 0x819   : > { %1110 = vmatprep.subr.bf16.mxu0 %v1904_v17 }
 0x81c   : > { %1111 = vmatpush1.bf16.msra.mxu0 %v1909_v18 }
 0x874   : > { %v939_v1 = vpop.permute.xlu0 %938 }
 0x8e2   : > { %v890_v50 = vpop.f32.mrb[8].mxu0 }
 0x8e3   : > { %v892_v51 = vpop.f32.mrb[9].mxu0 }
 0x8e4   : > { %v899_v52 = vcombine.low %v890_v50, %v892_v51  ;;  %v894_v53 = vpop.f32.mrb[10].mxu0 }
 0x8e5   : > { %v895_v54 = vpop.f32.mrb[11].mxu0 }
 0x8e6   : > { %v906_v56 = vrot.slane %v899_v52, %v1930_v27 }
 0x8e8   : > { %v908_v57 = vadd.f32 %v906_v56, %v850_v55 }
 0x8ea   : > { %v1581_v58 = vmul.f32 -1.442695, %v908_v57  ;;  %919 = vrot.lane.b32.xlu0 %v908_v57, %s1809_s30  ;;  %v916_v59 = vrot.slane %v908_v57, 2 }
 0x8ec   : > { %1719 = vpow2.f32 %v1581_v58  ;;  %v1098_v58 = vld [vmem:[%s1097_s15] sm:$0xf] }
 0x8ed   : > { %1721 = vtanh.f32 %v916_v59 }
 0x8f6   : > { %v1720_v60 = vpop.eup %1719 }
 0x8f7   : > { %v912_v61 = vadd.f32 1.0, %v1720_v60  ;;  %v1722_v62 = vpop.eup %1721 }
 0x8f9   : > { %1723 = vrcp.f32 %v912_v61 }
 0x903   : > { %v1724_v63 = vpop.eup %1723 }
 0x904   : > { %v942_v0 = vmul.f32 %v1724_v63, %v1722_v62  ;;  %v941_v2 = vmul.f32 %v1724_v63, %v939_v1 }
 0x906   : > { %944 = vrot.lane.b32.xlu1 %v942_v0, %s1809_s30 }
 0x95c   : > { %v920_v7 = vpop.permute.xlu0 %919 }
 0x95d   : > { %v921_v9 = vrot.slane %v920_v7, 2 }
 0x95f   : > { %v1582_v15 = vmul.f32 -1.442695, %v921_v9 }
 0x978   : > { %v945_v3 = vpop.permute.xlu1 %944 }
 0x979   : > { %v947_v4 = vadd.f32 %v945_v3, %v941_v2 }
 0x97b   : > { %1725 = vtanh.f32 %v947_v4  ;;  %v961_v5 = vrot.slane %v947_v4, %v1930_v27 }
 0x97c   : > { %1727 = vpow2.f32 %v1582_v15 }
 0x97d   : > { %962 = vrot.lane.b32.xlu0 %v961_v5, %s1809_s30 }
 0x985   : > { %v1726_v6 = vpop.eup %1725 }
 0x986   : > { %950 = vrot.lane.b32.xlu1 %v1726_v6, %s1809_s30  ;;  %v1728_v19 = vpop.eup %1727 }
 0x987   : > { %v926_v20 = vadd.f32 1.0, %v1728_v19 }
 0x989   : > { %1729 = vrcp.f32 %v926_v20 }
 0x993   : > { %v1730_v23 = vpop.eup %1729 }
 0x9ef   : > { %v963_v21 = vpop.permute.xlu0 %962 }
 0x9f0   : > { %965 = vst.msk [vmem:[#allocation3] sm:$0x3] %vm296_vm0, %v963_v21 }
 0x9f7   : > { %v1589_v22 = vld.sshfl [vmem:[#allocation3] sm:$0x3 pattern:$0x76325410] }
 0x9f8   : > { %1062 = vrot.lane.b32.xlu1 %v1589_v22, %s1809_s30  ;;  %v951_v24 = vpop.permute.xlu1 %950 }
 0x9f9   : > { %v953_v25 = vmul.f32 %v1730_v23, %v951_v24 }
 0x9fb   : > { %966 = vst.msk [vmem:[#allocation2] sm:$0x3] %vm296_vm0, %v953_v25  ;;  %968 = vst.msk [vmem:[%s967_s26] sm:$0x3] %vm296_vm0, %v953_v25 }
 0xa02   : > { %v975_v10 = vld [vmem:[#allocation2] sm:$0x3] }
 0xa03   : > { %v976_v26 = vpack.c.bf16 %v975_v10, %v975_v10 }
 0xa05   : > { %1586 = vmatmul.mubr.msk.bf16.vlgmr.msra.gmra.mrb[8].mxu1 %vm354_vm1, %v976_v26 }
 0xa06   : > { %1229 = vmatpush1.bf16.msra.mxu1 %v1885_v11  ;;  %1260 = vmatprep.mubr.bf16.mxu1 %v1807_v8 }
 0xa07   : > { %1230 = vmatprep.subr.bf16.mxu1 %v1888_v12 }
 0xa0a   : > { %1231 = vmatpush1.bf16.msra.mxu1 %v1892_v13  ;;  %v974_v13 = vld [vmem:[%s973_s3] sm:$0xf] }
 0xa0b   : > { %1232 = vmatprep.subr.bf16.mxu1 %v1896_v14 }
 0xa0e   : > { %1233 = vmatpush1.bf16.msra.mxu1 %v1900_v16 }
 0xa0f   : > { %1234 = vmatprep.subr.bf16.mxu1 %v1904_v17 }
 0xa12   : > { %1235 = vmatpush1.bf16.msra.mxu1 %v1909_v18 }
 0xa6a   : > { %v1063_v35 = vpop.permute.xlu1 %1062 }
 0xad8   : > { %v1014_v11 = vpop.f32.mrb[8].mxu1 }
 0xad9   : > { %v1016_v8 = vpop.f32.mrb[9].mxu1 }
 0xada   : > { %v1023_v28 = vcombine.low %v1014_v11, %v1016_v8  ;;  %v1018_v12 = vpop.f32.mrb[10].mxu1 }
 0xadb   : > { %v1019_v29 = vpop.f32.mrb[11].mxu1 }
 0xadc   : > { %v1030_v14 = vrot.slane %v1023_v28, %v1930_v27 }
 0xade   : > { %v1032_v30 = vadd.f32 %v1030_v14, %v974_v13 }
 0xae0   : > { %1043 = vrot.lane.b32.xlu1 %v1032_v30, %s1809_s30  ;;  %v1587_v16 = vmul.f32 -1.442695, %v1032_v30  ;;  %v1040_v17 = vrot.slane %v1032_v30, 2 }
 0xae2   : > { %1731 = vpow2.f32 %v1587_v16  ;;  %v1222_v16 = vld [vmem:[%s1221_s25] sm:$0xf] }
 0xae3   : > { %1733 = vtanh.f32 %v1040_v17 }
 0xaec   : > { %v1732_v18 = vpop.eup %1731 }
 0xaed   : > { %v1036_v31 = vadd.f32 1.0, %v1732_v18  ;;  %v1734_v32 = vpop.eup %1733 }
 0xaef   : > { %1735 = vrcp.f32 %v1036_v31 }
 0xaf9   : > { %v1736_v33 = vpop.eup %1735 }
 0xafa   : > { %v1066_v34 = vmul.f32 %v1736_v33, %v1734_v32  ;;  %v1065_v36 = vmul.f32 %v1736_v33, %v1063_v35 }
 0xafc   : > { %1068 = vrot.lane.b32.xlu0 %v1066_v34, %s1809_s30 }
 0xb52   : > { %v1044_v41 = vpop.permute.xlu1 %1043 }
 0xb53   : > { %v1045_v42 = vrot.slane %v1044_v41, 2 }
 0xb55   : > { %v1588_v43 = vmul.f32 -1.442695, %v1045_v42 }
 0xb6e   : > { %v1069_v37 = vpop.permute.xlu0 %1068 }
 0xb6f   : > { %v1071_v38 = vadd.f32 %v1069_v37, %v1065_v36 }
 0xb71   : > { %1737 = vtanh.f32 %v1071_v38  ;;  %v1085_v39 = vrot.slane %v1071_v38, %v1930_v27 }
 0xb72   : > { %1739 = vpow2.f32 %v1588_v43 }
 0xb73   : > { %1086 = vrot.lane.b32.xlu1 %v1085_v39, %s1809_s30 }
 0xb7b   : > { %v1738_v40 = vpop.eup %1737 }
 0xb7c   : > { %1074 = vrot.lane.b32.xlu0 %v1738_v40, %s1809_s30  ;;  %v1740_v44 = vpop.eup %1739 }
 0xb7d   : > { %v1050_v45 = vadd.f32 1.0, %v1740_v44 }
 0xb7f   : > { %1741 = vrcp.f32 %v1050_v45 }
 0xb89   : > { %v1742_v48 = vpop.eup %1741 }
 0xbe5   : > { %v1087_v46 = vpop.permute.xlu1 %1086 }
 0xbe6   : > { %1089 = vst.msk [vmem:[#allocation3] sm:$0x3] %vm296_vm0, %v1087_v46 }
 0xbed   : > { %v1595_v47 = vld.sshfl [vmem:[#allocation3] sm:$0x3 pattern:$0x76325410] }
 0xbee   : > { %v1075_v49 = vpop.permute.xlu0 %1074  ;;  %1186 = vrot.lane.b32.xlu0 %v1595_v47, %s1809_s30 }
 0xbef   : > { %v1077_v50 = vmul.f32 %v1742_v48, %v1075_v49 }
 0xbf1   : > { %1090 = vst.msk [vmem:[#allocation2] sm:$0x3] %vm296_vm0, %v1077_v50  ;;  %1092 = vst.msk [vmem:[%s1091_s5] sm:$0x3] %vm296_vm0, %v1077_v50 }
 0xbf8   : > { %v1099_v51 = vld [vmem:[#allocation2] sm:$0x3] }
 0xbf9   : > { %v1100_v52 = vpack.c.bf16 %v1099_v51, %v1099_v51 }
 0xbfb   : > { %1592 = vmatmul.mubr.msk.bf16.vlgmr.msra.gmra.mrb[12].mxu0 %vm354_vm1, %v1100_v52 }
 0xc60   : > { %v1187_v4 = vpop.permute.xlu0 %1186 }
 0xcce   : > { %v1138_v53 = vpop.f32.mrb[12].mxu0 }
 0xccf   : > { %v1140_v54 = vpop.f32.mrb[13].mxu0 }
 0xcd0   : > { %v1147_v55 = vcombine.low %v1138_v53, %v1140_v54  ;;  %v1142_v56 = vpop.f32.mrb[14].mxu0 }
 0xcd1   : > { %v1143_v57 = vpop.f32.mrb[15].mxu0 }
 0xcd2   : > { %v1154_v59 = vrot.slane %v1147_v55, %v1930_v27 }
 0xcd4   : > { %v1156_v60 = vadd.f32 %v1154_v59, %v1098_v58 }
 0xcd6   : > { %v1593_v61 = vmul.f32 -1.442695, %v1156_v60  ;;  %1167 = vrot.lane.b32.xlu0 %v1156_v60, %s1809_s30  ;;  %v1164_v62 = vrot.slane %v1156_v60, 2 }
 0xcd8   : > { %1743 = vpow2.f32 %v1593_v61 }
 0xcd9   : > { %1745 = vtanh.f32 %v1164_v62 }
 0xce2   : > { %v1744_v63 = vpop.eup %1743 }
 0xce3   : > { %v1160_v0 = vadd.f32 1.0, %v1744_v63  ;;  %v1746_v1 = vpop.eup %1745 }
 0xce5   : > { %1747 = vrcp.f32 %v1160_v0 }
 0xcef   : > { %v1748_v2 = vpop.eup %1747 }
 0xcf0   : > { %v1190_v3 = vmul.f32 %v1748_v2, %v1746_v1  ;;  %v1189_v5 = vmul.f32 %v1748_v2, %v1187_v4 }
 0xcf2   : > { %1192 = vrot.lane.b32.xlu1 %v1190_v3, %s1809_s30 }
 0xd48   : > { %v1168_v19 = vpop.permute.xlu0 %1167 }
 0xd49   : > { %v1169_v20 = vrot.slane %v1168_v19, 2 }
 0xd4b   : > { %v1594_v21 = vmul.f32 -1.442695, %v1169_v20 }
 0xd64   : > { %v1193_v6 = vpop.permute.xlu1 %1192 }
 0xd65   : > { %v1195_v7 = vadd.f32 %v1193_v6, %v1189_v5 }
 0xd67   : > { %1749 = vtanh.f32 %v1195_v7  ;;  %v1209_v9 = vrot.slane %v1195_v7, %v1930_v27 }
 0xd68   : > { %1751 = vpow2.f32 %v1594_v21 }
 0xd69   : > { %1210 = vrot.lane.b32.xlu0 %v1209_v9, %s1809_s30 }
 0xd71   : > { %v1750_v15 = vpop.eup %1749 }
 0xd72   : > { %1198 = vrot.lane.b32.xlu1 %v1750_v15, %s1809_s30  ;;  %v1752_v22 = vpop.eup %1751 }
 0xd73   : > { %v1174_v23 = vadd.f32 1.0, %v1752_v22 }
 0xd75   : > { %1753 = vrcp.f32 %v1174_v23 }
 0xd7f   : > { %v1754_v10 = vpop.eup %1753 }
 0xddb   : > { %v1211_v24 = vpop.permute.xlu0 %1210 }
 0xddc   : > { %1213 = vst.msk [vmem:[#allocation3] sm:$0x3] %vm296_vm0, %v1211_v24 }
 0xde3   : > { %v1601_v25 = vld.sshfl [vmem:[#allocation3] sm:$0x3 pattern:$0x76325410] }
 0xde4   : > { %1310 = vrot.lane.b32.xlu1 %v1601_v25, %s1809_s30  ;;  %v1199_v26 = vpop.permute.xlu1 %1198 }
 0xde5   : > { %v1201_v11 = vmul.f32 %v1754_v10, %v1199_v26 }
 0xde7   : > { %1216 = vst.msk [vmem:[%s1215_s19] sm:$0x3] %vm296_vm0, %v1201_v11  ;;  %1214 = vst.msk [vmem:[#allocation2] sm:$0x3] %vm296_vm0, %v1201_v11 }
 0xdee   : > { %v1223_v8 = vld [vmem:[#allocation2] sm:$0x3] }
 0xdef   : > { %v1224_v28 = vpack.c.bf16 %v1223_v8, %v1223_v8 }
 0xdf1   : > { %1598 = vmatmul.mubr.msk.bf16.vlgmr.msra.gmra.mrb[12].mxu1 %vm354_vm1, %v1224_v28 }
 0xe56   : > { %v1311_v38 = vpop.permute.xlu1 %1310 }
 0xec4   : > { %v1262_v12 = vpop.f32.mrb[12].mxu1 }
 0xec5   : > { %v1264_v29 = vpop.f32.mrb[13].mxu1 }
 0xec6   : > { %v1271_v13 = vcombine.low %v1262_v12, %v1264_v29  ;;  %v1266_v14 = vpop.f32.mrb[14].mxu1 }
 0xec7   : > { %v1267_v30 = vpop.f32.mrb[15].mxu1 }
 0xec8   : > { %v1278_v17 = vrot.slane %v1271_v13, %v1930_v27 }
 0xeca   : > { %v1280_v18 = vadd.f32 %v1278_v17, %v1222_v16 }
 0xecc   : > { %1291 = vrot.lane.b32.xlu1 %v1280_v18, %s1809_s30  ;;  %v1599_v31 = vmul.f32 -1.442695, %v1280_v18  ;;  %v1288_v32 = vrot.slane %v1280_v18, 2 }
 0xece   : > { %1755 = vpow2.f32 %v1599_v31 }
 0xecf   : > { %1757 = vtanh.f32 %v1288_v32 }
 0xed8   : > { %v1756_v33 = vpop.eup %1755 }
 0xed9   : > { %v1284_v34 = vadd.f32 1.0, %v1756_v33  ;;  %v1758_v35 = vpop.eup %1757 }
 0xedb   : > { %1759 = vrcp.f32 %v1284_v34 }
 0xee5   : > { %v1760_v36 = vpop.eup %1759 }
 0xee6   : > { %v1314_v37 = vmul.f32 %v1760_v36, %v1758_v35  ;;  %v1313_v39 = vmul.f32 %v1760_v36, %v1311_v38 }
 0xee8   : > { %1316 = vrot.lane.b32.xlu0 %v1314_v37, %s1809_s30 }
 0xf3e   : > { %v1292_v44 = vpop.permute.xlu1 %1291 }
 0xf3f   : > { %v1293_v45 = vrot.slane %v1292_v44, 2 }
 0xf41   : > { %v1600_v46 = vmul.f32 -1.442695, %v1293_v45 }
 0xf5a   : > { %v1317_v40 = vpop.permute.xlu0 %1316 }
 0xf5b   : > { %v1319_v41 = vadd.f32 %v1317_v40, %v1313_v39 }
 0xf5d   : > { %1761 = vtanh.f32 %v1319_v41  ;;  %v1333_v42 = vrot.slane %v1319_v41, %v1930_v27 }
 0xf5e   : > { %1763 = vpow2.f32 %v1600_v46 }
 0xf5f   : > { %1334 = vrot.lane.b32.xlu1 %v1333_v42, %s1809_s30 }
 0xf67   : > { %v1762_v43 = vpop.eup %1761 }
 0xf68   : > { %1322 = vrot.lane.b32.xlu0 %v1762_v43, %s1809_s30  ;;  %v1764_v47 = vpop.eup %1763 }
 0xf69   : > { %v1298_v48 = vadd.f32 1.0, %v1764_v47 }
 0xf6b   : > { %1765 = vrcp.f32 %v1298_v48 }
 0xf75   : > { %v1766_v50 = vpop.eup %1765 }
 0xfd1   : > { %v1335_v49 = vpop.permute.xlu1 %1334 }
 0xfd2   : > { %1337 = vst.msk [vmem:[#allocation3] sm:$0x3] %vm296_vm0, %v1335_v49 }
 0xfda   : > { %v1323_v51 = vpop.permute.xlu0 %1322 }
 0xfdb   : > { %v1325_v27 = vmul.f32 %v1766_v50, %v1323_v51 }
 0xfdd   : > { %1338 = vst.msk [vmem:[#allocation2] sm:$0x3] %vm296_vm0, %v1325_v27  ;;  %1340 = vst.msk [vmem:[%s1339_s21] sm:$0x3] %vm296_vm0, %v1325_v27 }
 0xfde PF: > { %s12_s13 = sadd.s32 1, %s1805_s13   ;;  %s2152_s9 = smov %s1793_s10 }
 0xfdf   : > { %p9_p10 = scmp.ge.s32.totalorder %s12_s13, 4   ;;  %s2153_s10 = smov %s1861_s17 }
 0xfe0   : > { %s2154_s11 = smov %s1801_s12  ;;  %s2155_s12 = smov %s2157_s14 }
 0xfe1   :  { %11 = sbr.rel (!%p9_p10) target bundleno = 3 (0x3), region = 127 }

// kernel: _lambda_.27
= control target key start
LH: loop header
LB: loop body
LE: loop exit
PB: predicated region body
PF: predicated region fallthrough
CT: control target
= control target key end

     0   :  { %v210_v0 = vmov 0.0   ;;  %vm211_vm0 = vmmov 0   ;;  %s268_s1 = inlined_call_operand.vmem [shape: bf16[128,128], index: 1, kind: input, shape index: {}]   ;;  %s269_s0 = inlined_call_operand.vmem [shape: bf16[16,128], index: 0, kind: input, shape index: {}]   ;;  %s270_s2 = inlined_call_operand.vmem [shape: f32[1,128], index: 2, kind: input, shape index: {}]   ;;  %s271_s3 = inlined_call_operand.vmem [shape: f32[16,128], index: 3, kind: output, shape index: {}]  }
   0x1   :  { %179 = vmatprep.subr.bf16.mxu0 %v210_v0  ;;  %v201_v1 = vld [vmem:[%s268_s1] sm:$0xff]   ;;  %195 = vmatprep.mubr.msk.bf16.mxu0 %vm211_vm0, %v210_v0  ;;  %v202_v2 = vld [vmem:[%s268_s1 + $0x8] sm:$0xff]   ;;  %v203_v3 = vld [vmem:[%s268_s1 + $0x10] sm:$0xff]  }
   0x2   :  { %180 = vmatpush3.bf16.msra.mxu0 %v201_v1  ;;  %v204_v4 = vld [vmem:[%s268_s1 + $0x18] sm:$0xff]   ;;  %v205_v5 = vld [vmem:[%s268_s1 + $0x20] sm:$0xff]   ;;  %v206_v6 = vld [vmem:[%s268_s1 + $0x28] sm:$0xff]  }
   0x3   :  { %181 = vmatprep.subr.bf16.mxu0 %v210_v0  ;;  %v207_v7 = vld [vmem:[%s268_s1 + $0x30] sm:$0xff]   ;;  %v208_v8 = vld [vmem:[%s268_s1 + $0x38] sm:$0xff]   ;;  %v209_v9 = vld [vmem:[%s269_s0] sm:$0xff]  }
   0x4   :  { %v169_v10 = vld [vmem:[%s270_s2] ss:$0 sm:$0xff] }
   0x6   :  { %182 = vmatpush3.bf16.msra.mxu0 %v202_v2 }
   0x7   :  { %183 = vmatprep.subr.bf16.mxu0 %v210_v0 }
   0xa   :  { %184 = vmatpush3.bf16.msra.mxu0 %v203_v3 }
   0xb   :  { %185 = vmatprep.subr.bf16.mxu0 %v210_v0 }
   0xe   :  { %186 = vmatpush3.bf16.msra.mxu0 %v204_v4 }
   0xf   :  { %187 = vmatprep.subr.bf16.mxu0 %v210_v0 }
  0x12   :  { %188 = vmatpush3.bf16.msra.mxu0 %v205_v5 }
  0x13   :  { %189 = vmatprep.subr.bf16.mxu0 %v210_v0 }
  0x16   :  { %190 = vmatpush3.bf16.msra.mxu0 %v206_v6 }
  0x17   :  { %191 = vmatprep.subr.bf16.mxu0 %v210_v0 }
  0x1a   :  { %192 = vmatpush3.bf16.msra.mxu0 %v207_v7 }
  0x1b   :  { %193 = vmatprep.subr.bf16.mxu0 %v210_v0 }
  0x1e   :  { %194 = vmatpush3.bf16.msra.mxu0 %v208_v8 }
  0x21   :  { %196 = vmatmul.mubr.bf16.vlgmr.msra.gmra.mrb[0].mxu0 %v209_v9 }
  0xf4   :  { %v129_v11 = vpop.f32.mrb[0].mxu0 }
  0xf5   :  { %v152_v12 = vadd.f32 %v169_v10, %v129_v11  ;;  %v197_v13 = vpop.f32.mrb[1].mxu0 }
  0xf6   :  { %v132_v14 = vpop.f32.mrb[2].mxu0 }
  0xf7   :  { %154 = vst [vmem:[%s271_s3] sm:$0xff] %v152_v12  ;;  %v153_v15 = vadd.f32 %v169_v10, %v132_v14  ;;  %v198_v16 = vpop.f32.mrb[3].mxu0 }
  0xf9   :  { %155 = vst [vmem:[%s271_s3 + $0x8] sm:$0xff] %v153_v15 }

</bundles_post_ra>
